<compile_context>
chip_gen: v5e
topology: v5e:2x2
jax: 0.10.0
libtpu: 0.0.40
codegen_flags: <defaults>
</compile_context>

<pallas_src>
import functools

import jax
import jax.numpy as jnp
from jax.experimental import pallas as pl
from jax.experimental.pallas import tpu as pltpu


# ----- Hyper-parameters fixed / implied by the PyTorch module ---------------
CHANNELS = 192
HALF = CHANNELS // 2          # 96  (pre: Conv1d(96, 192, 1))
HIDDEN = 192
KERNEL_SIZE = 5
DILATION_RATE = 1
N_LAYERS = 2                  # small, for the self-test


# ----------------------------- Pallas kernel --------------------------------
def _coupling_kernel(x0_ref, x1_ref, mask_ref,
                     w_pre_ref, b_pre_ref,
                     w_in_a_ref, b_in_a_ref,
                     w_in_b_ref, b_in_b_ref,
                     w_res_ref, b_res_ref,
                     w_skip_ref, b_skip_ref,
                     w_post_ref, b_post_ref,
                     out_ref,
                     hpad_ref,
                     *, n_layers, kernel_size, dilation_rate, pad_alloc, seq_len):
    T = seq_len
    mask = mask_ref[0]                                   # (T, 1)
    x0 = x0_ref[0]                                       # (T, HALF)
    x1 = x1_ref[0]                                       # (T, HALF)

    # pre: 1x1 conv == matmul over channels, then mask.
    h = jnp.dot(x0, w_pre_ref[...], preferred_element_type=jnp.float32)
    h = (h + b_pre_ref[...]) * mask                      # (T, HIDDEN)

    # Zero the time-padded scratch once; only the aligned interior is rewritten.
    hpad_ref[...] = jnp.zeros_like(hpad_ref)

    output = jnp.zeros((T, HIDDEN), jnp.float32)

    for i in range(n_layers):
        dilation = dilation_rate ** i
        pad = dilation * (kernel_size - 1) // 2

        # Stage current hidden state into the zero-padded time buffer
        # (aligned sublane store: pad_alloc and T are multiples of 8).
        hpad_ref[pl.ds(pad_alloc, T), :] = h

        # Dilated conv, split into tanh / sigmoid halves so no lane slicing
        # is ever needed (each matmul output is exactly HIDDEN lanes).
        xa = jnp.zeros((T, HIDDEN), jnp.float32)
        xb = jnp.zeros((T, HIDDEN), jnp.float32)
        for k in range(kernel_size):
            off = pad_alloc - pad + k * dilation          # static python int
            h_shift = hpad_ref[pl.ds(off, T), :]          # (T, HIDDEN)
            xa = xa + jnp.dot(h_shift, w_in_a_ref[i, k],
                              preferred_element_type=jnp.float32)
            xb = xb + jnp.dot(h_shift, w_in_b_ref[i, k],
                              preferred_element_type=jnp.float32)
        xa = xa + b_in_a_ref[i]
        xb = xb + b_in_b_ref[i]

        # fused_add_tanh_sigmoid_multiply with g == 0, dropout p == 0.
        acts = jnp.tanh(xa) * (1.0 / (1.0 + jnp.exp(-xb)))

        # res/skip 1x1 convs.  Skip half contributes to `output` for every
        # layer (the last layer's full conv is packed into the skip slot).
        skip = jnp.dot(acts, w_skip_ref[i],
                       preferred_element_type=jnp.float32) + b_skip_ref[i]
        output = output + skip
        if i < n_layers - 1:
            res = jnp.dot(acts, w_res_ref[i],
                          preferred_element_type=jnp.float32) + b_res_ref[i]
            h = (h + res) * mask

    output = output * mask

    # post: 1x1 conv + mask.
    stats = jnp.dot(output, w_post_ref[...], preferred_element_type=jnp.float32)
    stats = (stats + b_post_ref[...]) * mask

    # ResidualReverse forward (reverse=False): logs == 0 -> x1' = (stats + x1) * mask
    out_ref[0] = ((stats + x1) * mask).astype(out_ref.dtype)


# ------------------------------ Wrapper --------------------------------------
def residual_coupling_forward(x, x_mask, kernel_params):
    """x: (B, 192, T) float32, x_mask: (B, 1, T).  Returns (B, 192, T)."""
    B, C, T = x.shape
    assert C == CHANNELS

    maxpad = (DILATION_RATE ** (N_LAYERS - 1)) * (KERNEL_SIZE - 1) // 2
    pad_alloc = max(8, ((maxpad + 7) // 8) * 8)           # keep interior store aligned
    t_pad = T + 2 * pad_alloc

    # Lane-dense (time, channel) layout: channels map to the 128-lane axis so
    # every 1x1 / dilated conv is an MXU matmul.  No padding round-trips.
    x0 = jnp.transpose(x[:, :HALF, :], (0, 2, 1)).astype(jnp.float32)   # (B, T, 96)
    x1 = jnp.transpose(x[:, HALF:, :], (0, 2, 1)).astype(jnp.float32)   # (B, T, 96)
    m = jnp.transpose(x_mask, (0, 2, 1)).astype(jnp.float32)            # (B, T, 1)

    (w_pre, b_pre, w_in_a, b_in_a, w_in_b, b_in_b,
     w_res, b_res, w_skip, b_skip, w_post, b_post) = kernel_params

    kernel = functools.partial(
        _coupling_kernel,
        n_layers=N_LAYERS, kernel_size=KERNEL_SIZE,
        dilation_rate=DILATION_RATE, pad_alloc=pad_alloc, seq_len=T)

    def bmap(b): return (b, 0, 0)
    def w2(b): return (0, 0)
    def w3(b): return (0, 0, 0)
    def w4(b): return (0, 0, 0, 0)

    flops_per_b = (2 * T * HALF * HIDDEN
                   + N_LAYERS * (2 * KERNEL_SIZE * 2 * T * HIDDEN * HIDDEN
                                 + 2 * 2 * T * HIDDEN * HIDDEN)
                   + 2 * T * HIDDEN * HALF)
    inputs = (x0, x1, m, w_pre, b_pre, w_in_a, b_in_a, w_in_b, b_in_b,
              w_res, b_res, w_skip, b_skip, w_post, b_post)
    bytes_accessed = 4 * (sum(int(a.size) for a in inputs) + B * T * HALF)

    x1_new = pl.pallas_call(
        kernel,
        out_shape=jax.ShapeDtypeStruct((B, T, HALF), jnp.float32),
        grid=(B,),
        in_specs=[
            pl.BlockSpec((1, T, HALF), bmap),                              # x0
            pl.BlockSpec((1, T, HALF), bmap),                              # x1
            pl.BlockSpec((1, T, 1), bmap),                                 # mask
            pl.BlockSpec((HALF, HIDDEN), w2),                              # w_pre
            pl.BlockSpec((1, HIDDEN), w2),                                 # b_pre
            pl.BlockSpec((N_LAYERS, KERNEL_SIZE, HIDDEN, HIDDEN), w4),     # w_in_a (tanh)
            pl.BlockSpec((N_LAYERS, 1, HIDDEN), w3),                       # b_in_a
            pl.BlockSpec((N_LAYERS, KERNEL_SIZE, HIDDEN, HIDDEN), w4),     # w_in_b (sigmoid)
            pl.BlockSpec((N_LAYERS, 1, HIDDEN), w3),                       # b_in_b
            pl.BlockSpec((N_LAYERS, HIDDEN, HIDDEN), w3),                  # w_res
            pl.BlockSpec((N_LAYERS, 1, HIDDEN), w3),                       # b_res
            pl.BlockSpec((N_LAYERS, HIDDEN, HIDDEN), w3),                  # w_skip
            pl.BlockSpec((N_LAYERS, 1, HIDDEN), w3),                       # b_skip
            pl.BlockSpec((HIDDEN, HALF), w2),                              # w_post
            pl.BlockSpec((1, HALF), w2),                                   # b_post
        ],
        out_specs=pl.BlockSpec((1, T, HALF), bmap),
        scratch_shapes=[pltpu.VMEM((t_pad, HIDDEN), jnp.float32)],
        compiler_params=pltpu.CompilerParams(
            dimension_semantics=("parallel",)),                            # 2 TCs on v7x
        cost_estimate=pl.CostEstimate(
            flops=B * flops_per_b,
            transcendentals=B * N_LAYERS * T * HIDDEN * 2,
            bytes_accessed=bytes_accessed),
    )(*inputs)

    x1_new_nct = jnp.transpose(x1_new, (0, 2, 1))
    # x0 is passed through untouched by the coupling layer.
    return jnp.concatenate([x[:, :HALF, :], x1_new_nct], axis=1).astype(x.dtype)


# --------------------- Parameters (weight_norm folded) -----------------------
def init_raw_params(key):
    """PyTorch-layout effective weights (weight_norm folded at inference)."""
    sw, sb = 0.05, 0.02
    keys = iter(jax.random.split(key, 4 + 4 * N_LAYERS))
    p = dict(
        w_pre=sw * jax.random.normal(next(keys), (HIDDEN, HALF), jnp.float32),
        b_pre=sb * jax.random.normal(next(keys), (HIDDEN,), jnp.float32),
        w_in=[], b_in=[], w_rs=[], b_rs=[],
    )
    for i in range(N_LAYERS):
        p['w_in'].append(sw * jax.random.normal(next(keys), (2 * HIDDEN, HIDDEN, KERNEL_SIZE), jnp.float32))
        p['b_in'].append(sb * jax.random.normal(next(keys), (2 * HIDDEN,), jnp.float32))
        rs_out = 2 * HIDDEN if i < N_LAYERS - 1 else HIDDEN
        p['w_rs'].append(sw * jax.random.normal(next(keys), (rs_out, HIDDEN), jnp.float32))
        p['b_rs'].append(sb * jax.random.normal(next(keys), (rs_out,), jnp.float32))
    p['w_post'] = sw * jax.random.normal(next(keys), (HALF, HIDDEN), jnp.float32)
    p['b_post'] = sb * jax.random.normal(next(keys), (HALF,), jnp.float32)
    return p


def pack_kernel_params(raw):
    """Transpose / split weights into the matmul-friendly layouts the kernel uses."""
    w_pre = raw['w_pre'].T                                                # (HALF, HID)
    b_pre = raw['b_pre'][None, :]
    w_in_a = jnp.stack([jnp.transpose(w[:HIDDEN], (2, 1, 0)) for w in raw['w_in']])   # (L,K,HID,HID)
    w_in_b = jnp.stack([jnp.transpose(w[HIDDEN:], (2, 1, 0)) for w in raw['w_in']])
    b_in_a = jnp.stack([b[:HIDDEN][None, :] for b in raw['b_in']])                    # (L,1,HID)
    b_in_b = jnp.stack([b[HIDDEN:][None, :] for b in raw['b_in']])
    w_res, b_res, w_skip, b_skip = [], [], [], []
    for i in range(N_LAYERS):
        if i < N_LAYERS - 1:
            w_res.append(raw['w_rs'][i][:HIDDEN].T)
            b_res.append(raw['b_rs'][i][:HIDDEN][None, :])
            w_skip.append(raw['w_rs'][i][HIDDEN:].T)
            b_skip.append(raw['b_rs'][i][HIDDEN:][None, :])
        else:  # last layer: full H->H conv goes into the skip slot; res slot unused
            w_res.append(jnp.zeros((HIDDEN, HIDDEN), jnp.float32))
            b_res.append(jnp.zeros((1, HIDDEN), jnp.float32))
            w_skip.append(raw['w_rs'][i].T)
            b_skip.append(raw['b_rs'][i][None, :])
    return (w_pre, b_pre, w_in_a, b_in_a, w_in_b, b_in_b,
            jnp.stack(w_res), jnp.stack(b_res), jnp.stack(w_skip), jnp.stack(b_skip),
            raw['w_post'].T, raw['b_post'][None, :])


# --------------------------- Pure-JAX reference ------------------------------
def reference_forward(x, x_mask, raw):
    hp = jax.lax.Precision.HIGHEST

    def conv1x1(v, w, b):
        return jnp.einsum('oc,bct->bot', w, v, precision=hp) + b[None, :, None]

    x0, x1 = x[:, :HALF, :], x[:, HALF:, :]
    h = conv1x1(x0, raw['w_pre'], raw['b_pre']) * x_mask
    out = jnp.zeros_like(h)
    for i in range(N_LAYERS):
        d = DILATION_RATE ** i
        pad = d * (KERNEL_SIZE - 1) // 2
        x_in = jax.lax.conv_general_dilated(
            h, raw['w_in'][i], window_strides=(1,), padding=[(pad, pad)],
            rhs_dilation=(d,), dimension_numbers=('NCH', 'OIH', 'NCH'),
            precision=hp) + raw['b_in'][i][None, :, None]
        acts = jnp.tanh(x_in[:, :HIDDEN]) * jax.nn.sigmoid(x_in[:, HIDDEN:])
        rs = conv1x1(acts, raw['w_rs'][i], raw['b_rs'][i])
        if i < N_LAYERS - 1:
            h = (h + rs[:, :HIDDEN]) * x_mask
            out = out + rs[:, HIDDEN:]
        else:
            out = out + rs
    out = out * x_mask
    stats = conv1x1(out, raw['w_post'], raw['b_post']) * x_mask
    x1n = (stats + x1) * x_mask
    return jnp.concatenate([x0, x1n], axis=1)


# ----------------------------------- Main ------------------------------------
if __name__ == "__main__":
    key = jax.random.PRNGKey(0)
    k_x, k_p = jax.random.split(key)

    B, T = 2, 16
    x = jax.random.normal(k_x, (B, CHANNELS, T), jnp.float32)
    lengths = jnp.array([T, T - 5], jnp.int32)
    x_mask = (jnp.arange(T)[None, None, :] < lengths[:, None, None]).astype(jnp.float32)  # (B,1,T)

    raw = init_raw_params(k_p)
    kparams = pack_kernel_params(raw)

    fwd = jax.jit(residual_coupling_forward)
    y = jax.block_until_ready(fwd(x, x_mask, kparams))
    y_ref = reference_forward(x, x_mask, raw)

    assert y.shape == (B, CHANNELS, T) and y.dtype == x.dtype
    max_err = float(jnp.max(jnp.abs(y - y_ref)))
    assert max_err < 2e-2, f"mismatch vs reference: max abs err = {max_err}"
    print("KERNEL_OK")
</pallas_src>

<mosaic_0001>
module attributes {stable_mosaic.version = 11 : i64} {
  func.func @_coupling_kernel(%arg0: i32, %arg1: memref<1x16x96xf32, #tpu.memory_space<vmem>>, %arg2: memref<1x16x96xf32, #tpu.memory_space<vmem>>, %arg3: memref<1x16x1xf32, #tpu.memory_space<vmem>>, %arg4: memref<96x192xf32, #tpu.memory_space<vmem>>, %arg5: memref<1x192xf32, #tpu.memory_space<vmem>>, %arg6: memref<2x5x192x192xf32, #tpu.memory_space<vmem>>, %arg7: memref<2x1x192xf32, #tpu.memory_space<vmem>>, %arg8: memref<2x5x192x192xf32, #tpu.memory_space<vmem>>, %arg9: memref<2x1x192xf32, #tpu.memory_space<vmem>>, %arg10: memref<2x192x192xf32, #tpu.memory_space<vmem>>, %arg11: memref<2x1x192xf32, #tpu.memory_space<vmem>>, %arg12: memref<2x192x192xf32, #tpu.memory_space<vmem>>, %arg13: memref<2x1x192xf32, #tpu.memory_space<vmem>>, %arg14: memref<192x96xf32, #tpu.memory_space<vmem>>, %arg15: memref<1x96xf32, #tpu.memory_space<vmem>>, %arg16: memref<1x16x96xf32, #tpu.memory_space<vmem>>, %arg17: memref<32x192xf32, #tpu.memory_space<vmem>>) attributes {dimension_semantics = [#tpu.dimension_semantics<parallel>], iteration_bounds = array<i64: 2>, scalar_prefetch = 0 : i64, scratch_operands = 1 : i64, tpu.core_type = #tpu.core_type<tc>, window_params = [{transform_indices = @transform_0, window_bounds = array<i64: 1, 16, 96>}, {transform_indices = @transform_1, window_bounds = array<i64: 1, 16, 96>}, {transform_indices = @transform_2, window_bounds = array<i64: 1, 16, 1>}, {pipeline_mode = #tpu.pipeline_mode<synchronous>, transform_indices = @transform_3, window_bounds = array<i64: 96, 192>}, {pipeline_mode = #tpu.pipeline_mode<synchronous>, transform_indices = @transform_4, window_bounds = array<i64: 1, 192>}, {pipeline_mode = #tpu.pipeline_mode<synchronous>, transform_indices = @transform_5, window_bounds = array<i64: 2, 5, 192, 192>}, {pipeline_mode = #tpu.pipeline_mode<synchronous>, transform_indices = @transform_6, window_bounds = array<i64: 2, 1, 192>}, {pipeline_mode = #tpu.pipeline_mode<synchronous>, transform_indices = @transform_7, window_bounds = array<i64: 2, 5, 192, 192>}, {pipeline_mode = #tpu.pipeline_mode<synchronous>, transform_indices = @transform_8, window_bounds = array<i64: 2, 1, 192>}, {pipeline_mode = #tpu.pipeline_mode<synchronous>, transform_indices = @transform_9, window_bounds = array<i64: 2, 192, 192>}, {pipeline_mode = #tpu.pipeline_mode<synchronous>, transform_indices = @transform_10, window_bounds = array<i64: 2, 1, 192>}, {pipeline_mode = #tpu.pipeline_mode<synchronous>, transform_indices = @transform_11, window_bounds = array<i64: 2, 192, 192>}, {pipeline_mode = #tpu.pipeline_mode<synchronous>, transform_indices = @transform_12, window_bounds = array<i64: 2, 1, 192>}, {pipeline_mode = #tpu.pipeline_mode<synchronous>, transform_indices = @transform_13, window_bounds = array<i64: 192, 96>}, {pipeline_mode = #tpu.pipeline_mode<synchronous>, transform_indices = @transform_14, window_bounds = array<i64: 1, 96>}, {transform_indices = @transform_15, window_bounds = array<i64: 1, 16, 96>}]} {
    %c0 = arith.constant 0 : index
    %c0_0 = arith.constant 0 : index
    %c0_1 = arith.constant 0 : index
    %0 = vector.load %arg3[%c0, %c0_0, %c0_1] : memref<1x16x1xf32, #tpu.memory_space<vmem>>, vector<1x16x1xf32>
    %1 = vector.shape_cast %0 : vector<1x16x1xf32> to vector<16x1xf32>
    %c0_2 = arith.constant 0 : index
    %c0_3 = arith.constant 0 : index
    %c0_4 = arith.constant 0 : index
    %2 = vector.load %arg1[%c0_2, %c0_3, %c0_4] : memref<1x16x96xf32, #tpu.memory_space<vmem>>, vector<1x16x96xf32>
    %3 = vector.shape_cast %2 : vector<1x16x96xf32> to vector<16x96xf32>
    %c0_5 = arith.constant 0 : index
    %c0_6 = arith.constant 0 : index
    %c0_7 = arith.constant 0 : index
    %4 = vector.load %arg2[%c0_5, %c0_6, %c0_7] : memref<1x16x96xf32, #tpu.memory_space<vmem>>, vector<1x16x96xf32>
    %5 = vector.shape_cast %4 : vector<1x16x96xf32> to vector<16x96xf32>
    %c0_8 = arith.constant 0 : index
    %c0_9 = arith.constant 0 : index
    %6 = vector.load %arg4[%c0_8, %c0_9] : memref<96x192xf32, #tpu.memory_space<vmem>>, vector<96x192xf32>
    %cst = arith.constant dense<0.000000e+00> : vector<16x192xf32>
    %7 = tpu.matmul %3, %6, %cst {dimension_numbers = #tpu.dot_dimension_numbers<[1], [0], [0], [1], [0, 0, 1, 1], [], []>} : vector<16x96xf32>, vector<96x192xf32>, vector<16x192xf32> -> vector<16x192xf32>
    %c0_10 = arith.constant 0 : index
    %c0_11 = arith.constant 0 : index
    %8 = vector.load %arg5[%c0_10, %c0_11] : memref<1x192xf32, #tpu.memory_space<vmem>>, vector<1x192xf32>
    %9 = vector.broadcast %8 : vector<1x192xf32> to vector<16x192xf32>
    %10 = arith.addf %7, %9 : vector<16x192xf32>
    %11 = vector.broadcast %1 : vector<16x1xf32> to vector<16x192xf32>
    %12 = arith.mulf %10, %11 : vector<16x192xf32>
    %cst_12 = arith.constant 0.000000e+00 : f32
    %13 = vector.broadcast %cst_12 : f32 to vector<32x192xf32>
    %c0_13 = arith.constant 0 : index
    %c0_14 = arith.constant 0 : index
    %14 = vector.load %arg17[%c0_13, %c0_14] : memref<32x192xf32, #tpu.memory_space<vmem>>, vector<32x192xf32>
    tpu.vector_store %arg17[%c0_13, %c0_14], %13 {strides = array<i32>} : memref<32x192xf32, #tpu.memory_space<vmem>>, vector<32x192xf32>,
    %cst_15 = arith.constant 0.000000e+00 : f32
    %15 = vector.broadcast %cst_15 : f32 to vector<16x192xf32>
    %c8 = arith.constant 8 : index
    %c0_16 = arith.constant 0 : index
    %16 = vector.load %arg17[%c8, %c0_16] : memref<32x192xf32, #tpu.memory_space<vmem>>, vector<16x192xf32>
    tpu.vector_store %arg17[%c8, %c0_16], %12 {strides = array<i32>} : memref<32x192xf32, #tpu.memory_space<vmem>>, vector<16x192xf32>,
    %cst_17 = arith.constant 0.000000e+00 : f32
    %17 = vector.broadcast %cst_17 : f32 to vector<16x192xf32>
    %cst_18 = arith.constant 0.000000e+00 : f32
    %18 = vector.broadcast %cst_18 : f32 to vector<16x192xf32>
    %c6 = arith.constant 6 : index
    %c0_19 = arith.constant 0 : index
    %19 = vector.load %arg17[%c6, %c0_19] : memref<32x192xf32, #tpu.memory_space<vmem>>, vector<16x192xf32>
    %c0_20 = arith.constant 0 : index
    %c0_21 = arith.constant 0 : index
    %c0_22 = arith.constant 0 : index
    %c0_23 = arith.constant 0 : index
    %20 = vector.load %arg6[%c0_20, %c0_21, %c0_22, %c0_23] : memref<2x5x192x192xf32, #tpu.memory_space<vmem>>, vector<1x1x192x192xf32>
    %21 = vector.shape_cast %20 : vector<1x1x192x192xf32> to vector<192x192xf32>
    %cst_24 = arith.constant dense<0.000000e+00> : vector<16x192xf32>
    %22 = tpu.matmul %19, %21, %cst_24 {dimension_numbers = #tpu.dot_dimension_numbers<[1], [0], [0], [1], [0, 0, 1, 1], [], []>} : vector<16x192xf32>, vector<192x192xf32>, vector<16x192xf32> -> vector<16x192xf32>
    %23 = arith.addf %17, %22 : vector<16x192xf32>
    %c0_25 = arith.constant 0 : index
    %c0_26 = arith.constant 0 : index
    %c0_27 = arith.constant 0 : index
    %c0_28 = arith.constant 0 : index
    %24 = vector.load %arg8[%c0_25, %c0_26, %c0_27, %c0_28] : memref<2x5x192x192xf32, #tpu.memory_space<vmem>>, vector<1x1x192x192xf32>
    %25 = vector.shape_cast %24 : vector<1x1x192x192xf32> to vector<192x192xf32>
    %cst_29 = arith.constant dense<0.000000e+00> : vector<16x192xf32>
    %26 = tpu.matmul %19, %25, %cst_29 {dimension_numbers = #tpu.dot_dimension_numbers<[1], [0], [0], [1], [0, 0, 1, 1], [], []>} : vector<16x192xf32>, vector<192x192xf32>, vector<16x192xf32> -> vector<16x192xf32>
    %27 = arith.addf %18, %26 : vector<16x192xf32>
    %c7 = arith.constant 7 : index
    %c0_30 = arith.constant 0 : index
    %28 = vector.load %arg17[%c7, %c0_30] : memref<32x192xf32, #tpu.memory_space<vmem>>, vector<16x192xf32>
    %c0_31 = arith.constant 0 : index
    %c1 = arith.constant 1 : index
    %c0_32 = arith.constant 0 : index
    %c0_33 = arith.constant 0 : index
    %29 = vector.load %arg6[%c0_31, %c1, %c0_32, %c0_33] : memref<2x5x192x192xf32, #tpu.memory_space<vmem>>, vector<1x1x192x192xf32>
    %30 = vector.shape_cast %29 : vector<1x1x192x192xf32> to vector<192x192xf32>
    %cst_34 = arith.constant dense<0.000000e+00> : vector<16x192xf32>
    %31 = tpu.matmul %28, %30, %cst_34 {dimension_numbers = #tpu.dot_dimension_numbers<[1], [0], [0], [1], [0, 0, 1, 1], [], []>} : vector<16x192xf32>, vector<192x192xf32>, vector<16x192xf32> -> vector<16x192xf32>
    %32 = arith.addf %23, %31 : vector<16x192xf32>
    %c0_35 = arith.constant 0 : index
    %c1_36 = arith.constant 1 : index
    %c0_37 = arith.constant 0 : index
    %c0_38 = arith.constant 0 : index
    %33 = vector.load %arg8[%c0_35, %c1_36, %c0_37, %c0_38] : memref<2x5x192x192xf32, #tpu.memory_space<vmem>>, vector<1x1x192x192xf32>
    %34 = vector.shape_cast %33 : vector<1x1x192x192xf32> to vector<192x192xf32>
    %cst_39 = arith.constant dense<0.000000e+00> : vector<16x192xf32>
    %35 = tpu.matmul %28, %34, %cst_39 {dimension_numbers = #tpu.dot_dimension_numbers<[1], [0], [0], [1], [0, 0, 1, 1], [], []>} : vector<16x192xf32>, vector<192x192xf32>, vector<16x192xf32> -> vector<16x192xf32>
    %36 = arith.addf %27, %35 : vector<16x192xf32>
    %c8_40 = arith.constant 8 : index
    %c0_41 = arith.constant 0 : index
    %37 = vector.load %arg17[%c8_40, %c0_41] : memref<32x192xf32, #tpu.memory_space<vmem>>, vector<16x192xf32>
    %c0_42 = arith.constant 0 : index
    %c2 = arith.constant 2 : index
    %c0_43 = arith.constant 0 : index
    %c0_44 = arith.constant 0 : index
    %38 = vector.load %arg6[%c0_42, %c2, %c0_43, %c0_44] : memref<2x5x192x192xf32, #tpu.memory_space<vmem>>, vector<1x1x192x192xf32>
    %39 = vector.shape_cast %38 : vector<1x1x192x192xf32> to vector<192x192xf32>
    %cst_45 = arith.constant dense<0.000000e+00> : vector<16x192xf32>
    %40 = tpu.matmul %37, %39, %cst_45 {dimension_numbers = #tpu.dot_dimension_numbers<[1], [0], [0], [1], [0, 0, 1, 1], [], []>} : vector<16x192xf32>, vector<192x192xf32>, vector<16x192xf32> -> vector<16x192xf32>
    %41 = arith.addf %32, %40 : vector<16x192xf32>
    %c0_46 = arith.constant 0 : index
    %c2_47 = arith.constant 2 : index
    %c0_48 = arith.constant 0 : index
    %c0_49 = arith.constant 0 : index
    %42 = vector.load %arg8[%c0_46, %c2_47, %c0_48, %c0_49] : memref<2x5x192x192xf32, #tpu.memory_space<vmem>>, vector<1x1x192x192xf32>
    %43 = vector.shape_cast %42 : vector<1x1x192x192xf32> to vector<192x192xf32>
    %cst_50 = arith.constant dense<0.000000e+00> : vector<16x192xf32>
    %44 = tpu.matmul %37, %43, %cst_50 {dimension_numbers = #tpu.dot_dimension_numbers<[1], [0], [0], [1], [0, 0, 1, 1], [], []>} : vector<16x192xf32>, vector<192x192xf32>, vector<16x192xf32> -> vector<16x192xf32>
    %45 = arith.addf %36, %44 : vector<16x192xf32>
    %c9 = arith.constant 9 : index
    %c0_51 = arith.constant 0 : index
    %46 = vector.load %arg17[%c9, %c0_51] : memref<32x192xf32, #tpu.memory_space<vmem>>, vector<16x192xf32>
    %c0_52 = arith.constant 0 : index
    %c3 = arith.constant 3 : index
    %c0_53 = arith.constant 0 : index
    %c0_54 = arith.constant 0 : index
    %47 = vector.load %arg6[%c0_52, %c3, %c0_53, %c0_54] : memref<2x5x192x192xf32, #tpu.memory_space<vmem>>, vector<1x1x192x192xf32>
    %48 = vector.shape_cast %47 : vector<1x1x192x192xf32> to vector<192x192xf32>
    %cst_55 = arith.constant dense<0.000000e+00> : vector<16x192xf32>
    %49 = tpu.matmul %46, %48, %cst_55 {dimension_numbers = #tpu.dot_dimension_numbers<[1], [0], [0], [1], [0, 0, 1, 1], [], []>} : vector<16x192xf32>, vector<192x192xf32>, vector<16x192xf32> -> vector<16x192xf32>
    %50 = arith.addf %41, %49 : vector<16x192xf32>
    %c0_56 = arith.constant 0 : index
    %c3_57 = arith.constant 3 : index
    %c0_58 = arith.constant 0 : index
    %c0_59 = arith.constant 0 : index
    %51 = vector.load %arg8[%c0_56, %c3_57, %c0_58, %c0_59] : memref<2x5x192x192xf32, #tpu.memory_space<vmem>>, vector<1x1x192x192xf32>
    %52 = vector.shape_cast %51 : vector<1x1x192x192xf32> to vector<192x192xf32>
    %cst_60 = arith.constant dense<0.000000e+00> : vector<16x192xf32>
    %53 = tpu.matmul %46, %52, %cst_60 {dimension_numbers = #tpu.dot_dimension_numbers<[1], [0], [0], [1], [0, 0, 1, 1], [], []>} : vector<16x192xf32>, vector<192x192xf32>, vector<16x192xf32> -> vector<16x192xf32>
    %54 = arith.addf %45, %53 : vector<16x192xf32>
    %c10 = arith.constant 10 : index
    %c0_61 = arith.constant 0 : index
    %55 = vector.load %arg17[%c10, %c0_61] : memref<32x192xf32, #tpu.memory_space<vmem>>, vector<16x192xf32>
    %c0_62 = arith.constant 0 : index
    %c4 = arith.constant 4 : index
    %c0_63 = arith.constant 0 : index
    %c0_64 = arith.constant 0 : index
    %56 = vector.load %arg6[%c0_62, %c4, %c0_63, %c0_64] : memref<2x5x192x192xf32, #tpu.memory_space<vmem>>, vector<1x1x192x192xf32>
    %57 = vector.shape_cast %56 : vector<1x1x192x192xf32> to vector<192x192xf32>
    %cst_65 = arith.constant dense<0.000000e+00> : vector<16x192xf32>
    %58 = tpu.matmul %55, %57, %cst_65 {dimension_numbers = #tpu.dot_dimension_numbers<[1], [0], [0], [1], [0, 0, 1, 1], [], []>} : vector<16x192xf32>, vector<192x192xf32>, vector<16x192xf32> -> vector<16x192xf32>
    %59 = arith.addf %50, %58 : vector<16x192xf32>
    %c0_66 = arith.constant 0 : index
    %c4_67 = arith.constant 4 : index
    %c0_68 = arith.constant 0 : index
    %c0_69 = arith.constant 0 : index
    %60 = vector.load %arg8[%c0_66, %c4_67, %c0_68, %c0_69] : memref<2x5x192x192xf32, #tpu.memory_space<vmem>>, vector<1x1x192x192xf32>
    %61 = vector.shape_cast %60 : vector<1x1x192x192xf32> to vector<192x192xf32>
    %cst_70 = arith.constant dense<0.000000e+00> : vector<16x192xf32>
    %62 = tpu.matmul %55, %61, %cst_70 {dimension_numbers = #tpu.dot_dimension_numbers<[1], [0], [0], [1], [0, 0, 1, 1], [], []>} : vector<16x192xf32>, vector<192x192xf32>, vector<16x192xf32> -> vector<16x192xf32>
    %63 = arith.addf %54, %62 : vector<16x192xf32>
    %c0_71 = arith.constant 0 : index
    %c0_72 = arith.constant 0 : index
    %c0_73 = arith.constant 0 : index
    %64 = vector.load %arg7[%c0_71, %c0_72, %c0_73] : memref<2x1x192xf32, #tpu.memory_space<vmem>>, vector<1x1x192xf32>
    %65 = vector.shape_cast %64 : vector<1x1x192xf32> to vector<1x192xf32>
    %66 = vector.broadcast %65 : vector<1x192xf32> to vector<16x192xf32>
    %67 = arith.addf %59, %66 : vector<16x192xf32>
    %c0_74 = arith.constant 0 : index
    %c0_75 = arith.constant 0 : index
    %c0_76 = arith.constant 0 : index
    %68 = vector.load %arg9[%c0_74, %c0_75, %c0_76] : memref<2x1x192xf32, #tpu.memory_space<vmem>>, vector<1x1x192xf32>
    %69 = vector.shape_cast %68 : vector<1x1x192xf32> to vector<1x192xf32>
    %70 = vector.broadcast %69 : vector<1x192xf32> to vector<16x192xf32>
    %71 = arith.addf %63, %70 : vector<16x192xf32>
    %72 = math.tanh %67 : vector<16x192xf32>
    %cst_77 = arith.constant 0.000000e+00 : f32
    %73 = vector.broadcast %cst_77 : f32 to vector<16x192xf32>
    %74 = arith.subf %73, %71 : vector<16x192xf32>
    %75 = math.exp %74 : vector<16x192xf32>
    %cst_78 = arith.constant 1.000000e+00 : f32
    %76 = vector.broadcast %cst_78 : f32 to vector<16x192xf32>
    %77 = arith.addf %76, %75 : vector<16x192xf32>
    %cst_79 = arith.constant 1.000000e+00 : f32
    %78 = vector.broadcast %cst_79 : f32 to vector<16x192xf32>
    %79 = arith.divf %78, %77 : vector<16x192xf32>
    %80 = arith.mulf %72, %79 : vector<16x192xf32>
    %c0_80 = arith.constant 0 : index
    %c0_81 = arith.constant 0 : index
    %c0_82 = arith.constant 0 : index
    %81 = vector.load %arg12[%c0_80, %c0_81, %c0_82] : memref<2x192x192xf32, #tpu.memory_space<vmem>>, vector<1x192x192xf32>
    %82 = vector.shape_cast %81 : vector<1x192x192xf32> to vector<192x192xf32>
    %cst_83 = arith.constant dense<0.000000e+00> : vector<16x192xf32>
    %83 = tpu.matmul %80, %82, %cst_83 {dimension_numbers = #tpu.dot_dimension_numbers<[1], [0], [0], [1], [0, 0, 1, 1], [], []>} : vector<16x192xf32>, vector<192x192xf32>, vector<16x192xf32> -> vector<16x192xf32>
    %c0_84 = arith.constant 0 : index
    %c0_85 = arith.constant 0 : index
    %c0_86 = arith.constant 0 : index
    %84 = vector.load %arg13[%c0_84, %c0_85, %c0_86] : memref<2x1x192xf32, #tpu.memory_space<vmem>>, vector<1x1x192xf32>
    %85 = vector.shape_cast %84 : vector<1x1x192xf32> to vector<1x192xf32>
    %86 = vector.broadcast %85 : vector<1x192xf32> to vector<16x192xf32>
    %87 = arith.addf %83, %86 : vector<16x192xf32>
    %88 = arith.addf %15, %87 : vector<16x192xf32>
    %c0_87 = arith.constant 0 : index
    %c0_88 = arith.constant 0 : index
    %c0_89 = arith.constant 0 : index
    %89 = vector.load %arg10[%c0_87, %c0_88, %c0_89] : memref<2x192x192xf32, #tpu.memory_space<vmem>>, vector<1x192x192xf32>
    %90 = vector.shape_cast %89 : vector<1x192x192xf32> to vector<192x192xf32>
    %cst_90 = arith.constant dense<0.000000e+00> : vector<16x192xf32>
    %91 = tpu.matmul %80, %90, %cst_90 {dimension_numbers = #tpu.dot_dimension_numbers<[1], [0], [0], [1], [0, 0, 1, 1], [], []>} : vector<16x192xf32>, vector<192x192xf32>, vector<16x192xf32> -> vector<16x192xf32>
    %c0_91 = arith.constant 0 : index
    %c0_92 = arith.constant 0 : index
    %c0_93 = arith.constant 0 : index
    %92 = vector.load %arg11[%c0_91, %c0_92, %c0_93] : memref<2x1x192xf32, #tpu.memory_space<vmem>>, vector<1x1x192xf32>
    %93 = vector.shape_cast %92 : vector<1x1x192xf32> to vector<1x192xf32>
    %94 = vector.broadcast %93 : vector<1x192xf32> to vector<16x192xf32>
    %95 = arith.addf %91, %94 : vector<16x192xf32>
    %96 = arith.addf %12, %95 : vector<16x192xf32>
    %97 = vector.broadcast %1 : vector<16x1xf32> to vector<16x192xf32>
    %98 = arith.mulf %96, %97 : vector<16x192xf32>
    %c8_94 = arith.constant 8 : index
    %c0_95 = arith.constant 0 : index
    %99 = vector.load %arg17[%c8_94, %c0_95] : memref<32x192xf32, #tpu.memory_space<vmem>>, vector<16x192xf32>
    tpu.vector_store %arg17[%c8_94, %c0_95], %98 {strides = array<i32>} : memref<32x192xf32, #tpu.memory_space<vmem>>, vector<16x192xf32>,
    %cst_96 = arith.constant 0.000000e+00 : f32
    %100 = vector.broadcast %cst_96 : f32 to vector<16x192xf32>
    %cst_97 = arith.constant 0.000000e+00 : f32
    %101 = vector.broadcast %cst_97 : f32 to vector<16x192xf32>
    %c6_98 = arith.constant 6 : index
    %c0_99 = arith.constant 0 : index
    %102 = vector.load %arg17[%c6_98, %c0_99] : memref<32x192xf32, #tpu.memory_space<vmem>>, vector<16x192xf32>
    %c1_100 = arith.constant 1 : index
    %c0_101 = arith.constant 0 : index
    %c0_102 = arith.constant 0 : index
    %c0_103 = arith.constant 0 : index
    %103 = vector.load %arg6[%c1_100, %c0_101, %c0_102, %c0_103] : memref<2x5x192x192xf32, #tpu.memory_space<vmem>>, vector<1x1x192x192xf32>
    %104 = vector.shape_cast %103 : vector<1x1x192x192xf32> to vector<192x192xf32>
    %cst_104 = arith.constant dense<0.000000e+00> : vector<16x192xf32>
    %105 = tpu.matmul %102, %104, %cst_104 {dimension_numbers = #tpu.dot_dimension_numbers<[1], [0], [0], [1], [0, 0, 1, 1], [], []>} : vector<16x192xf32>, vector<192x192xf32>, vector<16x192xf32> -> vector<16x192xf32>
    %106 = arith.addf %100, %105 : vector<16x192xf32>
    %c1_105 = arith.constant 1 : index
    %c0_106 = arith.constant 0 : index
    %c0_107 = arith.constant 0 : index
    %c0_108 = arith.constant 0 : index
    %107 = vector.load %arg8[%c1_105, %c0_106, %c0_107, %c0_108] : memref<2x5x192x192xf32, #tpu.memory_space<vmem>>, vector<1x1x192x192xf32>
    %108 = vector.shape_cast %107 : vector<1x1x192x192xf32> to vector<192x192xf32>
    %cst_109 = arith.constant dense<0.000000e+00> : vector<16x192xf32>
    %109 = tpu.matmul %102, %108, %cst_109 {dimension_numbers = #tpu.dot_dimension_numbers<[1], [0], [0], [1], [0, 0, 1, 1], [], []>} : vector<16x192xf32>, vector<192x192xf32>, vector<16x192xf32> -> vector<16x192xf32>
    %110 = arith.addf %101, %109 : vector<16x192xf32>
    %c7_110 = arith.constant 7 : index
    %c0_111 = arith.constant 0 : index
    %111 = vector.load %arg17[%c7_110, %c0_111] : memref<32x192xf32, #tpu.memory_space<vmem>>, vector<16x192xf32>
    %c1_112 = arith.constant 1 : index
    %c1_113 = arith.constant 1 : index
    %c0_114 = arith.constant 0 : index
    %c0_115 = arith.constant 0 : index
    %112 = vector.load %arg6[%c1_112, %c1_113, %c0_114, %c0_115] : memref<2x5x192x192xf32, #tpu.memory_space<vmem>>, vector<1x1x192x192xf32>
    %113 = vector.shape_cast %112 : vector<1x1x192x192xf32> to vector<192x192xf32>
    %cst_116 = arith.constant dense<0.000000e+00> : vector<16x192xf32>
    %114 = tpu.matmul %111, %113, %cst_116 {dimension_numbers = #tpu.dot_dimension_numbers<[1], [0], [0], [1], [0, 0, 1, 1], [], []>} : vector<16x192xf32>, vector<192x192xf32>, vector<16x192xf32> -> vector<16x192xf32>
    %115 = arith.addf %106, %114 : vector<16x192xf32>
    %c1_117 = arith.constant 1 : index
    %c1_118 = arith.constant 1 : index
    %c0_119 = arith.constant 0 : index
    %c0_120 = arith.constant 0 : index
    %116 = vector.load %arg8[%c1_117, %c1_118, %c0_119, %c0_120] : memref<2x5x192x192xf32, #tpu.memory_space<vmem>>, vector<1x1x192x192xf32>
    %117 = vector.shape_cast %116 : vector<1x1x192x192xf32> to vector<192x192xf32>
    %cst_121 = arith.constant dense<0.000000e+00> : vector<16x192xf32>
    %118 = tpu.matmul %111, %117, %cst_121 {dimension_numbers = #tpu.dot_dimension_numbers<[1], [0], [0], [1], [0, 0, 1, 1], [], []>} : vector<16x192xf32>, vector<192x192xf32>, vector<16x192xf32> -> vector<16x192xf32>
    %119 = arith.addf %110, %118 : vector<16x192xf32>
    %c8_122 = arith.constant 8 : index
    %c0_123 = arith.constant 0 : index
    %120 = vector.load %arg17[%c8_122, %c0_123] : memref<32x192xf32, #tpu.memory_space<vmem>>, vector<16x192xf32>
    %c1_124 = arith.constant 1 : index
    %c2_125 = arith.constant 2 : index
    %c0_126 = arith.constant 0 : index
    %c0_127 = arith.constant 0 : index
    %121 = vector.load %arg6[%c1_124, %c2_125, %c0_126, %c0_127] : memref<2x5x192x192xf32, #tpu.memory_space<vmem>>, vector<1x1x192x192xf32>
    %122 = vector.shape_cast %121 : vector<1x1x192x192xf32> to vector<192x192xf32>
    %cst_128 = arith.constant dense<0.000000e+00> : vector<16x192xf32>
    %123 = tpu.matmul %120, %122, %cst_128 {dimension_numbers = #tpu.dot_dimension_numbers<[1], [0], [0], [1], [0, 0, 1, 1], [], []>} : vector<16x192xf32>, vector<192x192xf32>, vector<16x192xf32> -> vector<16x192xf32>
    %124 = arith.addf %115, %123 : vector<16x192xf32>
    %c1_129 = arith.constant 1 : index
    %c2_130 = arith.constant 2 : index
    %c0_131 = arith.constant 0 : index
    %c0_132 = arith.constant 0 : index
    %125 = vector.load %arg8[%c1_129, %c2_130, %c0_131, %c0_132] : memref<2x5x192x192xf32, #tpu.memory_space<vmem>>, vector<1x1x192x192xf32>
    %126 = vector.shape_cast %125 : vector<1x1x192x192xf32> to vector<192x192xf32>
    %cst_133 = arith.constant dense<0.000000e+00> : vector<16x192xf32>
    %127 = tpu.matmul %120, %126, %cst_133 {dimension_numbers = #tpu.dot_dimension_numbers<[1], [0], [0], [1], [0, 0, 1, 1], [], []>} : vector<16x192xf32>, vector<192x192xf32>, vector<16x192xf32> -> vector<16x192xf32>
    %128 = arith.addf %119, %127 : vector<16x192xf32>
    %c9_134 = arith.constant 9 : index
    %c0_135 = arith.constant 0 : index
    %129 = vector.load %arg17[%c9_134, %c0_135] : memref<32x192xf32, #tpu.memory_space<vmem>>, vector<16x192xf32>
    %c1_136 = arith.constant 1 : index
    %c3_137 = arith.constant 3 : index
    %c0_138 = arith.constant 0 : index
    %c0_139 = arith.constant 0 : index
    %130 = vector.load %arg6[%c1_136, %c3_137, %c0_138, %c0_139] : memref<2x5x192x192xf32, #tpu.memory_space<vmem>>, vector<1x1x192x192xf32>
    %131 = vector.shape_cast %130 : vector<1x1x192x192xf32> to vector<192x192xf32>
    %cst_140 = arith.constant dense<0.000000e+00> : vector<16x192xf32>
    %132 = tpu.matmul %129, %131, %cst_140 {dimension_numbers = #tpu.dot_dimension_numbers<[1], [0], [0], [1], [0, 0, 1, 1], [], []>} : vector<16x192xf32>, vector<192x192xf32>, vector<16x192xf32> -> vector<16x192xf32>
    %133 = arith.addf %124, %132 : vector<16x192xf32>
    %c1_141 = arith.constant 1 : index
    %c3_142 = arith.constant 3 : index
    %c0_143 = arith.constant 0 : index
    %c0_144 = arith.constant 0 : index
    %134 = vector.load %arg8[%c1_141, %c3_142, %c0_143, %c0_144] : memref<2x5x192x192xf32, #tpu.memory_space<vmem>>, vector<1x1x192x192xf32>
    %135 = vector.shape_cast %134 : vector<1x1x192x192xf32> to vector<192x192xf32>
    %cst_145 = arith.constant dense<0.000000e+00> : vector<16x192xf32>
    %136 = tpu.matmul %129, %135, %cst_145 {dimension_numbers = #tpu.dot_dimension_numbers<[1], [0], [0], [1], [0, 0, 1, 1], [], []>} : vector<16x192xf32>, vector<192x192xf32>, vector<16x192xf32> -> vector<16x192xf32>
    %137 = arith.addf %128, %136 : vector<16x192xf32>
    %c10_146 = arith.constant 10 : index
    %c0_147 = arith.constant 0 : index
    %138 = vector.load %arg17[%c10_146, %c0_147] : memref<32x192xf32, #tpu.memory_space<vmem>>, vector<16x192xf32>
    %c1_148 = arith.constant 1 : index
    %c4_149 = arith.constant 4 : index
    %c0_150 = arith.constant 0 : index
    %c0_151 = arith.constant 0 : index
    %139 = vector.load %arg6[%c1_148, %c4_149, %c0_150, %c0_151] : memref<2x5x192x192xf32, #tpu.memory_space<vmem>>, vector<1x1x192x192xf32>
    %140 = vector.shape_cast %139 : vector<1x1x192x192xf32> to vector<192x192xf32>
    %cst_152 = arith.constant dense<0.000000e+00> : vector<16x192xf32>
    %141 = tpu.matmul %138, %140, %cst_152 {dimension_numbers = #tpu.dot_dimension_numbers<[1], [0], [0], [1], [0, 0, 1, 1], [], []>} : vector<16x192xf32>, vector<192x192xf32>, vector<16x192xf32> -> vector<16x192xf32>
    %142 = arith.addf %133, %141 : vector<16x192xf32>
    %c1_153 = arith.constant 1 : index
    %c4_154 = arith.constant 4 : index
    %c0_155 = arith.constant 0 : index
    %c0_156 = arith.constant 0 : index
    %143 = vector.load %arg8[%c1_153, %c4_154, %c0_155, %c0_156] : memref<2x5x192x192xf32, #tpu.memory_space<vmem>>, vector<1x1x192x192xf32>
    %144 = vector.shape_cast %143 : vector<1x1x192x192xf32> to vector<192x192xf32>
    %cst_157 = arith.constant dense<0.000000e+00> : vector<16x192xf32>
    %145 = tpu.matmul %138, %144, %cst_157 {dimension_numbers = #tpu.dot_dimension_numbers<[1], [0], [0], [1], [0, 0, 1, 1], [], []>} : vector<16x192xf32>, vector<192x192xf32>, vector<16x192xf32> -> vector<16x192xf32>
    %146 = arith.addf %137, %145 : vector<16x192xf32>
    %c1_158 = arith.constant 1 : index
    %c0_159 = arith.constant 0 : index
    %c0_160 = arith.constant 0 : index
    %147 = vector.load %arg7[%c1_158, %c0_159, %c0_160] : memref<2x1x192xf32, #tpu.memory_space<vmem>>, vector<1x1x192xf32>
    %148 = vector.shape_cast %147 : vector<1x1x192xf32> to vector<1x192xf32>
    %149 = vector.broadcast %148 : vector<1x192xf32> to vector<16x192xf32>
    %150 = arith.addf %142, %149 : vector<16x192xf32>
    %c1_161 = arith.constant 1 : index
    %c0_162 = arith.constant 0 : index
    %c0_163 = arith.constant 0 : index
    %151 = vector.load %arg9[%c1_161, %c0_162, %c0_163] : memref<2x1x192xf32, #tpu.memory_space<vmem>>, vector<1x1x192xf32>
    %152 = vector.shape_cast %151 : vector<1x1x192xf32> to vector<1x192xf32>
    %153 = vector.broadcast %152 : vector<1x192xf32> to vector<16x192xf32>
    %154 = arith.addf %146, %153 : vector<16x192xf32>
    %155 = math.tanh %150 : vector<16x192xf32>
    %cst_164 = arith.constant 0.000000e+00 : f32
    %156 = vector.broadcast %cst_164 : f32 to vector<16x192xf32>
    %157 = arith.subf %156, %154 : vector<16x192xf32>
    %158 = math.exp %157 : vector<16x192xf32>
    %cst_165 = arith.constant 1.000000e+00 : f32
    %159 = vector.broadcast %cst_165 : f32 to vector<16x192xf32>
    %160 = arith.addf %159, %158 : vector<16x192xf32>
    %cst_166 = arith.constant 1.000000e+00 : f32
    %161 = vector.broadcast %cst_166 : f32 to vector<16x192xf32>
    %162 = arith.divf %161, %160 : vector<16x192xf32>
    %163 = arith.mulf %155, %162 : vector<16x192xf32>
    %c1_167 = arith.constant 1 : index
    %c0_168 = arith.constant 0 : index
    %c0_169 = arith.constant 0 : index
    %164 = vector.load %arg12[%c1_167, %c0_168, %c0_169] : memref<2x192x192xf32, #tpu.memory_space<vmem>>, vector<1x192x192xf32>
    %165 = vector.shape_cast %164 : vector<1x192x192xf32> to vector<192x192xf32>
    %cst_170 = arith.constant dense<0.000000e+00> : vector<16x192xf32>
    %166 = tpu.matmul %163, %165, %cst_170 {dimension_numbers = #tpu.dot_dimension_numbers<[1], [0], [0], [1], [0, 0, 1, 1], [], []>} : vector<16x192xf32>, vector<192x192xf32>, vector<16x192xf32> -> vector<16x192xf32>
    %c1_171 = arith.constant 1 : index
    %c0_172 = arith.constant 0 : index
    %c0_173 = arith.constant 0 : index
    %167 = vector.load %arg13[%c1_171, %c0_172, %c0_173] : memref<2x1x192xf32, #tpu.memory_space<vmem>>, vector<1x1x192xf32>
    %168 = vector.shape_cast %167 : vector<1x1x192xf32> to vector<1x192xf32>
    %169 = vector.broadcast %168 : vector<1x192xf32> to vector<16x192xf32>
    %170 = arith.addf %166, %169 : vector<16x192xf32>
    %171 = arith.addf %88, %170 : vector<16x192xf32>
    %172 = vector.broadcast %1 : vector<16x1xf32> to vector<16x192xf32>
    %173 = arith.mulf %171, %172 : vector<16x192xf32>
    %c0_174 = arith.constant 0 : index
    %c0_175 = arith.constant 0 : index
    %174 = vector.load %arg14[%c0_174, %c0_175] : memref<192x96xf32, #tpu.memory_space<vmem>>, vector<192x96xf32>
    %cst_176 = arith.constant dense<0.000000e+00> : vector<16x96xf32>
    %175 = tpu.matmul %173, %174, %cst_176 {dimension_numbers = #tpu.dot_dimension_numbers<[1], [0], [0], [1], [0, 0, 1, 1], [], []>} : vector<16x192xf32>, vector<192x96xf32>, vector<16x96xf32> -> vector<16x96xf32>
    %c0_177 = arith.constant 0 : index
    %c0_178 = arith.constant 0 : index
    %176 = vector.load %arg15[%c0_177, %c0_178] : memref<1x96xf32, #tpu.memory_space<vmem>>, vector<1x96xf32>
    %177 = vector.broadcast %176 : vector<1x96xf32> to vector<16x96xf32>
    %178 = arith.addf %175, %177 : vector<16x96xf32>
    %179 = vector.broadcast %1 : vector<16x1xf32> to vector<16x96xf32>
    %180 = arith.mulf %178, %179 : vector<16x96xf32>
    %181 = arith.addf %180, %5 : vector<16x96xf32>
    %182 = vector.broadcast %1 : vector<16x1xf32> to vector<16x96xf32>
    %183 = arith.mulf %181, %182 : vector<16x96xf32>
    %c0_179 = arith.constant 0 : index
    %c0_180 = arith.constant 0 : index
    %c0_181 = arith.constant 0 : index
    %184 = vector.load %arg16[%c0_179, %c0_180, %c0_181] : memref<1x16x96xf32, #tpu.memory_space<vmem>>, vector<1x16x96xf32>
    %185 = vector.shape_cast %184 : vector<1x16x96xf32> to vector<16x96xf32>
    %186 = vector.shape_cast %183 : vector<16x96xf32> to vector<1x16x96xf32>
    tpu.vector_store %arg16[%c0_179, %c0_180, %c0_181], %186 {strides = array<i32>} : memref<1x16x96xf32, #tpu.memory_space<vmem>>, vector<1x16x96xf32>,
    return
  }
  func.func @transform_0(%arg0: i32) -> (i32, i32, i32) {
    %c0_i32 = arith.constant 0 : i32
    %c0_i32_0 = arith.constant 0 : i32
    %c0_i32_1 = arith.constant 0 : i32
    return %arg0, %c0_i32, %c0_i32_0 : i32, i32, i32
  }
  func.func @transform_1(%arg0: i32) -> (i32, i32, i32) {
    %c0_i32 = arith.constant 0 : i32
    %c0_i32_0 = arith.constant 0 : i32
    %c0_i32_1 = arith.constant 0 : i32
    return %arg0, %c0_i32, %c0_i32_0 : i32, i32, i32
  }
  func.func @transform_2(%arg0: i32) -> (i32, i32, i32) {
    %c0_i32 = arith.constant 0 : i32
    %c0_i32_0 = arith.constant 0 : i32
    %c0_i32_1 = arith.constant 0 : i32
    return %arg0, %c0_i32, %c0_i32_0 : i32, i32, i32
  }
  func.func @transform_3(%arg0: i32) -> (i32, i32) {
    %c0_i32 = arith.constant 0 : i32
    %c0_i32_0 = arith.constant 0 : i32
    %c0_i32_1 = arith.constant 0 : i32
    return %c0_i32, %c0_i32_0 : i32, i32
  }
  func.func @transform_4(%arg0: i32) -> (i32, i32) {
    %c0_i32 = arith.constant 0 : i32
    %c0_i32_0 = arith.constant 0 : i32
    %c0_i32_1 = arith.constant 0 : i32
    return %c0_i32, %c0_i32_0 : i32, i32
  }
  func.func @transform_5(%arg0: i32) -> (i32, i32, i32, i32) {
    %c0_i32 = arith.constant 0 : i32
    %c0_i32_0 = arith.constant 0 : i32
    %c0_i32_1 = arith.constant 0 : i32
    %c0_i32_2 = arith.constant 0 : i32
    %c0_i32_3 = arith.constant 0 : i32
    return %c0_i32, %c0_i32_0, %c0_i32_1, %c0_i32_2 : i32, i32, i32, i32
  }
  func.func @transform_6(%arg0: i32) -> (i32, i32, i32) {
    %c0_i32 = arith.constant 0 : i32
    %c0_i32_0 = arith.constant 0 : i32
    %c0_i32_1 = arith.constant 0 : i32
    %c0_i32_2 = arith.constant 0 : i32
    return %c0_i32, %c0_i32_0, %c0_i32_1 : i32, i32, i32
  }
  func.func @transform_7(%arg0: i32) -> (i32, i32, i32, i32) {
    %c0_i32 = arith.constant 0 : i32
    %c0_i32_0 = arith.constant 0 : i32
    %c0_i32_1 = arith.constant 0 : i32
    %c0_i32_2 = arith.constant 0 : i32
    %c0_i32_3 = arith.constant 0 : i32
    return %c0_i32, %c0_i32_0, %c0_i32_1, %c0_i32_2 : i32, i32, i32, i32
  }
  func.func @transform_8(%arg0: i32) -> (i32, i32, i32) {
    %c0_i32 = arith.constant 0 : i32
    %c0_i32_0 = arith.constant 0 : i32
    %c0_i32_1 = arith.constant 0 : i32
    %c0_i32_2 = arith.constant 0 : i32
    return %c0_i32, %c0_i32_0, %c0_i32_1 : i32, i32, i32
  }
  func.func @transform_9(%arg0: i32) -> (i32, i32, i32) {
    %c0_i32 = arith.constant 0 : i32
    %c0_i32_0 = arith.constant 0 : i32
    %c0_i32_1 = arith.constant 0 : i32
    %c0_i32_2 = arith.constant 0 : i32
    return %c0_i32, %c0_i32_0, %c0_i32_1 : i32, i32, i32
  }
  func.func @transform_10(%arg0: i32) -> (i32, i32, i32) {
    %c0_i32 = arith.constant 0 : i32
    %c0_i32_0 = arith.constant 0 : i32
    %c0_i32_1 = arith.constant 0 : i32
    %c0_i32_2 = arith.constant 0 : i32
    return %c0_i32, %c0_i32_0, %c0_i32_1 : i32, i32, i32
  }
  func.func @transform_11(%arg0: i32) -> (i32, i32, i32) {
    %c0_i32 = arith.constant 0 : i32
    %c0_i32_0 = arith.constant 0 : i32
    %c0_i32_1 = arith.constant 0 : i32
    %c0_i32_2 = arith.constant 0 : i32
    return %c0_i32, %c0_i32_0, %c0_i32_1 : i32, i32, i32
  }
  func.func @transform_12(%arg0: i32) -> (i32, i32, i32) {
    %c0_i32 = arith.constant 0 : i32
    %c0_i32_0 = arith.constant 0 : i32
    %c0_i32_1 = arith.constant 0 : i32
    %c0_i32_2 = arith.constant 0 : i32
    return %c0_i32, %c0_i32_0, %c0_i32_1 : i32, i32, i32
  }
  func.func @transform_13(%arg0: i32) -> (i32, i32) {
    %c0_i32 = arith.constant 0 : i32
    %c0_i32_0 = arith.constant 0 : i32
    %c0_i32_1 = arith.constant 0 : i32
    return %c0_i32, %c0_i32_0 : i32, i32
  }
  func.func @transform_14(%arg0: i32) -> (i32, i32) {
    %c0_i32 = arith.constant 0 : i32
    %c0_i32_0 = arith.constant 0 : i32
    %c0_i32_1 = arith.constant 0 : i32
    return %c0_i32, %c0_i32_0 : i32, i32
  }
  func.func @transform_15(%arg0: i32) -> (i32, i32, i32) {
    %c0_i32 = arith.constant 0 : i32
    %c0_i32_0 = arith.constant 0 : i32
    %c0_i32_1 = arith.constant 0 : i32
    return %arg0, %c0_i32, %c0_i32_0 : i32, i32, i32
  }
}

</mosaic_0001>

<bundles_post_ra>
// kernel: residual_coupling_forward.1
= control target key start
LH: loop header
LB: loop body
LE: loop exit
PB: predicated region body
PF: predicated region fallthrough
CT: control target
= control target key end

     0   :  { %s6788_s0 = inlined_call_operand.vmem [shape: f32[2,16,96], index: 0, kind: input, shape index: {}]   ;;  %s6789_s1 = inlined_call_operand.vmem [shape: f32[2,16,96], index: 1, kind: input, shape index: {}]   ;;  %s6790_s2 = inlined_call_operand.vmem [shape: f32[2,16,1], index: 2, kind: input, shape index: {}]   ;;  %s6791_s3 = inlined_call_operand.hbm [shape: f32[96,192], index: 3, kind: input, shape index: {}]   ;;  %s6792_s4 = inlined_call_operand.hbm [shape: f32[1,192], index: 4, kind: input, shape index: {}]   ;;  %s6793_s5 = inlined_call_operand.hbm [shape: f32[2,5,192,192], index: 5, kind: input, shape index: {}]   ;;  %s6794_s6 = inlined_call_operand.hbm [shape: f32[2,1,192], index: 6, kind: input, shape index: {}]   ;;  %s6795_s7 = inlined_call_operand.hbm [shape: f32[2,5,192,192], index: 7, kind: input, shape index: {}]   ;;  %s6796_s8 = inlined_call_operand.hbm [shape: f32[2,1,192], index: 8, kind: input, shape index: {}]   ;;  %s6797_s9 = inlined_call_operand.hbm [shape: f32[2,192,192], index: 9, kind: input, shape index: {}]   ;;  %s6798_s10 = inlined_call_operand.hbm [shape: f32[2,1,192], index: 10, kind: input, shape index: {}]   ;;  %s6799_s11 = inlined_call_operand.hbm [shape: f32[2,192,192], index: 11, kind: input, shape index: {}]   ;;  %s6800_s12 = inlined_call_operand.hbm [shape: f32[2,1,192], index: 12, kind: input, shape index: {}]   ;;  %s6801_s13 = inlined_call_operand.hbm [shape: f32[192,96], index: 13, kind: input, shape index: {}]   ;;  %s6802_s14 = inlined_call_operand.hbm [shape: f32[1,96], index: 14, kind: input, shape index: {}]   ;;  %s6803_s15 = inlined_call_operand.vmem [shape: f32[2,16,96], index: 15, kind: output, shape index: {}]  }
   0x1   :  { %6811 = sst [smem:[#allocation50_spill]] %s6792_s4 }
   0x2   :  { %6812 = sst [smem:[#allocation51_spill]] %s6794_s6 }
   0x3   :  { %6813 = sst [smem:[#allocation52_spill]] %s6796_s8 }
   0x4   :  { %20 = vsyncpa [#allocation4], 0 }
   0x5   :  { %21 = vsyncpa [#allocation6], 0 }
   0x6   :  { %22 = vsyncpa [#allocation9], 0 }
   0x7   :  { %23 = vsyncpa [#allocation12], 0 }
   0x8   :  { %24 = vsyncpa [#allocation15], 0 }
   0x9   :  { %25 = vsyncpa [#allocation18], 0 }
   0xa   :  { %26 = vsyncpa [#allocation21], 0  ;;  %s5735_s18 = smov 0  }
   0xb LB: > { %6814 = sst [smem:[#allocation29_spill]] %s5633_s18  ;;  %s5744_s22 = sadd.s32 4294967295, %s5633_s18   ;;  %s5633_s18 = sphi %s5735_s18, %s32_s18  }
   0xc   : > { %s6815_s4 = sld [smem:[#allocation50_spill]]  ;;  %p4910_p0 = scmp.ge.s32.totalorder %s5633_s18, 1 }
   0xd   : > { %p393_p1 = scmp.lt.s32.totalorder %s5633_s18, 3  ;;  %p5134_p2 = scmp.eq.s32.totalorder %s5744_s22, 0 }
   0xe   : > { %s5635_s24 = smov [#allocation5]   ;;  %s6817_s6 = sld [smem:[#allocation51_spill]] }
   0xf   : > { %p5749_p3 = pnand %p4910_p0, %p393_p1  ;;  %s421_s25 = sshll.u32 %s5635_s24, 4  ;;  %s422_s25 = int_to_ptr.vmem [resolvable:$true] %s421_s25 }
  0x10   : > { %s5636_s30 = smov [#allocation8]   ;;  %s6819_s8 = sld [smem:[#allocation52_spill]] }
  0x11   : > { %p5097_p4 = pneg %p5749_p3  ;;  %s446_s16 = sshll.u32 %s5636_s30, 4  ;;  %s447_s16 = int_to_ptr.vmem [resolvable:$true] %s446_s16 }
  0x12   : > { %s419_s21 = sshll.u32 %s6815_s4, 4  ;;  %s5637_s24 = smov 32   ;;  %s420_s21 = int_to_ptr.hbm [resolvable:$true] %s419_s21 }
  0x13   : > { %p5760_p5 = pnand %p5134_p2, %p5097_p4  ;;  %s5638_s26 = smov 2  }
  0x14   : > { %s444_s28 = sshll.u32 %s6817_s6, 4  ;;  %s5639_s27 = smov [#allocation11]   ;;  %s445_s28 = int_to_ptr.hbm [resolvable:$true] %s444_s28 }
  0x15   : > { %5103 = dma.hbm_to_vmem [thread:$0]  (!%p5760_p5), %s420_s21, 32, %s422_s25, [#allocation6]  }
  0x16   : > { %s472_s20 = sshll.u32 %s6819_s8, 4  ;;  %s474_s4 = sshll.u32 %s5639_s27, 4  ;;  %s473_s20 = int_to_ptr.hbm [resolvable:$true] %s472_s20  ;;  %s475_s4 = int_to_ptr.vmem [resolvable:$true] %s474_s4 }
  0x17   : > { %5109 = dma.hbm_to_vmem [thread:$0]  (!%p5760_p5), %s445_s28, 64, %s447_s16, [#allocation9], %s5637_s24, %s5637_s24, %s5638_s26  }
  0x18   : > { %s500_s30 = sshll.u32 %s6798_s10, 4  ;;  %s528_s21 = sshll.u32 %s6800_s12, 4  ;;  %s501_s30 = int_to_ptr.hbm [resolvable:$true] %s500_s30  ;;  %s529_s21 = int_to_ptr.hbm [resolvable:$true] %s528_s21 }
  0x19   : > { %5115 = dma.hbm_to_vmem [thread:$0]  (!%p5760_p5), %s473_s20, 64, %s475_s4, [#allocation12], %s5637_s24, %s5637_s24, %s5638_s26  }
  0x1a   : > { %s5640_s25 = smov [#allocation14]   ;;  %s5641_s28 = smov [#allocation17]  }
  0x1b   : > { %s502_s8 = sshll.u32 %s5640_s25, 4  ;;  %s530_s16 = sshll.u32 %s5641_s28, 4  ;;  %s503_s8 = int_to_ptr.vmem [resolvable:$true] %s502_s8  ;;  %s531_s16 = int_to_ptr.vmem [resolvable:$true] %s530_s16 }
  0x1c   : > { %5121 = dma.hbm_to_vmem [thread:$0]  (!%p5760_p5), %s501_s30, 64, %s503_s8, [#allocation15], %s5637_s24, %s5637_s24, %s5638_s26  }
  0x1d   : > { %s404_s27 = sshll.u32 %s6791_s3, 4  ;;  %s5642_s4 = smov [#allocation3]   ;;  %s405_s27 = int_to_ptr.hbm [resolvable:$true] %s404_s27 }
  0x1e   : > { %5127 = dma.hbm_to_vmem [thread:$0]  (!%p5760_p5), %s529_s21, 64, %s531_s16, [#allocation18], %s5637_s24, %s5637_s24, %s5638_s26  }
  0x1f   : > { %s406_s20 = sshll.u32 %s5642_s4, 4  ;;  %s430_s25 = sshll.u32 %s6793_s5, 4  ;;  %s407_s20 = int_to_ptr.vmem [resolvable:$true] %s406_s20  ;;  %s431_s25 = int_to_ptr.hbm [resolvable:$true] %s430_s25 }
  0x20   : > { %s5643_s8 = smov 256   ;;  %s5644_s30 = smov 16  }
  0x21   : > { %5100 = dma.hbm_to_vmem [thread:$0]  (!%p5760_p5), %s405_s27, 3072, %s407_s20, [#allocation4], %s5643_s8, %s5643_s8, %s5644_s30  }
  0x22   : > { %s5645_s28 = smov [#allocation7]   ;;  %s458_s26 = sshll.u32 %s6795_s7, 4  ;;  %s459_s26 = int_to_ptr.hbm [resolvable:$true] %s458_s26 }
  0x23   : > { %s432_s6 = sshll.u32 %s5645_s28, 4  ;;  %s486_s4 = sshll.u32 %s6797_s9, 4  ;;  %s433_s6 = int_to_ptr.vmem [resolvable:$true] %s432_s6  ;;  %s487_s4 = int_to_ptr.hbm [resolvable:$true] %s486_s4 }
  0x24   : > { %5106 = dma.hbm_to_vmem [thread:$0]  (!%p5760_p5), %s431_s25, 61440, %s433_s6, [#allocation6], %s5643_s8, %s5643_s8, %s5644_s30  }
  0x25   : > { %s5646_s27 = smov [#allocation10]   ;;  %s5647_s17 = smov [#allocation13]  }
  0x26   : > { %s460_s20 = sshll.u32 %s5646_s27, 4  ;;  %s488_s19 = sshll.u32 %s5647_s17, 4  ;;  %s461_s20 = int_to_ptr.vmem [resolvable:$true] %s460_s20  ;;  %s489_s19 = int_to_ptr.vmem [resolvable:$true] %s488_s19 }
  0x27   : > { %5112 = dma.hbm_to_vmem [thread:$0]  (!%p5760_p5), %s459_s26, 61440, %s461_s20, [#allocation9], %s5643_s8, %s5643_s8, %s5644_s30  }
  0x28   : > { %s514_s25 = sshll.u32 %s6799_s11, 4  ;;  %s542_s21 = sshll.u32 %s6801_s13, 4  ;;  %s515_s25 = int_to_ptr.hbm [resolvable:$true] %s514_s25  ;;  %s543_s21 = int_to_ptr.hbm [resolvable:$true] %s542_s21 }
  0x29   : > { %5118 = dma.hbm_to_vmem [thread:$0]  (!%p5760_p5), %s487_s4, 12288, %s489_s19, [#allocation12], %s5643_s8, %s5643_s8, %s5644_s30  }
  0x2a   : > { %s5648_s16 = smov [#allocation16]   ;;  %s5649_s27 = smov [#allocation19]  }
  0x2b   : > { %s516_s26 = sshll.u32 %s5648_s16, 4  ;;  %s544_s20 = sshll.u32 %s5649_s27, 4  ;;  %s517_s26 = int_to_ptr.vmem [resolvable:$true] %s516_s26  ;;  %s545_s20 = int_to_ptr.vmem [resolvable:$true] %s544_s20 }
  0x2c   : > { %5124 = dma.hbm_to_vmem [thread:$0]  (!%p5760_p5), %s515_s25, 12288, %s517_s26, [#allocation15], %s5643_s8, %s5643_s8, %s5644_s30  }
  0x2d   : > { %s5650_s17 = smov 128   ;;  %s5651_s28 = smov 8  }
  0x2e   : > { %5130 = dma.hbm_to_vmem [thread:$0]  (!%p5760_p5), %s543_s21, 3072, %s545_s20, [#allocation18], %s5650_s17, %s5650_s17, %s5651_s28  }
  0x2f   : > { %s557_s18 = sshll.u32 %s6802_s14, 4  ;;  %s5652_s6 = smov [#allocation20]   ;;  %s558_s18 = int_to_ptr.hbm [resolvable:$true] %s557_s18 }
  0x30   : > { %s559_s24 = sshll.u32 %s5652_s6, 4  ;;  %596 = sbr.rel (%p5749_p3) target bundleno = 1485 (0x5cd), region = 80  ;;  %s560_s24 = int_to_ptr.vmem [resolvable:$true] %s559_s24 }
  0x31   : > { %5133 = dma.hbm_to_vmem [thread:$0]  (!%p5760_p5), %s558_s18, 16, %s560_s24, [#allocation21]  }
  0x35   : > { %5604 = dma.done.wait (%p5134_p2), [#allocation4], 3072  }
  0x36   : > { %5606 = vsyncadd (%p5134_p2), [#allocation4], 4294964224 }
  0x37   : > { %5608 = dma.done.wait (%p5134_p2), [#allocation6], 61472  }
  0x38   : > { %5610 = vsyncadd (%p5134_p2), [#allocation6], 4294905824 }
  0x39   : > { %5612 = dma.done.wait (%p5134_p2), [#allocation9], 61504  }
  0x3a   : > { %5614 = vsyncadd (%p5134_p2), [#allocation9], 4294905792 }
  0x3b   : > { %5616 = dma.done.wait (%p5134_p2), [#allocation12], 12352  }
  0x3c   : > { %5618 = vsyncadd (%p5134_p2), [#allocation12], 4294954944 }
  0x3d   : > { %5620 = dma.done.wait (%p5134_p2), [#allocation15], 12352  }
  0x3e   : > { %5622 = vsyncadd (%p5134_p2), [#allocation15], 4294954944 }
  0x3f   : > { %5624 = dma.done.wait (%p5134_p2), [#allocation18], 3136  }
  0x40   : > { %5626 = vsyncadd (%p5134_p2), [#allocation18], 4294964160 }
  0x41   : > { %5628 = dma.done.wait (%p5134_p2), [#allocation21], 16  }
  0x42   : > { %5630 = vsyncadd (%p5134_p2), [#allocation21], 4294967280  ;;  %v5653_v0 = vmov 0   ;;  %p710_p6 = scmp.lt.s32.totalorder %s5744_s22, 1  ;;  %v758_v1 = vld [vmem:[#allocation3 + $0xb0] sm:$0xff]  ;;  %v759_v2 = vld [vmem:[#allocation3 + $0xb8] sm:$0xff] }
  0x43   : > { %5186 = vset.pattern.permute.xlu0 %v5653_v0  ;;  %v756_v3 = vld [vmem:[#allocation3 + $0xa0] sm:$0xff]  ;;  %777 = vmatpush.msra.mxu0 %v758_v1  ;;  %v757_v4 = vld [vmem:[#allocation3 + $0xa8] sm:$0xff]  ;;  %v754_v5 = vld [vmem:[#allocation3 + $0x90] sm:$0xff]  ;;  %vm766_vm0 = vcmask 785408   ;;  %vm834_vm1 = vcmask 523264   ;;  %vm1007_vm2 = vcmask 1040384  }
  0x44   : > { %s6862_s22 = smov (!%p710_p6, %s5744_s22), 1  ;;  %800 = vmatpush.msra.mxu1 %v759_v2  ;;  %v755_v6 = vld [vmem:[#allocation3 + $0x98] sm:$0xff]  ;;  %v752_v7 = vld [vmem:[#allocation3 + $0x80] sm:$0xff]  ;;  %v753_v8 = vld [vmem:[#allocation3 + $0x88] sm:$0xff]  ;;  %vm1120_vm3 = vcmask 1041408   ;;  %vm1820_vm4 = vcmask 1046528  }
  0x45   : > { %778 = vmatpush.msra.mxu0 %v756_v3  ;;  %s5865_s23 = sshll.u32 %s6862_s22, 4  ;;  %v750_v9 = vld [vmem:[#allocation3 + $0x70] sm:$0xff]  ;;  %v751_v10 = vld [vmem:[#allocation3 + $0x78] sm:$0xff]  ;;  %v748_v11 = vld [vmem:[#allocation3 + $0x60] sm:$0xff]  ;;  %vm2135_vm5 = vcmask 1045504  }
  0x46   : > { %801 = vmatpush.msra.mxu1 %v757_v4  ;;  %s5871_s30 = scalar_lea.vmem %s6790_s2, %s5865_s23  ;;  %v749_v12 = vld [vmem:[#allocation3 + $0x68] sm:$0xff]  ;;  %v746_v14 = vld [vmem:[#allocation3 + $0x50] sm:$0xff]  ;;  %v747_v16 = vld [vmem:[#allocation3 + $0x58] sm:$0xff]  ;;  %s5879_s21 = scalar_lea.vmem %s6788_s0, %s5865_s23 }
  0x47   : > { %779 = vmatpush.msra.mxu0 %v754_v5  ;;  %v730_v13 = vld [vmem:[%s5871_s30] sm:$0xff]  ;;  %v999_v15 = vld [vmem:[#allocation7 + $0x2f0] sm:$0xff]  ;;  %v745_v21 = vld [vmem:[#allocation3 + $0x48] sm:$0xff]  ;;  %s719_s27 = scalar_lea.vmem %s6789_s1, %s5865_s23  ;;  %s729_s28 = scalar_lea.vmem %s6803_s15, %s5865_s23 }
  0x48   : > { %802 = vmatpush.msra.mxu1 %v755_v6  ;;  %821 = vperm.xlu0 %5186, %v730_v13   ;;  %v983_v17 = vld [vmem:[#allocation7 + $0x270] sm:$0xff]  ;;  %v997_v18 = vld [vmem:[#allocation7 + $0x2e0] sm:$0xff]  ;;  %v1000_v41 = vld [vmem:[#allocation7 + $0x2f8] sm:$0xff] }
  0x49   : > { %780 = vmatpush.msra.mxu0 %v752_v7  ;;  %1055 = vmatpush.msra.mxu3 %v999_v15  ;;  %v981_v19 = vld [vmem:[#allocation7 + $0x260] sm:$0xff]  ;;  %v995_v22 = vld [vmem:[#allocation7 + $0x2d0] sm:$0xff]  ;;  %v998_v45 = vld [vmem:[#allocation7 + $0x2e8] sm:$0xff] }
  0x4a   : > { %803 = vmatpush.msra.mxu1 %v753_v8  ;;  %v744_v20 = vld [vmem:[#allocation3 + $0x40] sm:$0xff]  ;;  %1024 = vmatpush.msra.mxu2 %v983_v17  ;;  %v979_v23 = vld [vmem:[#allocation7 + $0x250] sm:$0xff]  ;;  %v731_v27 = vld [vmem:[%s5871_s30 + $0x8] sm:$0xff] }
  0x4b   : > { %781 = vmatpush.msra.mxu0 %v750_v9  ;;  %1056 = vmatpush.msra.mxu3 %v997_v18  ;;  %v993_v24 = vld [vmem:[#allocation7 + $0x2c0] sm:$0xff]  ;;  %v742_v25 = vld [vmem:[#allocation3 + $0x30] sm:$0xff]  ;;  %v743_v26 = vld [vmem:[#allocation3 + $0x38] sm:$0xff] }
  0x4c   : > { %804 = vmatpush.msra.mxu1 %v751_v10  ;;  %1025 = vmatpush.msra.mxu2 %v981_v19  ;;  %v977_v28 = vld [vmem:[#allocation7 + $0x240] sm:$0xff]  ;;  %v991_v31 = vld [vmem:[#allocation7 + $0x2b0] sm:$0xff]  ;;  %v996_v49 = vld [vmem:[#allocation7 + $0x2d8] sm:$0xff] }
  0x4d   : > { %782 = vmatpush.msra.mxu0 %v748_v11  ;;  %1057 = vmatpush.msra.mxu3 %v995_v22  ;;  %v740_v29 = vld [vmem:[#allocation3 + $0x20] sm:$0xff]  ;;  %v741_v30 = vld [vmem:[#allocation3 + $0x28] sm:$0xff]  ;;  %v975_v32 = vld [vmem:[#allocation7 + $0x230] sm:$0xff] }
  0x4e   : > { %805 = vmatpush.msra.mxu1 %v749_v12  ;;  %1026 = vmatpush.msra.mxu2 %v979_v23  ;;  %v738_v33 = vld [vmem:[#allocation3 + $0x10] sm:$0xff]  ;;  %v739_v34 = vld [vmem:[#allocation3 + $0x18] sm:$0xff]  ;;  %v989_v35 = vld [vmem:[#allocation7 + $0x2a0] sm:$0xff] }
  0x4f   : > { %783 = vmatpush.msra.mxu0 %v746_v14  ;;  %1058 = vmatpush.msra.mxu3 %v993_v24  ;;  %v973_v36 = vld [vmem:[#allocation7 + $0x220] sm:$0xff]  ;;  %v882_v40 = vld [vmem:[#allocation7 + $0xf0] sm:$0xff]  ;;  %v984_v50 = vld [vmem:[#allocation7 + $0x278] sm:$0xff] }
  0x50   : > { %806 = vmatpush.msra.mxu1 %v747_v16  ;;  %826 = vperm.xlu0 %5186, %v731_v27   ;;  %v736_v37 = vld [vmem:[#allocation3] sm:$0xff]  ;;  %v737_v38 = vld [vmem:[#allocation3 + $0x8] sm:$0xff]  ;;  %v987_v42 = vld [vmem:[#allocation7 + $0x290] sm:$0xff] }
  0x51   : > { %784 = vmatpush.msra.mxu0 %v744_v20  ;;  %1027 = vmatpush.msra.mxu2 %v977_v28  ;;  %v732_v39 = vld [vmem:[%s5879_s21] sm:$0xff]  ;;  %v971_v43 = vld [vmem:[#allocation7 + $0x210] sm:$0xff]  ;;  %v994_v53 = vld [vmem:[#allocation7 + $0x2c8] sm:$0xff] }
  0x52   : > { %807 = vmatpush.msra.mxu1 %v745_v21  ;;  %1059 = vmatpush.msra.mxu3 %v991_v31  ;;  %v880_v44 = vld [vmem:[#allocation7 + $0xe0] sm:$0xff]  ;;  %v878_v48 = vld [vmem:[#allocation7 + $0xd0] sm:$0xff]  ;;  %v992_v56 = vld [vmem:[#allocation7 + $0x2b8] sm:$0xff] }
  0x53   : > { %785 = vmatpush.msra.mxu0 %v742_v25  ;;  %1028 = vmatpush.msra.mxu2 %v975_v32  ;;  %v985_v46 = vld [vmem:[#allocation7 + $0x280] sm:$0xff]  ;;  %v967_v51 = vld [vmem:[#allocation7 + $0x1f0] sm:$0xff]  ;;  %v982_v57 = vld [vmem:[#allocation7 + $0x268] sm:$0xff] }
  0x54   : > { %808 = vmatpush.msra.mxu1 %v743_v26  ;;  %1060 = vmatpush.msra.mxu3 %v989_v35  ;;  %v969_v47 = vld [vmem:[#allocation7 + $0x200] sm:$0xff]  ;;  %v874_v55 = vld [vmem:[#allocation7 + $0xb0] sm:$0xff]  ;;  %v990_v60 = vld [vmem:[#allocation7 + $0x2a8] sm:$0xff] }
  0x55   : > { %786 = vmatpush.msra.mxu0 %v740_v29  ;;  %1029 = vmatpush.msra.mxu2 %v973_v36  ;;  %v876_v52 = vld [vmem:[#allocation7 + $0xc0] sm:$0xff]  ;;  %v980_v61 = vld [vmem:[#allocation7 + $0x258] sm:$0xff]  ;;  %v963_v62 = vld [vmem:[#allocation7 + $0x1d0] sm:$0xff]  ;;  %v5654_v29 = vmov 0.0  }
  0x56   : > { %809 = vmatpush.msra.mxu1 %v741_v30  ;;  %1061 = vmatpush.msra.mxu3 %v987_v42  ;;  %v733_v54 = vld [vmem:[%s5879_s21 + $0x8] sm:$0xff]  ;;  %v870_v63 = vld [vmem:[#allocation7 + $0x90] sm:$0xff]  ;;  %v988_v0 = vld [vmem:[#allocation7 + $0x298] sm:$0xff]  ;;  %833 = vst [vmem:[#allocation2] sm:$0xff] %v5654_v29 }
  0x57   : > { %787 = vmatpush.msra.mxu0 %v738_v33  ;;  %1030 = vmatpush.msra.mxu2 %v971_v43  ;;  %v965_v58 = vld [vmem:[#allocation7 + $0x1e0] sm:$0xff]  ;;  %v978_v1 = vld [vmem:[#allocation7 + $0x248] sm:$0xff]  ;;  %v883_v5 = vld [vmem:[#allocation7 + $0xf8] sm:$0xff]  ;;  %840 = vst [vmem:[#allocation2 + $0x30] sm:$0xff] %v5654_v29 }
  0x58   : > { %810 = vmatpush.msra.mxu1 %v739_v34  ;;  %1062 = vmatpush.msra.mxu3 %v985_v46  ;;  %v872_v59 = vld [vmem:[#allocation7 + $0xa0] sm:$0xff]  ;;  %v986_v4 = vld [vmem:[#allocation7 + $0x288] sm:$0xff]  ;;  %v976_v6 = vld [vmem:[#allocation7 + $0x238] sm:$0xff]  ;;  %837 = vst.msk [vmem:[#allocation2 + $0x18] sm:$0xff] %vm834_vm1, %v5654_v29 }
  0x59   : > { %788 = vmatpush.msra.mxu0 %v736_v37  ;;  %1031 = vmatpush.msra.mxu2 %v969_v47  ;;  %v961_v2 = vld [vmem:[#allocation7 + $0x1c0] sm:$0xff]  ;;  %v866_v7 = vld [vmem:[#allocation7 + $0x70] sm:$0xff]  ;;  %v881_v8 = vld [vmem:[#allocation7 + $0xe8] sm:$0xff]  ;;  %835 = vst.msk [vmem:[#allocation2 + $0x8] sm:$0xff] %vm834_vm1, %v5654_v29 }
  0x5a   : > { %811 = vmatpush.msra.mxu1 %v737_v38  ;;  %4945 = vmatmul.msk.f32.vlgmr.msra.gmra.mxu0 %vm766_vm0, %v732_v39  ;;  %v868_v3 = vld [vmem:[#allocation7 + $0x80] sm:$0xff]  ;;  %v879_v10 = vld [vmem:[#allocation7 + $0xd8] sm:$0xff]  ;;  %v862_v11 = vld [vmem:[#allocation7 + $0x50] sm:$0xff]  ;;  %839 = vst.msk [vmem:[#allocation2 + $0x28] sm:$0xff] %vm834_vm1, %v5654_v29 }
  0x5b   : > { %4947 = vmatmul.msk.f32.vlgmr.msra.gmra.mxu1 %vm766_vm0, %v732_v39  ;;  %1101 = vmatpush.msrb.mxu0 %v1000_v41  ;;  %v864_v9 = vld [vmem:[#allocation7 + $0x60] sm:$0xff]  ;;  %v877_v12 = vld [vmem:[#allocation7 + $0xc8] sm:$0xff]  ;;  %v875_v14 = vld [vmem:[#allocation7 + $0xb8] sm:$0xff]  ;;  %841 = vst.msk [vmem:[#allocation2 + $0x38] sm:$0xff] %vm834_vm1, %v5654_v29 }
  0x5c   : > { %1137 = vmatpush.msrb.mxu1 %v882_v40  ;;  %1070 = vmatpush.msrb.mxu3 %v984_v50  ;;  %v860_v13 = vld [vmem:[#allocation7 + $0x40] sm:$0xff]  ;;  %v858_v15 = vld [vmem:[#allocation7 + $0x30] sm:$0xff]  ;;  %v974_v17 = vld [vmem:[#allocation7 + $0x228] sm:$0xff] }
  0x5d   : > { %1102 = vmatpush.msrb.mxu0 %v998_v45  ;;  %1032 = vmatpush.msra.mxu2 %v967_v51  ;;  %v959_v16 = vld [vmem:[#allocation7 + $0x1b0] sm:$0xff]  ;;  %v856_v18 = vld [vmem:[#allocation7 + $0x20] sm:$0xff]  ;;  %v873_v19 = vld [vmem:[#allocation7 + $0xa8] sm:$0xff] }
  0x5e   : > { %1138 = vmatpush.msrb.mxu1 %v880_v44  ;;  %1071 = vmatpush.msrb.mxu3 %v982_v57  ;;  %v957_v20 = vld [vmem:[#allocation7 + $0x1a0] sm:$0xff]  ;;  %v972_v21 = vld [vmem:[#allocation7 + $0x218] sm:$0xff]  ;;  %v854_v22 = vld [vmem:[#allocation7 + $0x10] sm:$0xff] }
  0x5f   : > { %1103 = vmatpush.msrb.mxu0 %v996_v49  ;;  %1033 = vmatpush.msra.mxu2 %v965_v58  ;;  %v871_v23 = vld [vmem:[#allocation7 + $0x98] sm:$0xff]  ;;  %v955_v24 = vld [vmem:[#allocation7 + $0x190] sm:$0xff]  ;;  %v970_v25 = vld [vmem:[#allocation7 + $0x208] sm:$0xff] }
  0x60   : > { %1139 = vmatpush.msrb.mxu1 %v878_v48  ;;  %1072 = vmatpush.msrb.mxu3 %v980_v61  ;;  %v852_v26 = vld [vmem:[#allocation7] sm:$0xff]  ;;  %v1276_v27 = vld [vmem:[#allocation10 + $0x2f0] sm:$0xff]  ;;  %v869_v32 = vld [vmem:[#allocation7 + $0x88] sm:$0xff] }
  0x61   : > { %1104 = vmatpush.msrb.mxu0 %v994_v53  ;;  %1034 = vmatpush.msra.mxu2 %v963_v62  ;;  %v1274_v28 = vld [vmem:[#allocation10 + $0x2e0] sm:$0xff]  ;;  %v1272_v30 = vld [vmem:[#allocation10 + $0x2d0] sm:$0xff]  ;;  %v760_v62 = vld [vmem:[#allocation5] sm:$0x3] }
  0x62   : > { %1140 = vmatpush.msrb.mxu1 %v876_v52  ;;  %4946 = vmatmul.msk.f32.gmra.mxu0 %vm766_vm0, %v733_v54  ;;  %v1270_v31 = vld [vmem:[#allocation10 + $0x2c0] sm:$0xff]  ;;  %v968_v34 = vld [vmem:[#allocation7 + $0x1f8] sm:$0xff]  ;;  %v898_v36 = vld [vmem:[#allocation7 + $0x170] sm:$0xff] }
  0x63   : > { %4948 = vmatmul.msk.f32.gmra.mxu1 %vm766_vm0, %v733_v54  ;;  %1105 = vmatpush.msrb.mxu0 %v992_v56  ;;  %v953_v33 = vld [vmem:[#allocation7 + $0x180] sm:$0xff]  ;;  %v1268_v35 = vld [vmem:[#allocation10 + $0x2b0] sm:$0xff]  ;;  %v966_v38 = vld [vmem:[#allocation7 + $0x1e8] sm:$0xff] }
  0x64   : > { %1141 = vmatpush.msrb.mxu1 %v874_v55  ;;  %1073 = vmatpush.msrb.mxu3 %v978_v1  ;;  %v867_v37 = vld [vmem:[#allocation7 + $0x78] sm:$0xff]  ;;  %v1266_v39 = vld [vmem:[#allocation10 + $0x2a0] sm:$0xff]  ;;  %v894_v44 = vld [vmem:[#allocation7 + $0x150] sm:$0xff] }
  0x65   : > { %1106 = vmatpush.msrb.mxu0 %v990_v60  ;;  %1035 = vmatpush.msra.mxu2 %v961_v2  ;;  %v896_v40 = vld [vmem:[#allocation7 + $0x160] sm:$0xff]  ;;  %v865_v41 = vld [vmem:[#allocation7 + $0x68] sm:$0xff]  ;;  %v964_v42 = vld [vmem:[#allocation7 + $0x1d8] sm:$0xff] }
  0x66   : > { %1142 = vmatpush.msrb.mxu1 %v872_v59  ;;  %1074 = vmatpush.msrb.mxu3 %v976_v6  ;;  %v1264_v43 = vld [vmem:[#allocation10 + $0x290] sm:$0xff]  ;;  %v962_v46 = vld [vmem:[#allocation7 + $0x1c8] sm:$0xff]  ;;  %v892_v48 = vld [vmem:[#allocation7 + $0x140] sm:$0xff] }
  0x67   : > { %1107 = vmatpush.msrb.mxu0 %v988_v0  ;;  %1036 = vmatpush.msra.mxu2 %v959_v16  ;;  %v863_v45 = vld [vmem:[#allocation7 + $0x58] sm:$0xff]  ;;  %v1262_v47 = vld [vmem:[#allocation10 + $0x280] sm:$0xff]  ;;  %v890_v51 = vld [vmem:[#allocation7 + $0x130] sm:$0xff]  ;;  %v763_v0 = vperm.slane %v760_v62, 1 }
  0x68   : > { %1143 = vmatpush.msrb.mxu1 %v870_v63  ;;  %1075 = vmatpush.msrb.mxu3 %v974_v17  ;;  %v861_v49 = vld [vmem:[#allocation7 + $0x48] sm:$0xff]  ;;  %v960_v50 = vld [vmem:[#allocation7 + $0x1b8] sm:$0xff]  ;;  %v888_v54 = vld [vmem:[#allocation7 + $0x120] sm:$0xff]  ;;  %v762_v63 = vperm.slane %v760_v62, 0 }
  0x69   : > { %1108 = vmatpush.msrb.mxu0 %v986_v4  ;;  %1037 = vmatpush.msra.mxu2 %v957_v20  ;;  %v859_v52 = vld [vmem:[#allocation7 + $0x38] sm:$0xff]  ;;  %v958_v53 = vld [vmem:[#allocation7 + $0x1a8] sm:$0xff]  ;;  %v886_v57 = vld [vmem:[#allocation7 + $0x110] sm:$0xff] }
  0x6a   : > { %1144 = vmatpush.msrb.mxu1 %v868_v3  ;;  %1076 = vmatpush.msrb.mxu3 %v972_v21  ;;  %v857_v55 = vld [vmem:[#allocation7 + $0x28] sm:$0xff]  ;;  %v956_v56 = vld [vmem:[#allocation7 + $0x198] sm:$0xff]  ;;  %v884_v60 = vld [vmem:[#allocation7 + $0x100] sm:$0xff] }
  0x6b   : > { %1183 = vmatpush.msra.mxu0 %v883_v5  ;;  %1038 = vmatpush.msra.mxu2 %v955_v24  ;;  %v855_v58 = vld [vmem:[#allocation7 + $0x18] sm:$0xff]  ;;  %v954_v59 = vld [vmem:[#allocation7 + $0x188] sm:$0xff]  ;;  %v948_v4 = vld [vmem:[#allocation2] sm:$0x80] }
  0x6c   : > { %1145 = vmatpush.msrb.mxu1 %v866_v7  ;;  %1077 = vmatpush.msrb.mxu3 %v970_v25  ;;  %v853_v61 = vld [vmem:[#allocation7 + $0x8] sm:$0xff]  ;;  %v846_v5 = vld [vmem:[#allocation2] sm:$0xc0] }
  0x6d   : > { %1184 = vmatpush.msra.mxu0 %v881_v8  ;;  %1039 = vmatpush.msra.mxu2 %v953_v33  ;;  %v928_v20 = vld [vmem:[#allocation10 + $0xe0] sm:$0xff]  ;;  %v949_v24 = vld [vmem:[#allocation2 + $0x8] sm:$0x80] }
  0x6e   : > { %1146 = vmatpush.msrb.mxu1 %v864_v9  ;;  %1078 = vmatpush.msrb.mxu3 %v968_v34  ;;  %v897_v21 = vld [vmem:[#allocation7 + $0x168] sm:$0xff] }
  0x6f   : > { %1185 = vmatpush.msra.mxu0 %v879_v10  ;;  %1168 = vmatpush.msrb.mxu2 %v898_v36  ;;  %v1008_v10 = vrot.slane %v948_v4, 7  ;;  %v1277_v36 = vld [vmem:[#allocation10 + $0x2f8] sm:$0xff]  ;;  %v885_v62 = vld [vmem:[#allocation7 + $0x108] sm:$0xff]  ;;  %v1248_v4 = vld [vmem:[#allocation10 + $0x210] sm:$0xff] }
  0x70   : > { %1147 = vmatpush.msrb.mxu1 %v862_v11  ;;  %1079 = vmatpush.msrb.mxu3 %v966_v38  ;;  %v1121_v11 = vrot.slane %v846_v5, 6  ;;  %v922_v38 = vld [vmem:[#allocation10 + $0xb0] sm:$0xff]  ;;  %v1265_v5 = vld [vmem:[#allocation10 + $0x298] sm:$0xff] }
  0x71   : > { %1186 = vmatpush.msra.mxu0 %v877_v12  ;;  %1169 = vmatpush.msrb.mxu2 %v896_v40  ;;  %v1258_v40 = vld [vmem:[#allocation10 + $0x260] sm:$0xff] }
  0x72   : > { %1148 = vmatpush.msrb.mxu1 %v860_v13  ;;  %1080 = vmatpush.msrb.mxu3 %v964_v42  ;;  %v920_v42 = vld [vmem:[#allocation10 + $0xa0] sm:$0xff] }
  0x73   : > { %1187 = vmatpush.msra.mxu0 %v875_v14  ;;  %1170 = vmatpush.msrb.mxu2 %v894_v44  ;;  %v930_v14 = vld [vmem:[#allocation10 + $0xf0] sm:$0xff] }
  0x74   : > { %1149 = vmatpush.msrb.mxu1 %v858_v15  ;;  %1081 = vmatpush.msrb.mxu3 %v962_v46  ;;  %v899_v15 = vld [vmem:[#allocation7 + $0x178] sm:$0xff] }
  0x75   : > { %1188 = vmatpush.msra.mxu0 %v873_v19  ;;  %1171 = vmatpush.msrb.mxu2 %v892_v48  ;;  %v1256_v44 = vld [vmem:[#allocation10 + $0x250] sm:$0xff] }
  0x76   : > { %1150 = vmatpush.msrb.mxu1 %v856_v18  ;;  %1082 = vmatpush.msrb.mxu3 %v960_v50  ;;  %v918_v46 = vld [vmem:[#allocation10 + $0x90] sm:$0xff]  ;;  %v1254_v50 = vld [vmem:[#allocation10 + $0x240] sm:$0xff] }
  0x77   : > { %1189 = vmatpush.msra.mxu0 %v871_v23  ;;  %1172 = vmatpush.msrb.mxu2 %v890_v51  ;;  %v1271_v51 = vld [vmem:[#allocation10 + $0x2c8] sm:$0xff] }
  0x78   : > { %1151 = vmatpush.msrb.mxu1 %v854_v22  ;;  %1083 = vmatpush.msrb.mxu3 %v958_v53 }
  0x79   : > { %1190 = vmatpush.msra.mxu0 %v869_v32  ;;  %1173 = vmatpush.msrb.mxu2 %v888_v54  ;;  %v893_v32 = vld [vmem:[#allocation7 + $0x148] sm:$0xff] }
  0x7a   : > { %1152 = vmatpush.msrb.mxu1 %v852_v26  ;;  %1084 = vmatpush.msrb.mxu3 %v956_v56  ;;  %v926_v26 = vld [vmem:[#allocation10 + $0xd0] sm:$0xff] }
  0x7b   : > { %1191 = vmatpush.msra.mxu0 %v867_v37  ;;  %1174 = vmatpush.msrb.mxu2 %v886_v57 }
  0x7c   : > { %1309 = vmatpush.msra.mxu1 %v1276_v27  ;;  %1085 = vmatpush.msrb.mxu3 %v954_v59  ;;  %v895_v27 = vld [vmem:[#allocation7 + $0x158] sm:$0xff] }
  0x7d   : > { %1192 = vmatpush.msra.mxu0 %v865_v41  ;;  %1175 = vmatpush.msrb.mxu2 %v884_v60  ;;  %v1275_v41 = vld [vmem:[#allocation10 + $0x2e8] sm:$0xff]  ;;  %v1252_v59 = vld [vmem:[#allocation10 + $0x230] sm:$0xff]  ;;  %v1269_v60 = vld [vmem:[#allocation10 + $0x2b8] sm:$0xff] }
  0x7e   : > { %1310 = vmatpush.msra.mxu1 %v1274_v28 }
  0x7f   : > { %1193 = vmatpush.msra.mxu0 %v863_v45  ;;  %v1273_v45 = vld [vmem:[#allocation10 + $0x2d8] sm:$0xff] }
  0x80   : > { %1311 = vmatpush.msra.mxu1 %v1272_v30  ;;  %v1011_v30 = vrot.slane %v949_v24, 7  ;;  %v1240_v24 = vld [vmem:[#allocation10 + $0x1d0] sm:$0xff] }
  0x81   : > { %1194 = vmatpush.msra.mxu0 %v861_v49  ;;  %v887_v49 = vld [vmem:[#allocation7 + $0x118] sm:$0xff] }
  0x82   : > { %1312 = vmatpush.msra.mxu1 %v1270_v31  ;;  %v924_v31 = vld [vmem:[#allocation10 + $0xc0] sm:$0xff] }
  0x83   : > { %1195 = vmatpush.msra.mxu0 %v859_v52 }
  0x84   : > { %1313 = vmatpush.msra.mxu1 %v1268_v35  ;;  %v1260_v35 = vld [vmem:[#allocation10 + $0x270] sm:$0xff] }
  0x85   : > { %1196 = vmatpush.msra.mxu0 %v857_v55 }
  0x86   : > { %1314 = vmatpush.msra.mxu1 %v1266_v39  ;;  %v891_v39 = vld [vmem:[#allocation7 + $0x138] sm:$0xff] }
  0x87   : > { %1197 = vmatpush.msra.mxu0 %v855_v58 }
  0x88   : > { %1315 = vmatpush.msra.mxu1 %v1264_v43  ;;  %v889_v43 = vld [vmem:[#allocation7 + $0x128] sm:$0xff] }
  0x89   : > { %1198 = vmatpush.msra.mxu0 %v853_v61  ;;  %v916_v61 = vld [vmem:[#allocation10 + $0x80] sm:$0xff] }
  0x8a   : > { %1316 = vmatpush.msra.mxu1 %v1262_v47 }
  0xba   : > { %v5891_v1 = vpop.permute.xlu0 %821 }
  0xbb   : > { %6820 = vst [vmem:[#allocation30_spill] sm:$0xff] %v5891_v1 }
  0xc2   : > { %v5916_v25 = vpop.permute.xlu0 %826 }
  0xc3   : > { %6822 = vst [vmem:[#allocation32_spill] sm:$0xff] %v5916_v25 }
  0xd7   : > { %v790_v2 = vpop.f32.mrf.mxu0 }
  0xd8   : > { %v813_v3 = vpop.f32.mrf.mxu1  ;;  %v791_v6 = vadd.f32 %v790_v2, %v762_v63  ;;  %v847_v2 = vld [vmem:[#allocation2 + $0x8] sm:$0xc0] }
  0xd9   : > { %v814_v7 = vadd.f32 %v813_v3, %v763_v0  ;;  %v914_v3 = vld [vmem:[#allocation10 + $0x70] sm:$0xff] }
  0xda   : > { %v5894_v8 = vmul.f32 %v5891_v1, %v791_v6  ;;  %v1124_v6 = vrot.slane %v847_v2, 6  ;;  %v942_v2 = vld [vmem:[#allocation10 + $0x150] sm:$0xff] }
  0xdb   : > { %v5897_v9 = vmul.f32 %v5891_v1, %v814_v7 }
  0xdc   : > { %842 = vst [vmem:[#allocation2 + $0x10] sm:$0xff] %v5894_v8  ;;  %v1009_v12 = vrot.slane %v5894_v8, 7  ;;  %v1122_v13 = vrot.slane %v5894_v8, 6 }
  0xdd   : > { %6821 = vst [vmem:[#allocation31_spill] sm:$0xff] %v5897_v9 }
  0xde   : > { %843 = vst.msk [vmem:[#allocation2 + $0x18] sm:$0xff] %vm834_vm1, %v5897_v9  ;;  %v5907_v16 = vsel %vm1007_vm2, %v1008_v10, %v1009_v12  ;;  %v5912_v17 = vsel %vm1120_vm3, %v1121_v11, %v1122_v13  ;;  %v912_v10 = vld [vmem:[#allocation10 + $0x60] sm:$0xff] }
  0xdf   : > { %v793_v18 = vpop.f32.mrf.mxu0  ;;  %1040 = vmatmul.f32.vlgmr.msra.gmra.mxu2 %v5907_v16  ;;  %1153 = vmatmul.f32.vlgmr.msrb.gmra.mxu1 %v5912_v17  ;;  %v1246_v11 = vld [vmem:[#allocation10 + $0x200] sm:$0xff] }
  0xe0   : > { %v816_v19 = vpop.f32.mrf.mxu1  ;;  %v794_v22 = vadd.f32 %v793_v18, %v762_v63  ;;  %1370 = vmatpush.msrb.mxu1 %v930_v14  ;;  %1214 = vmatpush.msra.mxu2 %v899_v15  ;;  %v1250_v63 = vld [vmem:[#allocation10 + $0x220] sm:$0xff]  ;;  %v1261_v15 = vld [vmem:[#allocation10 + $0x278] sm:$0xff] }
  0xe1   : > { %v817_v23 = vadd.f32 %v816_v19, %v763_v0  ;;  %v1267_v0 = vld [vmem:[#allocation10 + $0x2a8] sm:$0xff]  ;;  %v931_v18 = vld [vmem:[#allocation10 + $0xf8] sm:$0xff]  ;;  %v1242_v19 = vld [vmem:[#allocation10 + $0x1e0] sm:$0xff] }
  0xe2   : > { %v5919_v28 = vmul.f32 %v5916_v25, %v794_v22  ;;  %1371 = vmatpush.msrb.mxu1 %v928_v20  ;;  %1215 = vmatpush.msra.mxu2 %v897_v21  ;;  %v1259_v20 = vld [vmem:[#allocation10 + $0x268] sm:$0xff]  ;;  %v910_v21 = vld [vmem:[#allocation10 + $0x50] sm:$0xff] }
  0xe3   : > { %v5922_v29 = vmul.f32 %v5916_v25, %v817_v23  ;;  %v929_v23 = vld [vmem:[#allocation10 + $0xe8] sm:$0xff] }
  0xe4   : > { %844 = vst [vmem:[#allocation2 + $0x20] sm:$0xff] %v5919_v28  ;;  %1372 = vmatpush.msrb.mxu1 %v926_v26  ;;  %1216 = vmatpush.msra.mxu2 %v895_v27  ;;  %v1257_v26 = vld [vmem:[#allocation10 + $0x258] sm:$0xff]  ;;  %v908_v27 = vld [vmem:[#allocation10 + $0x40] sm:$0xff] }
  0xe5   : > { %6823 = vst [vmem:[#allocation33_spill] sm:$0xff] %v5922_v29  ;;  %v5925_v33 = vld [vmem:[#allocation2 + $0x18] sm:$0xff] }
  0xe6   : > { %845 = vst.msk [vmem:[#allocation2 + $0x28] sm:$0xff] %vm834_vm1, %v5922_v29  ;;  %v1012_v34 = vrot.slane %v5925_v33, 7  ;;  %1373 = vmatpush.msrb.mxu1 %v924_v31  ;;  %1217 = vmatpush.msra.mxu2 %v893_v32  ;;  %v1125_v7 = vrot.slane %v5925_v33, 6  ;;  %v1238_v31 = vld [vmem:[#allocation10 + $0x1c0] sm:$0xff] }
  0xe8   : > { %v5931_v37 = vsel %vm1007_vm2, %v1011_v30, %v1012_v34  ;;  %1374 = vmatpush.msrb.mxu1 %v922_v38  ;;  %1218 = vmatpush.msra.mxu2 %v891_v39  ;;  %v5958_v14 = vsel %vm1120_vm3, %v1124_v6, %v1125_v7  ;;  %v927_v30 = vld [vmem:[#allocation10 + $0xd8] sm:$0xff]  ;;  %v940_v6 = vld [vmem:[#allocation10 + $0x140] sm:$0xff] }
  0xe9   : > { %4949 = vmatmul.msk.f32.vlgmr.msra.gmra.mxu3 %vm834_vm1, %v5931_v37  ;;  %4951 = vmatmul.msk.f32.vlgmr.msrb.gmra.mxu0 %vm834_vm1, %v5931_v37  ;;  %v1253_v39 = vld [vmem:[#allocation10 + $0x238] sm:$0xff] }
  0xea   : > { %1278 = vmatpush.msra.mxu3 %v1260_v35  ;;  %1355 = vmatpush.msrb.mxu0 %v1277_v36  ;;  %v925_v35 = vld [vmem:[#allocation10 + $0xc8] sm:$0xff]  ;;  %v1236_v36 = vld [vmem:[#allocation10 + $0x1b0] sm:$0xff] }
  0xeb   : > { %v950_v47 = vld [vmem:[#allocation2 + $0x20] sm:$0x7f]  ;;  %1375 = vmatpush.msrb.mxu1 %v920_v42  ;;  %1219 = vmatpush.msra.mxu2 %v889_v43  ;;  %v1251_v43 = vld [vmem:[#allocation10 + $0x228] sm:$0xff] }
  0xec   : > { %1279 = vmatpush.msra.mxu3 %v1258_v40  ;;  %1356 = vmatpush.msrb.mxu0 %v1275_v41  ;;  %v850_v48 = vld [vmem:[#allocation2 + $0x20] sm:$0x3f]  ;;  %v1014_v52 = vrot.slane %v950_v47, 7  ;;  %v906_v40 = vld [vmem:[#allocation10 + $0x30] sm:$0xff]  ;;  %v1234_v42 = vld [vmem:[#allocation10 + $0x1a0] sm:$0xff] }
  0xed   : > { %v951_v53 = vld [vmem:[#allocation2 + $0x28] sm:$0x7f]  ;;  %v1127_v54 = vrot.slane %v850_v48, 6  ;;  %1376 = vmatpush.msrb.mxu1 %v918_v46  ;;  %1220 = vmatpush.msra.mxu2 %v887_v49  ;;  %v923_v41 = vld [vmem:[#allocation10 + $0xb8] sm:$0xff]  ;;  %v1232_v46 = vld [vmem:[#allocation10 + $0x190] sm:$0xff] }
  0xee   : > { %1280 = vmatpush.msra.mxu3 %v1256_v44  ;;  %1357 = vmatpush.msrb.mxu0 %v1273_v45  ;;  %v1016_v55 = vrot.slane %v951_v53, 7  ;;  %v5940_v56 = vsel %vm1007_vm2, %v1009_v12, %v1014_v52  ;;  %v1263_v12 = vld [vmem:[#allocation10 + $0x288] sm:$0xff]  ;;  %v851_v22 = vld [vmem:[#allocation2 + $0x28] sm:$0x3f]  ;;  %v1249_v47 = vld [vmem:[#allocation10 + $0x218] sm:$0xff] }
  0xef   : > { %v5945_v57 = vsel %vm1120_vm3, %v1122_v13, %v1127_v54  ;;  %1043 = vmatmul.f32.gmra.mxu2 %v5940_v56  ;;  %1377 = vmatpush.msrb.mxu1 %v916_v61  ;;  %v1244_v13 = vld [vmem:[#allocation10 + $0x1f0] sm:$0xff]  ;;  %v1129_v32 = vrot.slane %v851_v22, 6  ;;  %v904_v44 = vld [vmem:[#allocation10 + $0x20] sm:$0xff]  ;;  %v921_v45 = vld [vmem:[#allocation10 + $0xa8] sm:$0xff] }
  0xf0   : > { %1281 = vmatpush.msra.mxu3 %v1254_v50  ;;  %1358 = vmatpush.msrb.mxu0 %v1271_v51  ;;  %v5948_v58 = vsel %vm1007_vm2, %v1012_v34, %v1016_v55  ;;  %v1255_v34 = vld [vmem:[#allocation10 + $0x248] sm:$0xff]  ;;  %v902_v48 = vld [vmem:[#allocation10 + $0x10] sm:$0xff]  ;;  %v919_v49 = vld [vmem:[#allocation10 + $0x98] sm:$0xff] }
  0xf1   : > { %4950 = vmatmul.msk.f32.gmra.mxu3 %vm834_vm1, %v5948_v58  ;;  %4952 = vmatmul.msk.f32.gmra.mxu0 %vm834_vm1, %v5948_v58  ;;  %v5968_v38 = vsel %vm1120_vm3, %v1125_v7, %v1129_v32  ;;  %v1230_v50 = vld [vmem:[#allocation10 + $0x180] sm:$0xff]  ;;  %v1247_v51 = vld [vmem:[#allocation10 + $0x208] sm:$0xff]  ;;  %v946_v54 = vld [vmem:[#allocation10 + $0x170] sm:$0xff] }
  0xf2   : > { %1156 = vmatmul.f32.gmra.mxu1 %v5945_v57  ;;  %1282 = vmatpush.msra.mxu3 %v1252_v59  ;;  %v900_v52 = vld [vmem:[#allocation10] sm:$0xff]  ;;  %v917_v53 = vld [vmem:[#allocation10 + $0x88] sm:$0xff]  ;;  %v1245_v59 = vld [vmem:[#allocation10 + $0x1f8] sm:$0xff] }
  0xf3   : > { %1359 = vmatpush.msrb.mxu0 %v1269_v60  ;;  %1221 = vmatpush.msra.mxu2 %v885_v62  ;;  %v1511_v55 = vld [vmem:[#allocation7 + $0x470] sm:$0xff]  ;;  %v915_v60 = vld [vmem:[#allocation10 + $0x78] sm:$0xff]  ;;  %v944_v61 = vld [vmem:[#allocation10 + $0x160] sm:$0xff] }
  0xf4   : > { %1283 = vmatpush.msra.mxu3 %v1250_v63  ;;  %1378 = vmatpush.msrb.mxu1 %v914_v3  ;;  %v1509_v62 = vld [vmem:[#allocation7 + $0x460] sm:$0xff]  ;;  %v1243_v63 = vld [vmem:[#allocation10 + $0x1e8] sm:$0xff]  ;;  %v934_v22 = vld [vmem:[#allocation10 + $0x110] sm:$0xff] }
  0xf5   : > { %1360 = vmatpush.msrb.mxu0 %v1267_v0  ;;  %v913_v0 = vld [vmem:[#allocation10 + $0x68] sm:$0xff]  ;;  %v1505_v7 = vld [vmem:[#allocation7 + $0x440] sm:$0xff] }
  0xf6   : > { %1284 = vmatpush.msra.mxu3 %v1248_v4  ;;  %1379 = vmatpush.msrb.mxu1 %v912_v10  ;;  %v1507_v3 = vld [vmem:[#allocation7 + $0x450] sm:$0xff]  ;;  %v1241_v4 = vld [vmem:[#allocation10 + $0x1d8] sm:$0xff] }
  0xf7   : > { %1361 = vmatpush.msrb.mxu0 %v1265_v5  ;;  %4953 = vmatmul.msk.f32.vlgmr.msrb.gmra.mxu2 %vm834_vm1, %v5958_v14  ;;  %v911_v5 = vld [vmem:[#allocation10 + $0x58] sm:$0xff]  ;;  %v1239_v10 = vld [vmem:[#allocation10 + $0x1c8] sm:$0xff] }
  0xf8   : > { %1285 = vmatpush.msra.mxu3 %v1246_v11  ;;  %1324 = vmatpush.msrb.mxu2 %v1261_v15  ;;  %v909_v11 = vld [vmem:[#allocation10 + $0x48] sm:$0xff]  ;;  %v907_v15 = vld [vmem:[#allocation10 + $0x38] sm:$0xff] }
  0xf9   : > { %1362 = vmatpush.msrb.mxu0 %v1263_v12  ;;  %1086 = vmatmul.f32.vlgmr.msrb.gmra.mxu3 %v5907_v16  ;;  %v1503_v12 = vld [vmem:[#allocation7 + $0x430] sm:$0xff] }
  0xfa   : > { %1199 = vmatmul.f32.vlgmr.msra.gmra.mxu0 %v5912_v17  ;;  %1286 = vmatpush.msra.mxu3 %v1244_v13  ;;  %v1237_v13 = vld [vmem:[#allocation10 + $0x1b8] sm:$0xff]  ;;  %v901_v32 = vld [vmem:[#allocation10 + $0x8] sm:$0xff] }
  0xfb   : > { %4957 = vmatmul.msk.f32.vlgmr.msra.gmra.mxu1 %vm834_vm1, %v5931_v37  ;;  %1416 = vmatpush.msra.mxu0 %v931_v18  ;;  %v936_v18 = vld [vmem:[#allocation10 + $0x120] sm:$0xff] }
  0xfc   : > { %1287 = vmatpush.msra.mxu3 %v1242_v19  ;;  %1325 = vmatpush.msrb.mxu2 %v1259_v20  ;;  %v1501_v19 = vld [vmem:[#allocation7 + $0x420] sm:$0xff]  ;;  %v1235_v20 = vld [vmem:[#allocation10 + $0x1a8] sm:$0xff] }
  0xfd   : > { %1380 = vmatpush.msrb.mxu1 %v910_v21  ;;  %1417 = vmatpush.msra.mxu0 %v929_v23  ;;  %v905_v21 = vld [vmem:[#allocation10 + $0x28] sm:$0xff] }
  0xfe   : > { %1288 = vmatpush.msra.mxu3 %v1240_v24  ;;  %1326 = vmatpush.msrb.mxu2 %v1257_v26  ;;  %v1499_v23 = vld [vmem:[#allocation7 + $0x410] sm:$0xff]  ;;  %v1233_v24 = vld [vmem:[#allocation10 + $0x198] sm:$0xff] }
  0xff   : > { %1381 = vmatpush.msrb.mxu1 %v908_v27  ;;  %1418 = vmatpush.msra.mxu0 %v927_v30  ;;  %v903_v26 = vld [vmem:[#allocation10 + $0x18] sm:$0xff]  ;;  %v932_v27 = vld [vmem:[#allocation10 + $0x100] sm:$0xff] }
 0x100   : > { %1289 = vmatpush.msra.mxu3 %v1238_v31  ;;  %1327 = vmatpush.msrb.mxu2 %v1255_v34  ;;  %v1497_v30 = vld [vmem:[#allocation7 + $0x400] sm:$0xff]  ;;  %v1231_v31 = vld [vmem:[#allocation10 + $0x188] sm:$0xff]  ;;  %v1645_v34 = vld [vmem:[#allocation10 + $0x3f0] sm:$0xff] }
 0x101   : > { %1089 = vmatmul.f32.gmra.mxu3 %v5940_v56  ;;  %1419 = vmatpush.msra.mxu0 %v925_v35  ;;  %v947_v35 = vld [vmem:[#allocation10 + $0x178] sm:$0xff] }
 0x102   : > { %4954 = vmatmul.msk.f32.gmra.mxu2 %vm834_vm1, %v5968_v38  ;;  %1202 = vmatmul.f32.gmra.mxu0 %v5945_v57 }
 0x103   : > { %1290 = vmatpush.msra.mxu3 %v1236_v36  ;;  %4958 = vmatmul.msk.f32.gmra.mxu1 %vm834_vm1, %v5948_v58  ;;  %v1512_v36 = vld [vmem:[#allocation7 + $0x478] sm:$0xff] }
 0x104   : > { %1328 = vmatpush.msrb.mxu2 %v1253_v39  ;;  %1382 = vmatpush.msrb.mxu1 %v906_v40  ;;  %v1493_v39 = vld [vmem:[#allocation7 + $0x3e0] sm:$0xff]  ;;  %v945_v40 = vld [vmem:[#allocation10 + $0x168] sm:$0xff] }
 0x105   : > { %1420 = vmatpush.msra.mxu0 %v923_v41  ;;  %1291 = vmatpush.msra.mxu3 %v1234_v42  ;;  %v1643_v41 = vld [vmem:[#allocation10 + $0x3e0] sm:$0xff] }
 0x106   : > { %1329 = vmatpush.msrb.mxu2 %v1251_v43  ;;  %1383 = vmatpush.msrb.mxu1 %v904_v44  ;;  %v1510_v42 = vld [vmem:[#allocation7 + $0x468] sm:$0xff]  ;;  %v1491_v43 = vld [vmem:[#allocation7 + $0x3d0] sm:$0xff]  ;;  %v943_v44 = vld [vmem:[#allocation10 + $0x158] sm:$0xff] }
 0x107   : > { %1421 = vmatpush.msra.mxu0 %v921_v45  ;;  %1292 = vmatpush.msra.mxu3 %v1232_v46  ;;  %v1641_v45 = vld [vmem:[#allocation10 + $0x3d0] sm:$0xff] }
 0x108   : > { %1330 = vmatpush.msrb.mxu2 %v1249_v47  ;;  %1384 = vmatpush.msrb.mxu1 %v902_v48  ;;  %v1508_v46 = vld [vmem:[#allocation7 + $0x458] sm:$0xff]  ;;  %v1489_v47 = vld [vmem:[#allocation7 + $0x3c0] sm:$0xff] }
 0x109   : > { %1422 = vmatpush.msra.mxu0 %v919_v49  ;;  %1293 = vmatpush.msra.mxu3 %v1230_v50  ;;  %v1639_v48 = vld [vmem:[#allocation10 + $0x3c0] sm:$0xff]  ;;  %v939_v50 = vld [vmem:[#allocation10 + $0x138] sm:$0xff] }
 0x10a   : > { %1331 = vmatpush.msrb.mxu2 %v1247_v51  ;;  %1385 = vmatpush.msrb.mxu1 %v900_v52  ;;  %v1506_v49 = vld [vmem:[#allocation7 + $0x448] sm:$0xff]  ;;  %v1637_v51 = vld [vmem:[#allocation10 + $0x3b0] sm:$0xff] }
 0x10b   : > { %1423 = vmatpush.msra.mxu0 %v917_v53  ;;  %1401 = vmatpush.msrb.mxu3 %v946_v54  ;;  %v1504_v52 = vld [vmem:[#allocation7 + $0x438] sm:$0xff]  ;;  %v1485_v53 = vld [vmem:[#allocation7 + $0x3a0] sm:$0xff]  ;;  %v937_v54 = vld [vmem:[#allocation10 + $0x128] sm:$0xff] }
 0x10c   : > { %1549 = vmatpush.msra.mxu1 %v1511_v55  ;;  %4955 = vmatmul.msk.f32.vlgmr.msra.gmra.mxu2 %vm834_vm1, %v5958_v14  ;;  %v1635_v55 = vld [vmem:[#allocation10 + $0x3a0] sm:$0xff] }
 0x10d   : > { %1294 = vmatmul.f32.vlgmr.msra.gmra.mxu3 %v5907_v16  ;;  %1332 = vmatpush.msrb.mxu2 %v1245_v59  ;;  %v1502_v59 = vld [vmem:[#allocation7 + $0x428] sm:$0xff] }
 0x10e   : > { %4959 = vmatmul.msk.f32.vlgmr.msrb.gmra.mxu0 %vm834_vm1, %v5931_v37  ;;  %1386 = vmatmul.f32.vlgmr.msrb.gmra.mxu1 %v5912_v17  ;;  %v938_v37 = vld [vmem:[#allocation10 + $0x130] sm:$0xff] }
 0x10f   : > { %1424 = vmatpush.msra.mxu0 %v915_v60  ;;  %1402 = vmatpush.msrb.mxu3 %v944_v61  ;;  %v5997_v60 = vld [vmem:[#allocation2 + $0x28] sm:$0xff]  ;;  %v1483_v61 = vld [vmem:[#allocation7 + $0x390] sm:$0xff] }
 0x110   : > { %1550 = vmatpush.msra.mxu1 %v1509_v62  ;;  %1333 = vmatpush.msrb.mxu2 %v1243_v63  ;;  %v935_v62 = vld [vmem:[#allocation10 + $0x118] sm:$0xff]  ;;  %v1633_v63 = vld [vmem:[#allocation10 + $0x390] sm:$0xff] }
 0x111   : > { %1425 = vmatpush.msra.mxu0 %v913_v0  ;;  %1403 = vmatpush.msrb.mxu3 %v942_v2  ;;  %v1500_v0 = vld [vmem:[#allocation7 + $0x418] sm:$0xff]  ;;  %v933_v2 = vld [vmem:[#allocation10 + $0x108] sm:$0xff] }
 0x112   : > { %1551 = vmatpush.msra.mxu1 %v1507_v3  ;;  %1334 = vmatpush.msrb.mxu2 %v1241_v4  ;;  %v1631_v3 = vld [vmem:[#allocation10 + $0x380] sm:$0xff] }
 0x113   : > { %1426 = vmatpush.msra.mxu0 %v911_v5  ;;  %1404 = vmatpush.msrb.mxu3 %v940_v6  ;;  %v1498_v4 = vld [vmem:[#allocation7 + $0x408] sm:$0xff]  ;;  %v1496_v5 = vld [vmem:[#allocation7 + $0x3f8] sm:$0xff] }
 0x114   : > { %1552 = vmatpush.msra.mxu1 %v1505_v7  ;;  %1335 = vmatpush.msrb.mxu2 %v1239_v10  ;;  %v1629_v6 = vld [vmem:[#allocation10 + $0x370] sm:$0xff]  ;;  %v1646_v7 = vld [vmem:[#allocation10 + $0x3f8] sm:$0xff] }
 0x115   : > { %1427 = vmatpush.msra.mxu0 %v909_v11  ;;  %1405 = vmatpush.msrb.mxu3 %v938_v37  ;;  %v1477_v10 = vld [vmem:[#allocation7 + $0x360] sm:$0xff]  ;;  %v1494_v11 = vld [vmem:[#allocation7 + $0x3e8] sm:$0xff] }
 0x116   : > { %1553 = vmatpush.msra.mxu1 %v1503_v12  ;;  %4956 = vmatmul.msk.f32.gmra.mxu2 %vm834_vm1, %v5968_v38  ;;  %v1627_v37 = vld [vmem:[#allocation10 + $0x360] sm:$0xff]  ;;  %v1644_v12 = vld [vmem:[#allocation10 + $0x3e8] sm:$0xff] }
 0x117   : > { %1297 = vmatmul.f32.gmra.mxu3 %v5940_v56  ;;  %1336 = vmatpush.msrb.mxu2 %v1237_v13  ;;  %v1475_v13 = vld [vmem:[#allocation7 + $0x350] sm:$0xff] }
 0x118   : > { %4960 = vmatmul.msk.f32.gmra.mxu0 %vm834_vm1, %v5948_v58  ;;  %1389 = vmatmul.f32.gmra.mxu1 %v5945_v57  ;;  %v1495_v58 = vld [vmem:[#allocation7 + $0x3f0] sm:$0xff] }
 0x119   : > { %1428 = vmatpush.msra.mxu0 %v907_v15  ;;  %1406 = vmatpush.msrb.mxu3 %v936_v18  ;;  %v1492_v15 = vld [vmem:[#allocation7 + $0x3d8] sm:$0xff] }
 0x11a   : > { %1554 = vmatpush.msra.mxu1 %v1501_v19  ;;  %1337 = vmatpush.msrb.mxu2 %v1235_v20  ;;  %v1625_v18 = vld [vmem:[#allocation10 + $0x350] sm:$0xff]  ;;  %v1642_v19 = vld [vmem:[#allocation10 + $0x3d8] sm:$0xff] }
 0x11b   : > { %1429 = vmatpush.msra.mxu0 %v905_v21  ;;  %1407 = vmatpush.msrb.mxu3 %v934_v22  ;;  %v1473_v20 = vld [vmem:[#allocation7 + $0x340] sm:$0xff]  ;;  %v1490_v21 = vld [vmem:[#allocation7 + $0x3c8] sm:$0xff] }
 0x11c   : > { %1555 = vmatpush.msra.mxu1 %v1499_v23  ;;  %1338 = vmatpush.msrb.mxu2 %v1233_v24  ;;  %v1623_v22 = vld [vmem:[#allocation10 + $0x340] sm:$0xff]  ;;  %v1640_v23 = vld [vmem:[#allocation10 + $0x3c8] sm:$0xff]  ;;  %v1488_v24 = vld [vmem:[#allocation7 + $0x3b8] sm:$0xff] }
 0x11d   : > { %1430 = vmatpush.msra.mxu0 %v903_v26  ;;  %1408 = vmatpush.msrb.mxu3 %v932_v27  ;;  %v1621_v26 = vld [vmem:[#allocation10 + $0x330] sm:$0xff]  ;;  %v1638_v27 = vld [vmem:[#allocation10 + $0x3b8] sm:$0xff] }
 0x11e   : > { %1556 = vmatpush.msra.mxu1 %v1497_v30  ;;  %1339 = vmatpush.msrb.mxu2 %v1231_v31  ;;  %v1469_v30 = vld [vmem:[#allocation7 + $0x320] sm:$0xff]  ;;  %v1486_v31 = vld [vmem:[#allocation7 + $0x3a8] sm:$0xff] }
 0x11f   : > { %1431 = vmatpush.msra.mxu0 %v901_v32  ;;  %1518 = vmatpush.msra.mxu3 %v1495_v58  ;;  %v1619_v32 = vld [vmem:[#allocation10 + $0x320] sm:$0xff]  ;;  %v1636_v58 = vld [vmem:[#allocation10 + $0x3a8] sm:$0xff] }
 0x120   : > { %1663 = vmatpush.msrb.mxu1 %v1645_v34  ;;  %1447 = vmatpush.msra.mxu2 %v947_v35  ;;  %v1467_v34 = vld [vmem:[#allocation7 + $0x310] sm:$0xff]  ;;  %v1484_v35 = vld [vmem:[#allocation7 + $0x398] sm:$0xff] }
 0x121   : > { %1595 = vmatpush.msrb.mxu0 %v1512_v36  ;;  %1340 = vmatmul.f32.vlgmr.msrb.gmra.mxu2 %v5907_v16  ;;  %v941_v16 = vld [vmem:[#allocation10 + $0x148] sm:$0xff]  ;;  %v1617_v36 = vld [vmem:[#allocation10 + $0x310] sm:$0xff] }
 0x122   : > { %4961 = vmatmul.msk.f32.vlgmr.msrb.gmra.mxu3 %vm834_vm1, %v5958_v14  ;;  %1432 = vmatmul.f32.vlgmr.msra.gmra.mxu0 %v5912_v17  ;;  %v1487_v17 = vld [vmem:[#allocation7 + $0x3b0] sm:$0xff] }
 0x123   : > { %1519 = vmatpush.msra.mxu3 %v1493_v39  ;;  %4965 = vmatmul.msk.f32.vlgmr.msra.gmra.mxu1 %vm834_vm1, %v5925_v33  ;;  %v1634_v39 = vld [vmem:[#allocation10 + $0x398] sm:$0xff] }
 0x124   : > { %1448 = vmatpush.msra.mxu2 %v945_v40  ;;  %1664 = vmatpush.msrb.mxu1 %v1643_v41  ;;  %v1465_v40 = vld [vmem:[#allocation7 + $0x300] sm:$0xff]  ;;  %v1482_v41 = vld [vmem:[#allocation7 + $0x388] sm:$0xff] }
 0x125   : > { %1596 = vmatpush.msrb.mxu0 %v1510_v42  ;;  %1520 = vmatpush.msra.mxu3 %v1491_v43  ;;  %v1615_v42 = vld [vmem:[#allocation10 + $0x300] sm:$0xff]  ;;  %v1632_v43 = vld [vmem:[#allocation10 + $0x388] sm:$0xff] }
 0x126   : > { %1449 = vmatpush.msra.mxu2 %v943_v44  ;;  %1665 = vmatpush.msrb.mxu1 %v1641_v45  ;;  %v1812_v44 = vld [vmem:[#allocation7 + $0x5f0] sm:$0xff]  ;;  %v1480_v45 = vld [vmem:[#allocation7 + $0x378] sm:$0xff] }
 0x127   : > { %1597 = vmatpush.msrb.mxu0 %v1508_v46  ;;  %1521 = vmatpush.msra.mxu3 %v1489_v47  ;;  %v1630_v46 = vld [vmem:[#allocation10 + $0x378] sm:$0xff]  ;;  %v1659_v47 = vld [vmem:[#allocation10 + $0x460] sm:$0xff] }
 0x128   : > { %1450 = vmatpush.msra.mxu2 %v941_v16  ;;  %1666 = vmatpush.msrb.mxu1 %v1639_v48  ;;  %v1810_v16 = vld [vmem:[#allocation7 + $0x5e0] sm:$0xff]  ;;  %v1478_v48 = vld [vmem:[#allocation7 + $0x368] sm:$0xff] }
 0x129   : > { %1598 = vmatpush.msrb.mxu0 %v1506_v49  ;;  %1522 = vmatpush.msra.mxu3 %v1487_v17  ;;  %v1628_v49 = vld [vmem:[#allocation10 + $0x368] sm:$0xff]  ;;  %v1657_v17 = vld [vmem:[#allocation10 + $0x450] sm:$0xff] }
 0x12a   : > { %1451 = vmatpush.msra.mxu2 %v939_v50  ;;  %1667 = vmatpush.msrb.mxu1 %v1637_v51  ;;  %v1808_v50 = vld [vmem:[#allocation7 + $0x5d0] sm:$0xff]  ;;  %v1476_v51 = vld [vmem:[#allocation7 + $0x358] sm:$0xff] }
 0x12b   : > { %1599 = vmatpush.msrb.mxu0 %v1504_v52  ;;  %1343 = vmatmul.f32.gmra.mxu2 %v5940_v56  ;;  %v1481_v56 = vld [vmem:[#allocation7 + $0x380] sm:$0xff] }
 0x12c   : > { %4962 = vmatmul.msk.f32.gmra.mxu3 %vm834_vm1, %v5968_v38  ;;  %1435 = vmatmul.f32.gmra.mxu0 %v5945_v57  ;;  %v1479_v57 = vld [vmem:[#allocation7 + $0x370] sm:$0xff]  ;;  %v1626_v52 = vld [vmem:[#allocation10 + $0x358] sm:$0xff] }
 0x12d   : > { %1523 = vmatpush.msra.mxu3 %v1485_v53  ;;  %4966 = vmatmul.msk.f32.gmra.mxu1 %vm834_vm1, %v5997_v60  ;;  %v1655_v53 = vld [vmem:[#allocation10 + $0x440] sm:$0xff] }
 0x12e   : > { %1452 = vmatpush.msra.mxu2 %v937_v54  ;;  %1668 = vmatpush.msrb.mxu1 %v1635_v55  ;;  %v1806_v54 = vld [vmem:[#allocation7 + $0x5c0] sm:$0xff]  ;;  %v1474_v55 = vld [vmem:[#allocation7 + $0x348] sm:$0xff] }
 0x12f   : > { %1600 = vmatpush.msrb.mxu0 %v1502_v59  ;;  %1524 = vmatpush.msra.mxu3 %v1483_v61  ;;  %v1624_v59 = vld [vmem:[#allocation10 + $0x348] sm:$0xff]  ;;  %v1653_v61 = vld [vmem:[#allocation10 + $0x430] sm:$0xff] }
 0x130   : > { %1453 = vmatpush.msra.mxu2 %v935_v62  ;;  %1669 = vmatpush.msrb.mxu1 %v1633_v63  ;;  %v1804_v62 = vld [vmem:[#allocation7 + $0x5b0] sm:$0xff]  ;;  %v1472_v63 = vld [vmem:[#allocation7 + $0x338] sm:$0xff] }
 0x131   : > { %1601 = vmatpush.msrb.mxu0 %v1500_v0  ;;  %1525 = vmatpush.msra.mxu3 %v1481_v56  ;;  %v1622_v0 = vld [vmem:[#allocation10 + $0x338] sm:$0xff]  ;;  %v1651_v56 = vld [vmem:[#allocation10 + $0x420] sm:$0xff] }
 0x132   : > { %1454 = vmatpush.msra.mxu2 %v933_v2  ;;  %1670 = vmatpush.msrb.mxu1 %v1631_v3  ;;  %v1802_v2 = vld [vmem:[#allocation7 + $0x5a0] sm:$0xff]  ;;  %v1470_v3 = vld [vmem:[#allocation7 + $0x328] sm:$0xff] }
 0x133   : > { %1602 = vmatpush.msrb.mxu0 %v1498_v4  ;;  %1526 = vmatpush.msra.mxu3 %v1479_v57  ;;  %v1620_v4 = vld [vmem:[#allocation10 + $0x328] sm:$0xff]  ;;  %v1649_v57 = vld [vmem:[#allocation10 + $0x410] sm:$0xff] }
 0x134   : > { %1564 = vmatpush.msrb.mxu2 %v1496_v5  ;;  %1671 = vmatpush.msrb.mxu1 %v1629_v6  ;;  %v1800_v5 = vld [vmem:[#allocation7 + $0x590] sm:$0xff]  ;;  %v1468_v6 = vld [vmem:[#allocation7 + $0x318] sm:$0xff] }
 0x135   : > { %1709 = vmatpush.msra.mxu0 %v1646_v7  ;;  %4963 = vmatmul.msk.f32.vlgmr.msra.gmra.mxu2 %vm834_vm1, %v5958_v14  ;;  %v1471_v14 = vld [vmem:[#allocation7 + $0x330] sm:$0xff]  ;;  %v1618_v7 = vld [vmem:[#allocation10 + $0x318] sm:$0xff] }
 0x136   : > { %1527 = vmatpush.msra.mxu3 %v1477_v10  ;;  %1565 = vmatpush.msrb.mxu2 %v1494_v11  ;;  %v1647_v10 = vld [vmem:[#allocation10 + $0x400] sm:$0xff] }
 0x137   : > { %4967 = vmatmul.msk.f32.vlgmr.msrb.gmra.mxu0 %vm834_vm1, %v5925_v33  ;;  %1672 = vmatpush.msrb.mxu1 %v1627_v37  ;;  %v1798_v11 = vld [vmem:[#allocation7 + $0x580] sm:$0xff]  ;;  %v1466_v37 = vld [vmem:[#allocation7 + $0x308] sm:$0xff] }
 0x138   : > { %1710 = vmatpush.msra.mxu0 %v1644_v12  ;;  %1528 = vmatpush.msra.mxu3 %v1475_v13  ;;  %v1616_v12 = vld [vmem:[#allocation10 + $0x308] sm:$0xff] }
 0x139   : > { %1566 = vmatpush.msrb.mxu2 %v1492_v15  ;;  %1673 = vmatpush.msrb.mxu1 %v1625_v18  ;;  %v1796_v13 = vld [vmem:[#allocation7 + $0x570] sm:$0xff] }
 0x13a   : > { %1711 = vmatpush.msra.mxu0 %v1642_v19  ;;  %1529 = vmatpush.msra.mxu3 %v1473_v20  ;;  %v1964_v15 = vld [vmem:[#allocation10 + $0x570] sm:$0xff]  ;;  %v1825_v19 = vrot.slane %v5997_v60, 1  ;;  %v1662_v20 = vld [vmem:[#allocation10 + $0x478] sm:$0xff] }
 0x13b   : > { %1567 = vmatpush.msrb.mxu2 %v1490_v21  ;;  %1674 = vmatpush.msrb.mxu1 %v1623_v22  ;;  %v1760_v18 = vld [vmem:[#allocation2 + $0x18] sm:$0xfe] }
 0x13c   : > { %1712 = vmatpush.msra.mxu0 %v1640_v23  ;;  %1530 = vmatpush.msra.mxu3 %v1471_v14  ;;  %v1824_v21 = vrot.slane %v1760_v18, 1  ;;  %v1813_v22 = vld [vmem:[#allocation7 + $0x5f8] sm:$0xff]  ;;  %v1794_v23 = vld [vmem:[#allocation7 + $0x560] sm:$0xff]  ;;  %v1787_v18 = vld [vmem:[#allocation7 + $0x528] sm:$0xff] }
 0x13d   : > { %1568 = vmatpush.msrb.mxu2 %v1488_v24  ;;  %1675 = vmatpush.msrb.mxu1 %v1621_v26  ;;  %v1962_v14 = vld [vmem:[#allocation10 + $0x560] sm:$0xff]  ;;  %v1660_v26 = vld [vmem:[#allocation10 + $0x468] sm:$0xff] }
 0x13e   : > { %1713 = vmatpush.msra.mxu0 %v1638_v27  ;;  %4964 = vmatmul.msk.f32.gmra.mxu2 %vm834_vm1, %v5968_v38  ;;  %v1661_v38 = vld [vmem:[#allocation10 + $0x470] sm:$0xff]  ;;  %v6019_v24 = vsel %vm1820_vm4, %v1824_v21, %v1825_v19  ;;  %v1811_v27 = vld [vmem:[#allocation7 + $0x5e8] sm:$0xff]  ;;  %v6035_v21 = vld [vmem:[#allocation2 + $0x20] sm:$0xff] }
 0x13f   : > { %1531 = vmatpush.msra.mxu3 %v1469_v30  ;;  %1569 = vmatpush.msrb.mxu2 %v1486_v31  ;;  %v1792_v30 = vld [vmem:[#allocation7 + $0x550] sm:$0xff] }
 0x140   : > { %4968 = vmatmul.msk.f32.gmra.mxu0 %vm834_vm1, %v5997_v60  ;;  %1676 = vmatpush.msrb.mxu1 %v1619_v32  ;;  %v1960_v31 = vld [vmem:[#allocation10 + $0x550] sm:$0xff]  ;;  %v1658_v32 = vld [vmem:[#allocation10 + $0x458] sm:$0xff] }
 0x141   : > { %1714 = vmatpush.msra.mxu0 %v1636_v58  ;;  %1532 = vmatpush.msra.mxu3 %v1467_v34  ;;  %v1790_v58 = vld [vmem:[#allocation7 + $0x540] sm:$0xff]  ;;  %v1764_v34 = vld [vmem:[#allocation2 + $0x38] sm:$0x1] }
 0x142   : > { %1570 = vmatpush.msrb.mxu2 %v1484_v35  ;;  %1677 = vmatpush.msrb.mxu1 %v1617_v36  ;;  %v1656_v35 = vld [vmem:[#allocation10 + $0x448] sm:$0xff] }
 0x143   : > { %1715 = vmatpush.msra.mxu0 %v1634_v39  ;;  %1533 = vmatpush.msra.mxu3 %v1465_v40  ;;  %v1807_v36 = vld [vmem:[#allocation7 + $0x5c8] sm:$0xff]  ;;  %v1788_v39 = vld [vmem:[#allocation7 + $0x530] sm:$0xff] }
 0x144   : > { %1571 = vmatpush.msrb.mxu2 %v1482_v41  ;;  %1678 = vmatpush.msrb.mxu1 %v1615_v42  ;;  %v1956_v40 = vld [vmem:[#allocation10 + $0x530] sm:$0xff]  ;;  %v1829_v41 = vrot.slane %v1764_v34, 1  ;;  %v1654_v42 = vld [vmem:[#allocation10 + $0x438] sm:$0xff] }
 0x145   : > { %1716 = vmatpush.msra.mxu0 %v1632_v43  ;;  %1534 = vmatmul.f32.vlgmr.msra.gmra.mxu3 %v5894_v8  ;;  %v1805_v43 = vld [vmem:[#allocation7 + $0x5b8] sm:$0xff] }
 0x146   : > { %1679 = vmatmul.f32.vlgmr.msrb.gmra.mxu1 %v5894_v8  ;;  %1694 = vmatpush.msrb.mxu3 %v1661_v38  ;;  %v1786_v38 = vld [vmem:[#allocation7 + $0x520] sm:$0xff]  ;;  %v1980_v34 = vld [vmem:[#allocation10 + $0x5f0] sm:$0xff] }
 0x147   : > { %1868 = vmatpush.msra.mxu1 %v1812_v44  ;;  %1572 = vmatpush.msrb.mxu2 %v1480_v45  ;;  %v1954_v44 = vld [vmem:[#allocation10 + $0x520] sm:$0xff]  ;;  %v6028_v45 = vsel %vm1820_vm4, %v1825_v19, %v1829_v41 }
 0x148   : > { %1717 = vmatpush.msra.mxu0 %v1630_v46  ;;  %1695 = vmatpush.msrb.mxu3 %v1659_v47  ;;  %v1652_v46 = vld [vmem:[#allocation10 + $0x428] sm:$0xff]  ;;  %v1938_v19 = vld [vmem:[#allocation10 + $0x4a0] sm:$0xff] }
 0x149   : > { %1869 = vmatpush.msra.mxu1 %v1810_v16  ;;  %1573 = vmatpush.msrb.mxu2 %v1478_v48  ;;  %v1803_v47 = vld [vmem:[#allocation7 + $0x5a8] sm:$0xff]  ;;  %v1784_v16 = vld [vmem:[#allocation7 + $0x510] sm:$0xff] }
 0x14a   : > { %1718 = vmatpush.msra.mxu0 %v1628_v49  ;;  %1696 = vmatpush.msrb.mxu3 %v1657_v17  ;;  %v1952_v48 = vld [vmem:[#allocation10 + $0x510] sm:$0xff]  ;;  %v1650_v49 = vld [vmem:[#allocation10 + $0x418] sm:$0xff]  ;;  %v1978_v41 = vld [vmem:[#allocation10 + $0x5e0] sm:$0xff] }
 0x14b   : > { %1870 = vmatpush.msra.mxu1 %v1808_v50  ;;  %1574 = vmatpush.msrb.mxu2 %v1476_v51  ;;  %v1801_v17 = vld [vmem:[#allocation7 + $0x598] sm:$0xff]  ;;  %v1782_v50 = vld [vmem:[#allocation7 + $0x500] sm:$0xff]  ;;  %v1648_v51 = vld [vmem:[#allocation10 + $0x408] sm:$0xff] }
 0x14c   : > { %1719 = vmatpush.msra.mxu0 %v1626_v52  ;;  %1697 = vmatpush.msrb.mxu3 %v1655_v53  ;;  %v1799_v52 = vld [vmem:[#allocation7 + $0x588] sm:$0xff]  ;;  %v1780_v53 = vld [vmem:[#allocation7 + $0x4f0] sm:$0xff] }
 0x14d   : > { %1871 = vmatpush.msra.mxu1 %v1806_v54  ;;  %1575 = vmatpush.msrb.mxu2 %v1474_v55  ;;  %v1797_v54 = vld [vmem:[#allocation7 + $0x578] sm:$0xff] }
 0x14e   : > { %1720 = vmatpush.msra.mxu0 %v1624_v59  ;;  %1537 = vmatmul.f32.gmra.mxu3 %v5919_v28  ;;  %v1948_v55 = vld [vmem:[#allocation10 + $0x4f0] sm:$0xff]  ;;  %v1965_v59 = vld [vmem:[#allocation10 + $0x578] sm:$0xff] }
 0x14f   : > { %1682 = vmatmul.f32.gmra.mxu1 %v5919_v28  ;;  %1698 = vmatpush.msrb.mxu3 %v1653_v61  ;;  %v1778_v61 = vld [vmem:[#allocation7 + $0x4e0] sm:$0xff] }
 0x150   : > { %1872 = vmatpush.msra.mxu1 %v1804_v62  ;;  %1576 = vmatpush.msrb.mxu2 %v1472_v63  ;;  %v1795_v62 = vld [vmem:[#allocation7 + $0x568] sm:$0xff] }
 0x151   : > { %1721 = vmatpush.msra.mxu0 %v1622_v0  ;;  %1699 = vmatpush.msrb.mxu3 %v1651_v56  ;;  %v1946_v63 = vld [vmem:[#allocation10 + $0x4e0] sm:$0xff]  ;;  %v1963_v0 = vld [vmem:[#allocation10 + $0x568] sm:$0xff]  ;;  %v5236_v56 = vld [vmem:[#allocation2 + $0x18] sm:$0xff] }
 0x152   : > { %1873 = vmatpush.msra.mxu1 %v1802_v2  ;;  %1577 = vmatpush.msrb.mxu2 %v1470_v3  ;;  %v1776_v2 = vld [vmem:[#allocation7 + $0x4d0] sm:$0xff]  ;;  %v1793_v3 = vld [vmem:[#allocation7 + $0x558] sm:$0xff] }
 0x153   : > { %1722 = vmatpush.msra.mxu0 %v1620_v4  ;;  %1700 = vmatpush.msrb.mxu3 %v1649_v57  ;;  %v1944_v4 = vld [vmem:[#allocation10 + $0x4d0] sm:$0xff]  ;;  %v1961_v57 = vld [vmem:[#allocation10 + $0x558] sm:$0xff] }
 0x154   : > { %1874 = vmatpush.msra.mxu1 %v1800_v5  ;;  %1578 = vmatpush.msrb.mxu2 %v1468_v6  ;;  %v1774_v5 = vld [vmem:[#allocation7 + $0x4c0] sm:$0xff]  ;;  %v1791_v6 = vld [vmem:[#allocation7 + $0x548] sm:$0xff] }
 0x155   : > { %1723 = vmatpush.msra.mxu0 %v1618_v7  ;;  %1701 = vmatpush.msrb.mxu3 %v1647_v10  ;;  %v1942_v7 = vld [vmem:[#allocation10 + $0x4c0] sm:$0xff]  ;;  %v1959_v10 = vld [vmem:[#allocation10 + $0x548] sm:$0xff] }
 0x156   : > { %1875 = vmatpush.msra.mxu1 %v1798_v11  ;;  %1579 = vmatpush.msrb.mxu2 %v1466_v37  ;;  %v1772_v11 = vld [vmem:[#allocation7 + $0x4b0] sm:$0xff]  ;;  %v1789_v37 = vld [vmem:[#allocation7 + $0x538] sm:$0xff] }
 0x157   : > { %1724 = vmatpush.msra.mxu0 %v1616_v12  ;;  %1837 = vmatpush.msra.mxu3 %v1796_v13  ;;  %v1940_v12 = vld [vmem:[#allocation10 + $0x4b0] sm:$0xff]  ;;  %v1957_v13 = vld [vmem:[#allocation10 + $0x538] sm:$0xff] }
 0x158   : > { %1982 = vmatpush.msrb.mxu1 %v1964_v15  ;;  %1580 = vmatmul.f32.vlgmr.msrb.gmra.mxu2 %v5894_v8  ;;  %v1770_v15 = vld [vmem:[#allocation7 + $0x4a0] sm:$0xff] }
 0x159   : > { %4969 = vmatmul.msk.f32.vlgmr.msrb.gmra.mxu3 %vm834_vm1, %v5925_v33  ;;  %1725 = vmatmul.f32.vlgmr.msra.gmra.mxu0 %v5894_v8  ;;  %v1809_v33 = vld [vmem:[#allocation7 + $0x5d8] sm:$0xff]  ;;  %v1958_v8 = vld [vmem:[#allocation10 + $0x540] sm:$0xff] }
 0x15a   : > { %1740 = vmatpush.msra.mxu2 %v1662_v20  ;;  %4973 = vmatmul.msk.f32.vlgmr.msra.gmra.mxu1 %vm834_vm1, %v6019_v24  ;;  %v1955_v20 = vld [vmem:[#allocation10 + $0x528] sm:$0xff] }
 0x15b   : > { %1914 = vmatpush.msrb.mxu0 %v1813_v22  ;;  %1838 = vmatpush.msra.mxu3 %v1794_v23  ;;  %v1768_v22 = vld [vmem:[#allocation7 + $0x490] sm:$0xff]  ;;  %v1785_v23 = vld [vmem:[#allocation7 + $0x518] sm:$0xff] }
 0x15c   : > { %1983 = vmatpush.msrb.mxu1 %v1962_v14  ;;  %1741 = vmatpush.msra.mxu2 %v1660_v26  ;;  %v1936_v14 = vld [vmem:[#allocation10 + $0x490] sm:$0xff]  ;;  %v1953_v26 = vld [vmem:[#allocation10 + $0x518] sm:$0xff] }
 0x15d   : > { %1915 = vmatpush.msrb.mxu0 %v1811_v27  ;;  %1839 = vmatpush.msra.mxu3 %v1792_v30  ;;  %v1759_v27 = vld [vmem:[#allocation2 + $0x10] sm:$0xfe]  ;;  %v1766_v30 = vld [vmem:[#allocation7 + $0x480] sm:$0xff] }
 0x15e   : > { %1984 = vmatpush.msrb.mxu1 %v1960_v31  ;;  %1742 = vmatpush.msra.mxu2 %v1658_v32  ;;  %v1783_v31 = vld [vmem:[#allocation7 + $0x508] sm:$0xff]  ;;  %v1822_v32 = vrot.slane %v6035_v21, 1 }
 0x15f   : > { %1916 = vmatpush.msrb.mxu0 %v1809_v33  ;;  %1840 = vmatpush.msra.mxu3 %v1790_v58  ;;  %v1934_v33 = vld [vmem:[#allocation10 + $0x480] sm:$0xff]  ;;  %v1951_v58 = vld [vmem:[#allocation10 + $0x508] sm:$0xff] }
 0x160   : > { %1985 = vmatpush.msrb.mxu1 %v1958_v8  ;;  %1743 = vmatpush.msra.mxu2 %v1656_v35  ;;  %v1821_v8 = vrot.slane %v1759_v27, 1  ;;  %v2129_v35 = vld [vmem:[#allocation7 + $0x770] sm:$0xff]  ;;  %v1977_v27 = vld [vmem:[#allocation10 + $0x5d8] sm:$0xff] }
 0x161   : > { %1917 = vmatpush.msrb.mxu0 %v1807_v36  ;;  %1841 = vmatpush.msra.mxu3 %v1788_v39  ;;  %v1781_v39 = vld [vmem:[#allocation7 + $0x4f8] sm:$0xff] }
 0x162   : > { %1986 = vmatpush.msrb.mxu1 %v1956_v40  ;;  %1583 = vmatmul.f32.gmra.mxu2 %v5919_v28  ;;  %v6043_v36 = vsel %vm1820_vm4, %v1821_v8, %v1822_v32  ;;  %v1949_v40 = vld [vmem:[#allocation10 + $0x4f8] sm:$0xff]  ;;  %v2124_v8 = vld [vmem:[#allocation7 + $0x748] sm:$0xff] }
 0x163   : > { %4970 = vmatmul.msk.f32.gmra.mxu3 %vm834_vm1, %v5997_v60  ;;  %1728 = vmatmul.f32.gmra.mxu0 %v5919_v28  ;;  %v1950_v28 = vld [vmem:[#allocation10 + $0x500] sm:$0xff] }
 0x164   : > { %1744 = vmatpush.msra.mxu2 %v1654_v42  ;;  %4974 = vmatmul.msk.f32.gmra.mxu1 %vm834_vm1, %v6028_v45  ;;  %v2127_v42 = vld [vmem:[#allocation7 + $0x760] sm:$0xff] }
 0x165   : > { %1918 = vmatpush.msrb.mxu0 %v1805_v43  ;;  %1842 = vmatpush.msra.mxu3 %v1786_v38  ;;  %v1779_v43 = vld [vmem:[#allocation7 + $0x4e8] sm:$0xff] }
 0x166   : > { %1987 = vmatpush.msrb.mxu1 %v1954_v44  ;;  %1745 = vmatpush.msra.mxu2 %v1652_v46  ;;  %v1947_v38 = vld [vmem:[#allocation10 + $0x4e8] sm:$0xff]  ;;  %v1976_v46 = vld [vmem:[#allocation10 + $0x5d0] sm:$0xff] }
 0x167   : > { %1919 = vmatpush.msrb.mxu0 %v1803_v47  ;;  %1843 = vmatpush.msra.mxu3 %v1784_v16  ;;  %v1763_v44 = vld [vmem:[#allocation2 + $0x30] sm:$0x1]  ;;  %v2125_v47 = vld [vmem:[#allocation7 + $0x750] sm:$0xff]  ;;  %v1777_v16 = vld [vmem:[#allocation7 + $0x4d8] sm:$0xff] }
 0x168   : > { %1988 = vmatpush.msrb.mxu1 %v1952_v48  ;;  %1746 = vmatpush.msra.mxu2 %v1650_v49  ;;  %v1945_v48 = vld [vmem:[#allocation10 + $0x4d8] sm:$0xff]  ;;  %v1974_v49 = vld [vmem:[#allocation10 + $0x5c0] sm:$0xff] }
 0x169   : > { %1920 = vmatpush.msrb.mxu0 %v1801_v17  ;;  %1844 = vmatpush.msra.mxu3 %v1782_v50  ;;  %v2123_v17 = vld [vmem:[#allocation7 + $0x740] sm:$0xff]  ;;  %v1827_v50 = vrot.slane %v1763_v44, 1  ;;  %v2120_v44 = vld [vmem:[#allocation7 + $0x728] sm:$0xff] }
 0x16a   : > { %1989 = vmatpush.msrb.mxu1 %v1950_v28  ;;  %1747 = vmatpush.msra.mxu2 %v1648_v51  ;;  %v1775_v28 = vld [vmem:[#allocation7 + $0x4c8] sm:$0xff] }
 0x16b   : > { %1921 = vmatpush.msrb.mxu0 %v1799_v52  ;;  %1845 = vmatpush.msra.mxu3 %v1780_v53  ;;  %v1943_v51 = vld [vmem:[#allocation10 + $0x4c8] sm:$0xff]  ;;  %v1972_v52 = vld [vmem:[#allocation10 + $0x5b0] sm:$0xff] }
 0x16c   : > { %1883 = vmatpush.msrb.mxu2 %v1797_v54  ;;  %1990 = vmatpush.msrb.mxu1 %v1948_v55  ;;  %v2121_v53 = vld [vmem:[#allocation7 + $0x730] sm:$0xff]  ;;  %v6048_v54 = vsel %vm1820_vm4, %v1822_v32, %v1827_v50  ;;  %v1773_v55 = vld [vmem:[#allocation7 + $0x4b8] sm:$0xff]  ;;  %v2273_v32 = vld [vmem:[#allocation10 + $0x6c0] sm:$0xff] }
 0x16d   : > { %2028 = vmatpush.msra.mxu0 %v1965_v59  ;;  %4971 = vmatmul.msk.f32.vlgmr.msra.gmra.mxu2 %vm834_vm1, %v5236_v56  ;;  %v1941_v59 = vld [vmem:[#allocation10 + $0x4b8] sm:$0xff]  ;;  %v1968_v56 = vld [vmem:[#allocation10 + $0x590] sm:$0xff] }
 0x16e   : > { %4975 = vmatmul.msk.f32.vlgmr.msrb.gmra.mxu0 %vm834_vm1, %v6019_v24  ;;  %1846 = vmatpush.msra.mxu3 %v1778_v61  ;;  %v1970_v61 = vld [vmem:[#allocation10 + $0x5a0] sm:$0xff] }
 0x16f   : > { %1884 = vmatpush.msrb.mxu2 %v1795_v62  ;;  %1991 = vmatpush.msrb.mxu1 %v1946_v63  ;;  %v2119_v62 = vld [vmem:[#allocation7 + $0x720] sm:$0xff]  ;;  %v1771_v63 = vld [vmem:[#allocation7 + $0x4a8] sm:$0xff] }
 0x170   : > { %2029 = vmatpush.msra.mxu0 %v1963_v0  ;;  %1847 = vmatpush.msra.mxu3 %v1776_v2  ;;  %v1939_v0 = vld [vmem:[#allocation10 + $0x4a8] sm:$0xff]  ;;  %v2099_v50 = vld [vmem:[#allocation7 + $0x680] sm:$0xff] }
 0x171   : > { %1885 = vmatpush.msrb.mxu2 %v1793_v3  ;;  %1992 = vmatpush.msrb.mxu1 %v1944_v4  ;;  %v2117_v2 = vld [vmem:[#allocation7 + $0x710] sm:$0xff]  ;;  %v1769_v3 = vld [vmem:[#allocation7 + $0x498] sm:$0xff] }
 0x172   : > { %2030 = vmatpush.msra.mxu0 %v1961_v57  ;;  %1848 = vmatpush.msra.mxu3 %v1774_v5  ;;  %v1937_v4 = vld [vmem:[#allocation10 + $0x498] sm:$0xff]  ;;  %v1966_v57 = vld [vmem:[#allocation10 + $0x580] sm:$0xff] }
 0x173   : > { %1886 = vmatpush.msrb.mxu2 %v1791_v6  ;;  %1993 = vmatpush.msrb.mxu1 %v1942_v7  ;;  %v2115_v5 = vld [vmem:[#allocation7 + $0x700] sm:$0xff]  ;;  %v1767_v6 = vld [vmem:[#allocation7 + $0x488] sm:$0xff] }
 0x174   : > { %2031 = vmatpush.msra.mxu0 %v1959_v10  ;;  %1849 = vmatpush.msra.mxu3 %v1772_v11  ;;  %v1935_v7 = vld [vmem:[#allocation10 + $0x488] sm:$0xff]  ;;  %v2279_v11 = vld [vmem:[#allocation10 + $0x6f0] sm:$0xff] }
 0x175   : > { %1887 = vmatpush.msrb.mxu2 %v1789_v37  ;;  %1994 = vmatpush.msrb.mxu1 %v1940_v12  ;;  %v2113_v10 = vld [vmem:[#allocation7 + $0x6f0] sm:$0xff]  ;;  %v2079_v37 = vld [vmem:[#allocation2 + $0x18] sm:$0xfc]  ;;  %v2140_v12 = vrot.slane %v5997_v60, 2 }
 0x176   : > { %2032 = vmatpush.msra.mxu0 %v1957_v13  ;;  %4972 = vmatmul.msk.f32.gmra.mxu2 %vm834_vm1, %v5997_v60  ;;  %v1981_v13 = vld [vmem:[#allocation10 + $0x5f8] sm:$0xff] }
 0x177   : > { %4976 = vmatmul.msk.f32.gmra.mxu0 %vm834_vm1, %v6028_v45  ;;  %1850 = vmatpush.msra.mxu3 %v1770_v15  ;;  %v2139_v15 = vrot.slane %v2079_v37, 2  ;;  %v2089_v37 = vld [vmem:[#allocation7 + $0x630] sm:$0xff] }
 0x178   : > { %1888 = vmatpush.msrb.mxu2 %v1787_v18  ;;  %1995 = vmatpush.msrb.mxu1 %v1938_v19  ;;  %v2130_v18 = vld [vmem:[#allocation7 + $0x778] sm:$0xff]  ;;  %v2111_v19 = vld [vmem:[#allocation7 + $0x6e0] sm:$0xff] }
 0x179   : > { %2033 = vmatpush.msra.mxu0 %v1955_v20  ;;  %1851 = vmatpush.msra.mxu3 %v1768_v22  ;;  %v2277_v20 = vld [vmem:[#allocation10 + $0x6e0] sm:$0xff]  ;;  %v6058_v60 = vsel %vm2135_vm5, %v2139_v15, %v2140_v12  ;;  %v1979_v22 = vld [vmem:[#allocation10 + $0x5e8] sm:$0xff]  ;;  %v2272_v15 = vld [vmem:[#allocation10 + $0x6b8] sm:$0xff] }
 0x17a   : > { %1889 = vmatpush.msrb.mxu2 %v1785_v23  ;;  %1996 = vmatpush.msrb.mxu1 %v1936_v14  ;;  %v2128_v23 = vld [vmem:[#allocation7 + $0x768] sm:$0xff]  ;;  %v2109_v14 = vld [vmem:[#allocation7 + $0x6d0] sm:$0xff] }
 0x17b   : > { %2034 = vmatpush.msra.mxu0 %v1953_v26  ;;  %1852 = vmatpush.msra.mxu3 %v1766_v30  ;;  %v2275_v26 = vld [vmem:[#allocation10 + $0x6d0] sm:$0xff] }
 0x17c   : > { %1890 = vmatpush.msrb.mxu2 %v1783_v31  ;;  %1997 = vmatpush.msrb.mxu1 %v1934_v33  ;;  %v2126_v30 = vld [vmem:[#allocation7 + $0x758] sm:$0xff]  ;;  %v2107_v31 = vld [vmem:[#allocation7 + $0x6c0] sm:$0xff]  ;;  %v2081_v33 = vld [vmem:[#allocation2 + $0x38] sm:$0x3] }
 0x17d   : > { %2035 = vmatpush.msra.mxu0 %v1951_v58  ;;  %1853 = vmatmul.f32.vlgmr.msra.gmra.mxu3 %v6043_v36  ;;  %v1975_v58 = vld [vmem:[#allocation10 + $0x5c8] sm:$0xff] }
 0x17e   : > { %1998 = vmatmul.f32.vlgmr.msrb.gmra.mxu1 %v6043_v36  ;;  %2013 = vmatpush.msrb.mxu3 %v1980_v34  ;;  %v2105_v34 = vld [vmem:[#allocation7 + $0x6b0] sm:$0xff] }
 0x17f   : > { %2183 = vmatpush.msra.mxu1 %v2129_v35  ;;  %1891 = vmatpush.msrb.mxu2 %v1781_v39  ;;  %v2271_v35 = vld [vmem:[#allocation10 + $0x6b0] sm:$0xff]  ;;  %v1973_v39 = vld [vmem:[#allocation10 + $0x5b8] sm:$0xff] }
 0x180   : > { %2036 = vmatpush.msra.mxu0 %v1949_v40  ;;  %2014 = vmatpush.msrb.mxu3 %v1978_v41  ;;  %v2122_v40 = vld [vmem:[#allocation7 + $0x738] sm:$0xff]  ;;  %v2103_v41 = vld [vmem:[#allocation7 + $0x6a0] sm:$0xff] }
 0x181   : > { %2184 = vmatpush.msra.mxu1 %v2127_v42  ;;  %1892 = vmatpush.msrb.mxu2 %v1779_v43  ;;  %v2269_v42 = vld [vmem:[#allocation10 + $0x6a0] sm:$0xff] }
 0x182   : > { %2037 = vmatpush.msra.mxu0 %v1947_v38  ;;  %2015 = vmatpush.msrb.mxu3 %v1976_v46  ;;  %v1971_v38 = vld [vmem:[#allocation10 + $0x5a8] sm:$0xff] }
 0x183   : > { %2185 = vmatpush.msra.mxu1 %v2125_v47  ;;  %1893 = vmatpush.msrb.mxu2 %v1777_v16  ;;  %v2101_v46 = vld [vmem:[#allocation7 + $0x690] sm:$0xff]  ;;  %v6071_v16 = vpop.f32.mrf.mxu2 }
 0x184   : > { %2038 = vmatpush.msra.mxu0 %v1945_v48  ;;  %2016 = vmatpush.msrb.mxu3 %v1974_v49  ;;  %v2267_v47 = vld [vmem:[#allocation10 + $0x690] sm:$0xff]  ;;  %v1969_v48 = vld [vmem:[#allocation10 + $0x598] sm:$0xff] }
 0x185   : > { %2186 = vmatpush.msra.mxu1 %v2123_v17  ;;  %1894 = vmatpush.msrb.mxu2 %v1775_v28  ;;  %v2118_v49 = vld [vmem:[#allocation7 + $0x718] sm:$0xff]  ;;  %v6073_v17 = vpop.f32.mrf.mxu3  ;;  %v2265_v28 = vld [vmem:[#allocation10 + $0x680] sm:$0xff] }
 0x186   : > { %2039 = vmatpush.msra.mxu0 %v1943_v51  ;;  %1856 = vmatmul.f32.gmra.mxu3 %v6048_v54  ;;  %v1967_v51 = vld [vmem:[#allocation10 + $0x588] sm:$0xff] }
 0x187   : > { %2001 = vmatmul.f32.gmra.mxu1 %v6048_v54  ;;  %2017 = vmatpush.msrb.mxu3 %v1972_v52  ;;  %v2116_v52 = vld [vmem:[#allocation7 + $0x708] sm:$0xff] }
 0x188   : > { %2187 = vmatpush.msra.mxu1 %v2121_v53  ;;  %1895 = vmatpush.msrb.mxu2 %v1773_v55  ;;  %v2097_v53 = vld [vmem:[#allocation7 + $0x670] sm:$0xff] }
 0x189   : > { %2040 = vmatpush.msra.mxu0 %v1941_v59  ;;  %2018 = vmatpush.msrb.mxu3 %v1970_v61  ;;  %v2263_v55 = vld [vmem:[#allocation10 + $0x670] sm:$0xff]  ;;  %v2280_v59 = vld [vmem:[#allocation10 + $0x6f8] sm:$0xff] }
 0x18a   : > { %2188 = vmatpush.msra.mxu1 %v2119_v62  ;;  %1896 = vmatpush.msrb.mxu2 %v1771_v63  ;;  %v2095_v61 = vld [vmem:[#allocation7 + $0x660] sm:$0xff]  ;;  %v2112_v62 = vld [vmem:[#allocation7 + $0x6e8] sm:$0xff] }
 0x18b   : > { %2041 = vmatpush.msra.mxu0 %v1939_v0  ;;  %2019 = vmatpush.msrb.mxu3 %v1968_v56  ;;  %v2261_v63 = vld [vmem:[#allocation10 + $0x660] sm:$0xff]  ;;  %v2278_v0 = vld [vmem:[#allocation10 + $0x6e8] sm:$0xff]  ;;  %v6075_v56 = vpop.f32.mrf.mxu2 }
 0x18c   : > { %2189 = vmatpush.msra.mxu1 %v2117_v2  ;;  %1897 = vmatpush.msrb.mxu2 %v1769_v3  ;;  %v2093_v2 = vld [vmem:[#allocation7 + $0x650] sm:$0xff]  ;;  %v2110_v3 = vld [vmem:[#allocation7 + $0x6d8] sm:$0xff] }
 0x18d   : > { %2042 = vmatpush.msra.mxu0 %v1937_v4  ;;  %2020 = vmatpush.msrb.mxu3 %v1966_v57  ;;  %v2259_v4 = vld [vmem:[#allocation10 + $0x650] sm:$0xff]  ;;  %v2276_v57 = vld [vmem:[#allocation10 + $0x6d8] sm:$0xff] }
 0x18e   : > { %2190 = vmatpush.msra.mxu1 %v2115_v5  ;;  %1898 = vmatpush.msrb.mxu2 %v1767_v6  ;;  %v2091_v5 = vld [vmem:[#allocation7 + $0x640] sm:$0xff]  ;;  %v2108_v6 = vld [vmem:[#allocation7 + $0x6c8] sm:$0xff] }
 0x18f   : > { %2043 = vmatpush.msra.mxu0 %v1935_v7  ;;  %2152 = vmatpush.msra.mxu3 %v2113_v10  ;;  %v6081_v7 = vpop.f32.mrf.mxu3  ;;  %v2257_v10 = vld [vmem:[#allocation10 + $0x640] sm:$0xff] }
 0x190   : > { %2297 = vmatpush.msrb.mxu1 %v2279_v11  ;;  %1899 = vmatmul.f32.vlgmr.msrb.gmra.mxu2 %v6043_v36  ;;  %v2274_v11 = vld [vmem:[#allocation10 + $0x6c8] sm:$0xff] }
 0x191   : > { %4977 = vmatmul.msk.f32.vlgmr.msrb.gmra.mxu3 %vm834_vm1, %v6019_v24  ;;  %2044 = vmatmul.f32.vlgmr.msra.gmra.mxu0 %v6043_v36  ;;  %v2144_v36 = vrot.slane %v2081_v33, 2  ;;  %v2083_v33 = vld [vmem:[#allocation7 + $0x600] sm:$0xff] }
 0x192   : > { %2059 = vmatpush.msra.mxu2 %v1981_v13  ;;  %4981 = vmatmul.msk.f32.vlgmr.msra.gmra.mxu1 %vm834_vm1, %v6058_v60  ;;  %v2255_v13 = vld [vmem:[#allocation10 + $0x630] sm:$0xff] }
 0x193   : > { %2229 = vmatpush.msrb.mxu0 %v2130_v18  ;;  %2153 = vmatpush.msra.mxu3 %v2111_v19  ;;  %v6067_v43 = vsel %vm2135_vm5, %v2140_v12, %v2144_v36  ;;  %v2106_v12 = vld [vmem:[#allocation7 + $0x6b8] sm:$0xff]  ;;  %v2087_v18 = vld [vmem:[#allocation7 + $0x620] sm:$0xff]  ;;  %v2104_v19 = vld [vmem:[#allocation7 + $0x6a8] sm:$0xff] }
 0x194   : > { %2298 = vmatpush.msrb.mxu1 %v2277_v20  ;;  %2060 = vmatpush.msra.mxu2 %v1979_v22  ;;  %v2253_v20 = vld [vmem:[#allocation10 + $0x620] sm:$0xff]  ;;  %v2270_v22 = vld [vmem:[#allocation10 + $0x6a8] sm:$0xff] }
 0x195   : > { %2230 = vmatpush.msrb.mxu0 %v2128_v23  ;;  %2154 = vmatpush.msra.mxu3 %v2109_v14  ;;  %v6085_v23 = vpop.f32.mrf.mxu1  ;;  %v2085_v14 = vld [vmem:[#allocation7 + $0x610] sm:$0xff] }
 0x196   : > { %2299 = vmatpush.msrb.mxu1 %v2275_v26  ;;  %2061 = vmatpush.msra.mxu2 %v1977_v27  ;;  %v2102_v26 = vld [vmem:[#allocation7 + $0x698] sm:$0xff]  ;;  %v6091_v27 = vpop.f32.mrf.mxu2 }
 0x197   : > { %2231 = vmatpush.msrb.mxu0 %v2126_v30  ;;  %2155 = vmatpush.msra.mxu3 %v2107_v31  ;;  %v2251_v30 = vld [vmem:[#allocation10 + $0x610] sm:$0xff]  ;;  %v2268_v31 = vld [vmem:[#allocation10 + $0x698] sm:$0xff] }
 0x198   : > { %2300 = vmatpush.msrb.mxu1 %v2273_v32  ;;  %2062 = vmatpush.msra.mxu2 %v1975_v58  ;;  %v2078_v32 = vld [vmem:[#allocation2 + $0x10] sm:$0xfc]  ;;  %v2100_v58 = vld [vmem:[#allocation7 + $0x688] sm:$0xff] }
 0x199   : > { %2232 = vmatpush.msrb.mxu0 %v2124_v8  ;;  %2156 = vmatpush.msra.mxu3 %v2105_v34  ;;  %v2137_v8 = vrot.slane %v6035_v21, 2  ;;  %v2266_v34 = vld [vmem:[#allocation10 + $0x688] sm:$0xff]  ;;  %v2136_v36 = vrot.slane %v2078_v32, 2  ;;  %v2264_v21 = vld [vmem:[#allocation10 + $0x678] sm:$0xff] }
 0x19a   : > { %2301 = vmatpush.msrb.mxu1 %v2271_v35  ;;  %1902 = vmatmul.f32.gmra.mxu2 %v6048_v54  ;;  %v6094_v35 = vpop.f32.mrf.mxu3 }
 0x19b   : > { %4978 = vmatmul.msk.f32.gmra.mxu3 %vm834_vm1, %v6028_v45  ;;  %2047 = vmatmul.f32.gmra.mxu0 %v6048_v54  ;;  %v2114_v54 = vld [vmem:[#allocation7 + $0x6f8] sm:$0xff] }
 0x19c   : > { %2063 = vmatpush.msra.mxu2 %v1973_v39  ;;  %4982 = vmatmul.msk.f32.gmra.mxu1 %vm834_vm1, %v6067_v43 }
 0x19d   : > { %2233 = vmatpush.msrb.mxu0 %v2122_v40  ;;  %2157 = vmatpush.msra.mxu3 %v2103_v41  ;;  %v2098_v40 = vld [vmem:[#allocation7 + $0x678] sm:$0xff] }
 0x19e   : > { %2302 = vmatpush.msrb.mxu1 %v2269_v42  ;;  %2064 = vmatpush.msra.mxu2 %v1971_v38  ;;  %v2295_v41 = vld [vmem:[#allocation10 + $0x770] sm:$0xff]  ;;  %v6099_v42 = vsel %vm2135_vm5, %v2136_v36, %v2137_v8  ;;  %v2096_v38 = vld [vmem:[#allocation7 + $0x668] sm:$0xff] }
 0x19f   : > { %2234 = vmatpush.msrb.mxu0 %v2120_v44  ;;  %2158 = vmatpush.msra.mxu3 %v2101_v46  ;;  %v2293_v44 = vld [vmem:[#allocation10 + $0x760] sm:$0xff]  ;;  %v2080_v46 = vld [vmem:[#allocation2 + $0x30] sm:$0x3] }
 0x1a0   : > { %2303 = vmatpush.msrb.mxu1 %v2267_v47  ;;  %2065 = vmatpush.msra.mxu2 %v1969_v48  ;;  %v6103_v47 = vpop.f32.mrf.mxu1  ;;  %v2262_v48 = vld [vmem:[#allocation10 + $0x668] sm:$0xff] }
 0x1a1   : > { %2235 = vmatpush.msrb.mxu0 %v2118_v49  ;;  %2159 = vmatpush.msra.mxu3 %v2099_v50  ;;  %v2094_v49 = vld [vmem:[#allocation7 + $0x658] sm:$0xff] }
 0x1a2   : > { %2304 = vmatpush.msrb.mxu1 %v2265_v28  ;;  %2066 = vmatpush.msra.mxu2 %v1967_v51  ;;  %v2291_v50 = vld [vmem:[#allocation10 + $0x750] sm:$0xff]  ;;  %v2260_v28 = vld [vmem:[#allocation10 + $0x658] sm:$0xff]  ;;  %v2142_v51 = vrot.slane %v2080_v46, 2 }
 0x1a3   : > { %2236 = vmatpush.msrb.mxu0 %v2116_v52  ;;  %2160 = vmatpush.msra.mxu3 %v2097_v53  ;;  %v6105_v52 = vpop.f32.mrf.mxu2  ;;  %v2092_v53 = vld [vmem:[#allocation7 + $0x648] sm:$0xff] }
 0x1a4   : > { %2198 = vmatpush.msrb.mxu2 %v2114_v54  ;;  %2305 = vmatpush.msrb.mxu1 %v2263_v55  ;;  %v2289_v54 = vld [vmem:[#allocation10 + $0x740] sm:$0xff]  ;;  %v2258_v55 = vld [vmem:[#allocation10 + $0x648] sm:$0xff] }
 0x1a5   : > { %2343 = vmatpush.msra.mxu0 %v2280_v59  ;;  %4979 = vmatmul.msk.f32.vlgmr.msra.gmra.mxu2 %vm834_vm1, %v6019_v24  ;;  %v6083_v24 = vpop.f32.mrf.mxu0  ;;  %v2090_v59 = vld [vmem:[#allocation7 + $0x638] sm:$0xff] }
 0x1a6   : > { %4983 = vmatmul.msk.f32.vlgmr.msrb.gmra.mxu0 %vm834_vm1, %v6058_v60  ;;  %2161 = vmatpush.msra.mxu3 %v2095_v61  ;;  %v6107_v61 = vpop.f32.mrf.mxu3 }
 0x1a7   : > { %2199 = vmatpush.msrb.mxu2 %v2112_v62  ;;  %2306 = vmatpush.msrb.mxu1 %v2261_v63  ;;  %6825 = vst [vmem:[#allocation35_spill] sm:$0xff] %v6107_v61  ;;  %v2143_v62 = vsel %vm2135_vm5, %v2137_v8, %v2142_v51  ;;  %v2287_v63 = vld [vmem:[#allocation10 + $0x730] sm:$0xff]  ;;  %v2284_v8 = vld [vmem:[#allocation10 + $0x718] sm:$0xff] }
 0x1a8   : > { %2344 = vmatpush.msra.mxu0 %v2278_v0  ;;  %2162 = vmatpush.msra.mxu3 %v2093_v2  ;;  %v2256_v0 = vld [vmem:[#allocation10 + $0x638] sm:$0xff]  ;;  %v2522_v61 = vld [vmem:[#allocation16 + $0xc8] sm:$0xff] }
 0x1a9   : > { %2200 = vmatpush.msrb.mxu2 %v2110_v3  ;;  %2307 = vmatpush.msrb.mxu1 %v2259_v4  ;;  %v2088_v3 = vld [vmem:[#allocation7 + $0x628] sm:$0xff] }
 0x1aa   : > { %2345 = vmatpush.msra.mxu0 %v2276_v57  ;;  %2163 = vmatpush.msra.mxu3 %v2091_v5  ;;  %v2285_v4 = vld [vmem:[#allocation10 + $0x720] sm:$0xff]  ;;  %v2254_v57 = vld [vmem:[#allocation10 + $0x628] sm:$0xff]  ;;  %v2086_v5 = vld [vmem:[#allocation7 + $0x618] sm:$0xff] }
 0x1ab   : > { %2201 = vmatpush.msrb.mxu2 %v2108_v6  ;;  %2308 = vmatpush.msrb.mxu1 %v2257_v10  ;;  %v6112_v6 = vpop.f32.mrf.mxu1  ;;  %v2283_v10 = vld [vmem:[#allocation10 + $0x710] sm:$0xff] }
 0x1ac   : > { %2346 = vmatpush.msra.mxu0 %v2274_v11  ;;  %2164 = vmatpush.msra.mxu3 %v2089_v37  ;;  %v2252_v11 = vld [vmem:[#allocation10 + $0x618] sm:$0xff]  ;;  %v2084_v37 = vld [vmem:[#allocation7 + $0x608] sm:$0xff] }
 0x1ad   : > { %2202 = vmatpush.msrb.mxu2 %v2106_v12  ;;  %2309 = vmatpush.msrb.mxu1 %v2255_v13  ;;  %v6096_v39 = vpop.f32.mrf.mxu0  ;;  %v2281_v12 = vld [vmem:[#allocation10 + $0x700] sm:$0xff]  ;;  %v2250_v13 = vld [vmem:[#allocation10 + $0x608] sm:$0xff] }
 0x1ae   : > { %2347 = vmatpush.msra.mxu0 %v2272_v15  ;;  %4980 = vmatmul.msk.f32.gmra.mxu2 %vm834_vm1, %v6028_v45  ;;  %v2249_v45 = vld [vmem:[#allocation10 + $0x600] sm:$0xff]  ;;  %6824 = vst [vmem:[#allocation34_spill] sm:$0xff] %v6096_v39  ;;  %v6114_v15 = vpop.f32.mrf.mxu2  ;;  %v2521_v39 = vld [vmem:[#allocation16 + $0xc0] sm:$0xff] }
 0x1af   : > { %4984 = vmatmul.msk.f32.gmra.mxu0 %vm834_vm1, %v6067_v43  ;;  %2165 = vmatpush.msra.mxu3 %v2087_v18  ;;  %6827 = vst [vmem:[#allocation37_spill] sm:$0xff] %v6114_v15  ;;  %v2296_v18 = vld [vmem:[#allocation10 + $0x778] sm:$0xff] }
 0x1b0   : > { %2203 = vmatpush.msrb.mxu2 %v2104_v19  ;;  %2310 = vmatpush.msrb.mxu1 %v2253_v20  ;;  %v6116_v19 = vpop.f32.mrf.mxu3  ;;  %v2294_v20 = vld [vmem:[#allocation10 + $0x768] sm:$0xff]  ;;  %v2519_v15 = vld [vmem:[#allocation16 + $0xb0] sm:$0xff] }
 0x1b1   : > { %2348 = vmatpush.msra.mxu0 %v2270_v22  ;;  %2166 = vmatpush.msra.mxu3 %v2085_v14  ;;  %v2292_v14 = vld [vmem:[#allocation10 + $0x758] sm:$0xff] }
 0x1b2   : > { %2204 = vmatpush.msrb.mxu2 %v2102_v26  ;;  %2311 = vmatpush.msrb.mxu1 %v2251_v30  ;;  %v2290_v30 = vld [vmem:[#allocation10 + $0x748] sm:$0xff] }
 0x1b3   : > { %2349 = vmatpush.msra.mxu0 %v2268_v31  ;;  %2167 = vmatpush.msra.mxu3 %v2083_v33  ;;  %v6124_v26 = vpop.f32.mrf.mxu1  ;;  %v2288_v31 = vld [vmem:[#allocation10 + $0x738] sm:$0xff]  ;;  %v2286_v33 = vld [vmem:[#allocation10 + $0x728] sm:$0xff] }
 0x1b4   : > { %2205 = vmatpush.msrb.mxu2 %v2100_v58  ;;  %2312 = vmatpush.msrb.mxu1 %v2249_v45 }
 0x1b5   : > { %2350 = vmatpush.msra.mxu0 %v2266_v34  ;;  %2168 = vmatmul.f32.vlgmr.msra.gmra.mxu3 %v6099_v42  ;;  %v6110_v2 = vpop.f32.mrf.mxu0  ;;  %v2282_v34 = vld [vmem:[#allocation10 + $0x708] sm:$0xff] }
 0x1b6   : > { %2313 = vmatmul.f32.vlgmr.msrb.gmra.mxu1 %v6099_v42  ;;  %2206 = vmatpush.msrb.mxu2 %v2098_v40  ;;  %6826 = vst [vmem:[#allocation36_spill] sm:$0xff] %v6110_v2  ;;  %v6126_v32 = vpop.f32.mrf.mxu2 }
 0x1b7   : > { %2328 = vmatpush.msrb.mxu3 %v2295_v41  ;;  %2351 = vmatpush.msra.mxu0 %v2264_v21  ;;  %6829 = vst [vmem:[#allocation39_spill] sm:$0xff] %v6126_v32  ;;  %v2527_v32 = vld [vmem:[#allocation16 + $0xf0] sm:$0xff] }
 0x1b8   : > { %2207 = vmatpush.msrb.mxu2 %v2096_v38  ;;  %v6130_v58 = vpop.f32.mrf.mxu3 }
 0x1b9   : > { %2329 = vmatpush.msrb.mxu3 %v2293_v44  ;;  %2352 = vmatpush.msra.mxu0 %v2262_v48 }
 0x1ba   : > { %2208 = vmatpush.msrb.mxu2 %v2094_v49 }
 0x1bb   : > { %2330 = vmatpush.msrb.mxu3 %v2291_v50  ;;  %2353 = vmatpush.msra.mxu0 %v2260_v28  ;;  %v6134_v36 = vpop.f32.mrf.mxu1 }
 0x1bc   : > { %2209 = vmatpush.msrb.mxu2 %v2092_v53 }
 0x1bd   : > { %2331 = vmatpush.msrb.mxu3 %v2289_v54  ;;  %2354 = vmatpush.msra.mxu0 %v2258_v55  ;;  %v6121_v22 = vpop.f32.mrf.mxu0 }
 0x1be   : > { %2171 = vmatmul.f32.gmra.mxu3 %v2143_v62  ;;  %2316 = vmatmul.f32.gmra.mxu1 %v2143_v62  ;;  %6828 = vst [vmem:[#allocation38_spill] sm:$0xff] %v6121_v22  ;;  %v6138_v40 = vpop.f32.mrf.mxu2 }
 0x1bf   : > { %2210 = vmatpush.msrb.mxu2 %v2090_v59  ;;  %2332 = vmatpush.msrb.mxu3 %v2287_v63 }
 0x1c0   : > { %2355 = vmatpush.msra.mxu0 %v2256_v0  ;;  %v6140_v41 = vpop.f32.mrf.mxu3 }
 0x1c1   : > { %2211 = vmatpush.msrb.mxu2 %v2088_v3  ;;  %2333 = vmatpush.msrb.mxu3 %v2285_v4 }
 0x1c2   : > { %2356 = vmatpush.msra.mxu0 %v2254_v57 }
 0x1c3   : > { %2212 = vmatpush.msrb.mxu2 %v2086_v5  ;;  %2334 = vmatpush.msrb.mxu3 %v2283_v10  ;;  %v6144_v21 = vpop.f32.mrf.mxu1 }
 0x1c4   : > { %2357 = vmatpush.msra.mxu0 %v2252_v11 }
 0x1c5   : > { %2213 = vmatpush.msrb.mxu2 %v2084_v37  ;;  %2335 = vmatpush.msrb.mxu3 %v2281_v12  ;;  %v6132_v45 = vpop.f32.mrf.mxu0 }
 0x1c6   : > { %2358 = vmatpush.msra.mxu0 %v2250_v13  ;;  %2214 = vmatmul.f32.vlgmr.msrb.gmra.mxu2 %v6099_v42  ;;  %v6148_v38 = vpop.f32.mrf.mxu2 }
 0x1c7   : > { %4985 = vmatmul.msk.f32.vlgmr.msrb.gmra.mxu3 %vm834_vm1, %v6058_v60  ;;  %2359 = vmatmul.f32.vlgmr.msra.gmra.mxu0 %v6099_v42 }
 0x1c8   : > { %2374 = vmatpush.msra.mxu2 %v2296_v18  ;;  %v6150_v44 = vpop.f32.mrf.mxu3  ;;  %2557 = vmatpush.msra.mxu3 %v2527_v32  ;;  %v1319_v32 = vadd.f32 %v6112_v6, %v6116_v19 }
 0x1ca   : > { %2375 = vmatpush.msra.mxu2 %v2294_v20 }
 0x1cb   : > { %v6154_v48 = vpop.f32.mrf.mxu1 }
 0x1cc   : > { %2376 = vmatpush.msra.mxu2 %v2292_v14 }
 0x1cd   : > { %v6142_v42 = vpop.f32.mrf.mxu0 }
 0x1ce   : > { %2377 = vmatpush.msra.mxu2 %v2290_v30 }
 0x1cf   : > { %2217 = vmatmul.f32.gmra.mxu2 %v2143_v62  ;;  %4986 = vmatmul.msk.f32.gmra.mxu3 %vm834_vm1, %v6067_v43 }
 0x1d0   : > { %2362 = vmatmul.f32.gmra.mxu0 %v2143_v62  ;;  %2378 = vmatpush.msra.mxu2 %v2288_v31  ;;  %v6158_v49 = vpop.f32.mrf.mxu3 }
 0x1d2   : > { %2379 = vmatpush.msra.mxu2 %v2286_v33 }
 0x1d3   : > { %v6162_v28 = vpop.f32.mrf.mxu1 }
 0x1d4   : > { %2380 = vmatpush.msra.mxu2 %v2284_v8 }
 0x1d5   : > { %v6152_v46 = vpop.f32.mrf.mxu0 }
 0x1d6   : > { %2381 = vmatpush.msra.mxu2 %v2282_v34 }
 0x1d7   : > { %4987 = vmatmul.msk.f32.vlgmr.msra.gmra.mxu2 %vm834_vm1, %v6058_v60  ;;  %v6156_v60 = vpop.f32.mrf.mxu2 }
 0x1d8   : > { %v6166_v53 = vpop.f32.mrf.mxu3 }
 0x1db   : > { %v1680_v54 = vpop.f32.mrf.mxu1 }
 0x1dd   : > { %v6160_v50 = vpop.f32.mrf.mxu0 }
 0x1df   : > { %4988 = vmatmul.msk.f32.gmra.mxu2 %vm834_vm1, %v6067_v43  ;;  %v6164_v51 = vpop.f32.mrf.mxu2 }
 0x1e0   : > { %v1703_v59 = vpop.f32.mrf.mxu3 }
 0x1e3   : > { %v6174_v63 = vpop.f32.mrf.mxu1 }
 0x1e5   : > { %v6168_v43 = vpop.f32.mrf.mxu0 }
 0x1e6   : > { %6830 = vst [vmem:[#allocation40_spill] sm:$0xff] %v6168_v43  ;;  %v2520_v43 = vld [vmem:[#allocation16 + $0xb8] sm:$0xff] }
 0x1e7   : > { %v6170_v55 = vpop.f32.mrf.mxu2 }
 0x1e8   : > { %6831 = vst [vmem:[#allocation41_spill] sm:$0xff] %v6170_v55  ;;  %v6178_v3 = vpop.f32.mrf.mxu3 }
 0x1eb   : > { %v6182_v57 = vpop.f32.mrf.mxu1 }
 0x1ed   : > { %v6172_v62 = vpop.f32.mrf.mxu0 }
 0x1ee   : > { %6832 = vst [vmem:[#allocation42_spill] sm:$0xff] %v6172_v62  ;;  %v2528_v62 = vld [vmem:[#allocation16 + $0xf8] sm:$0xff] }
 0x1ef   : > { %v6176_v0 = vpop.f32.mrf.mxu2  ;;  %2603 = vmatpush.msrb.mxu2 %v2528_v62 }
 0x1f0   : > { %6833 = vst [vmem:[#allocation43_spill] sm:$0xff] %v6176_v0  ;;  %v2525_v0 = vld [vmem:[#allocation16 + $0xe0] sm:$0xff] }
 0x1f1   : > { %2558 = vmatpush.msra.mxu3 %v2525_v0  ;;  %v2517_v0 = vld [vmem:[#allocation16 + $0xa0] sm:$0xff] }
 0x1f3   : > { %v6190_v37 = vpop.f32.mrf.mxu1 }
 0x1f5   : > { %v6180_v4 = vpop.f32.mrf.mxu0 }
 0x1f7   : > { %v6184_v5 = vpop.f32.mrf.mxu2 }
 0x1fb   : > { %v1999_v20 = vpop.f32.mrf.mxu1 }
 0x1fd   : > { %v6188_v11 = vpop.f32.mrf.mxu0 }
 0x1ff   : > { %v6192_v12 = vpop.f32.mrf.mxu2 }
 0x200   : > { %v6186_v10 = vpop.f32.mrf.mxu3 }
 0x204   : > { %v6202_v33 = vpop.f32.mrf.mxu1 }
 0x205   : > { %v6196_v18 = vpop.f32.mrf.mxu0 }
 0x206   : > { %6834 = vst [vmem:[#allocation44_spill] sm:$0xff] %v6196_v18  ;;  %v2524_v18 = vld [vmem:[#allocation16 + $0xd8] sm:$0xff] }
 0x209   : > { %v6194_v13 = vpop.f32.mrf.mxu3 }
 0x20d   : > { %v6200_v31 = vpop.f32.mrf.mxu0 }
 0x20e   : > { %6836 = vst [vmem:[#allocation46_spill] sm:$0xff] %v6200_v31  ;;  %v2526_v31 = vld [vmem:[#allocation16 + $0xe8] sm:$0xff] }
 0x20f   : > { %v6210_v29 = vpop.f32.mrf.mxu1  ;;  %2604 = vmatpush.msrb.mxu2 %v2526_v31  ;;  %v2518_v31 = vld [vmem:[#allocation16 + $0xa8] sm:$0xff] }
 0x211   : > { %2605 = vmatpush.msrb.mxu2 %v2524_v18  ;;  %v1388_v18 = vadd.f32 %v6134_v36, %v1319_v32  ;;  %v1322_v36 = vadd.f32 %v6124_v26, %v6130_v58  ;;  %v2512_v32 = vld [vmem:[#allocation16 + $0x78] sm:$0xff]  ;;  %v2541_v26 = vld [vmem:[#allocation16 + $0x160] sm:$0xff]  ;;  %v2542_v58 = vld [vmem:[#allocation16 + $0x168] sm:$0xff] }
 0x213   : > { %v6198_v14 = vpop.f32.mrf.mxu2  ;;  %2606 = vmatpush.msrb.mxu2 %v2522_v61  ;;  %v2516_v61 = vld [vmem:[#allocation16 + $0x98] sm:$0xff]  ;;  %v1411_v6 = vadd.f32 %v6140_v41, %v1388_v18  ;;  %v2543_v41 = vld [vmem:[#allocation16 + $0x170] sm:$0xff] }
 0x214   : > { %6835 = vst [vmem:[#allocation45_spill] sm:$0xff] %v6198_v14  ;;  %v2022_v30 = vpop.f32.mrf.mxu3  ;;  %2588 = vmatpush.msra.mxu1 %v2543_v41  ;;  %v2537_v41 = vld [vmem:[#allocation16 + $0x140] sm:$0xff] }
 0x215   : > { %v6208_v25 = vpop.f32.mrf.mxu0  ;;  %2607 = vmatpush.msrb.mxu2 %v2520_v43  ;;  %v2023_v19 = vadd.f32 %v2022_v30, %v1999_v20  ;;  %v6230_v43 = vld [vmem:[#allocation11] sm:$0x3] }
 0x216   : > { %v2544_v20 = vld [vmem:[#allocation16 + $0x178] sm:$0xff]  ;;  %2589 = vmatpush.msra.mxu1 %v2541_v26 }
 0x217   : > { %2608 = vmatpush.msrb.mxu2 %v2518_v31  ;;  %2634 = vmatpush.msrb.mxu0 %v2544_v20  ;;  %v2538_v20 = vld [vmem:[#allocation16 + $0x148] sm:$0xff] }
 0x219   : > { %v6218_v14 = vpop.f32.mrf.mxu1  ;;  %2609 = vmatpush.msrb.mxu2 %v2516_v61  ;;  %v2510_v61 = vld [vmem:[#allocation16 + $0x68] sm:$0xff]  ;;  %2635 = vmatpush.msrb.mxu0 %v2542_v58  ;;  %v2535_v58 = vld [vmem:[#allocation16 + $0x130] sm:$0xff] }
 0x21a   : > { %6838 = vst [vmem:[#allocation48_spill] sm:$0xff] %v6218_v14 }
 0x21d   : > { %v6204_v8 = vpop.f32.mrf.mxu2  ;;  %v6216_v22 = vpop.f32.mrf.mxu0 }
 0x21e   : > { %6837 = vst [vmem:[#allocation47_spill] sm:$0xff] %v6204_v8  ;;  %v6206_v34 = vpop.f32.mrf.mxu3  ;;  %v2523_v8 = vld [vmem:[#allocation16 + $0xd0] sm:$0xff] }
 0x21f   : > { %2559 = vmatpush.msra.mxu3 %v2523_v8  ;;  %v1704_v8 = vadd.f32 %v1703_v59, %v1680_v54  ;;  %v2511_v59 = vld [vmem:[#allocation16 + $0x70] sm:$0xff] }
 0x221   : > { %2560 = vmatpush.msra.mxu3 %v2521_v39  ;;  %v2515_v39 = vld [vmem:[#allocation16 + $0x90] sm:$0xff]  ;;  %v1755_v54 = vadd.f32 %v1704_v8, %v1411_v6  ;;  %v1391_v8 = vadd.f32 %v6144_v21, %v1322_v36  ;;  %v1707_v6 = vadd.f32 %v6178_v3, %v6174_v63  ;;  %v2505_v63 = vld [vmem:[#allocation16 + $0x40] sm:$0xff]  ;;  %v2506_v3 = vld [vmem:[#allocation16 + $0x48] sm:$0xff] }
 0x223   : > { %2561 = vmatpush.msra.mxu3 %v2519_v15  ;;  %v2514_v15 = vld [vmem:[#allocation16 + $0x88] sm:$0xff]  ;;  %v2074_v30 = vadd.f32 %v2023_v19, %v1755_v54  ;;  %v2507_v19 = vld [vmem:[#allocation16 + $0x50] sm:$0xff] }
 0x224   : > { %2610 = vmatpush.msrb.mxu2 %v2514_v15  ;;  %v2539_v54 = vld [vmem:[#allocation16 + $0x150] sm:$0xff] }
 0x225   : > { %2562 = vmatpush.msra.mxu3 %v2517_v0  ;;  %v6227_v2 = vpop.f32.mrf.mxu0  ;;  %2590 = vmatpush.msra.mxu1 %v2539_v54  ;;  %v2533_v54 = vld [vmem:[#allocation16 + $0x120] sm:$0xff] }
 0x226   : > { %2611 = vmatpush.msrb.mxu2 %v2512_v32  ;;  %v1414_v32 = vadd.f32 %v6150_v44, %v1391_v8  ;;  %v2536_v8 = vld [vmem:[#allocation16 + $0x138] sm:$0xff] }
 0x227   : > { %2563 = vmatpush.msra.mxu3 %v2515_v39  ;;  %v2405_v39 = vperm.slane %v6230_v43, 0  ;;  %2591 = vmatpush.msra.mxu1 %v2537_v41  ;;  %v2531_v41 = vld [vmem:[#allocation16 + $0x110] sm:$0xff] }
 0x228   : > { %v6212_v1 = vpop.f32.mrf.mxu2  ;;  %2612 = vmatpush.msrb.mxu2 %v2510_v61  ;;  %v1757_v44 = vadd.f32 %v1707_v6, %v1414_v32  ;;  %v1065_v6 = vadd.f32 %v6073_v17, %v6071_v16 }
 0x229   : > { %2592 = vmatpush.msra.mxu1 %v2535_v58  ;;  %v2069_v17 = vadd.f32 %v6212_v1, %v6208_v25  ;;  %v1368_v1 = vadd.f32 %v6142_v42, %v6148_v38  ;;  %v2700_v58 = vld [vmem:[#allocation13 + $0x178] sm:$0xff] }
 0x22b   : > { %2593 = vmatpush.msra.mxu1 %v2533_v54  ;;  %v2679_v54 = vld [vmem:[#allocation13 + $0xd0] sm:$0xff] }
 0x22d   : > { %v6245_v36 = vpop.f32.mrf.mxu0  ;;  %2594 = vmatpush.msra.mxu1 %v2531_v41  ;;  %v6279_v41 = vld [vmem:[#allocation8] sm:$0x3] }
 0x231   : > { %v6224_v55 = vpop.f32.mrf.mxu2 }
 0x233   : > { %v2314_v14 = vpop.f32.mrf.mxu1 }
 0x238   : > { %v6214_v9 = vpop.f32.mrf.mxu3 }
 0x241   : > { %v6222_v62 = vpop.f32.mrf.mxu3 }
 0x242   : > { %6839 = vst [vmem:[#allocation49_spill] sm:$0xff] %v6222_v62  ;;  %v2513_v62 = vld [vmem:[#allocation16 + $0x80] sm:$0xff] }
 0x243   : > { %2564 = vmatpush.msra.mxu3 %v2513_v62  ;;  %v2509_v62 = vld [vmem:[#allocation16 + $0x60] sm:$0xff] }
 0x245   : > { %2565 = vmatpush.msra.mxu3 %v2511_v59  ;;  %v2540_v59 = vld [vmem:[#allocation16 + $0x158] sm:$0xff] }
 0x246   : > { %2636 = vmatpush.msrb.mxu0 %v2540_v59  ;;  %v2534_v59 = vld [vmem:[#allocation16 + $0x128] sm:$0xff] }
 0x247   : > { %2566 = vmatpush.msra.mxu3 %v2509_v62 }
 0x248   : > { %2637 = vmatpush.msrb.mxu0 %v2538_v20  ;;  %v2532_v20 = vld [vmem:[#allocation16 + $0x118] sm:$0xff] }
 0x249   : > { %v6234_v0 = vpop.f32.mrf.mxu2  ;;  %2567 = vmatpush.msra.mxu3 %v2507_v19 }
 0x24a   : > { %v2337_v31 = vpop.f32.mrf.mxu3  ;;  %2638 = vmatpush.msrb.mxu0 %v2536_v8  ;;  %v2681_v8 = vld [vmem:[#allocation13 + $0xe0] sm:$0xff] }
 0x24b   : > { %v2338_v18 = vadd.f32 %v2337_v31, %v2314_v14  ;;  %v2508_v14 = vld [vmem:[#allocation16 + $0x58] sm:$0xff]  ;;  %v2026_v31 = vadd.f32 %v6206_v34, %v6202_v33  ;;  %2568 = vmatpush.msra.mxu3 %v2505_v63  ;;  %v2503_v33 = vld [vmem:[#allocation16 + $0x30] sm:$0xff] }
 0x24c   : > { %2613 = vmatpush.msrb.mxu2 %v2508_v14  ;;  %v2504_v34 = vld [vmem:[#allocation16 + $0x38] sm:$0xff]  ;;  %2639 = vmatpush.msrb.mxu0 %v2534_v59  ;;  %v2499_v63 = vld [vmem:[#allocation16 + $0x10] sm:$0xff] }
 0x24d   : > { %v2389_v15 = vadd.f32 %v2338_v18, %v2074_v30  ;;  %v1365_v30 = vadd.f32 %v6132_v45, %v6138_v40  ;;  %v2317_v18 = vpop.f32.mrf.mxu1  ;;  %2569 = vmatpush.msra.mxu3 %v2503_v33  ;;  %v2501_v45 = vld [vmem:[#allocation16 + $0x20] sm:$0xff]  ;;  %v2502_v40 = vld [vmem:[#allocation16 + $0x28] sm:$0xff] }
 0x24e   : > { %2614 = vmatpush.msrb.mxu2 %v2506_v3  ;;  %v2500_v3 = vld [vmem:[#allocation16 + $0x18] sm:$0xff]  ;;  %2640 = vmatpush.msrb.mxu0 %v2532_v20  ;;  %v2683_v33 = vld [vmem:[#allocation13 + $0xf0] sm:$0xff] }
 0x24f   : > { %v2409_v21 = vadd.f32 %v2405_v39, %v2389_v15  ;;  %v2076_v15 = vadd.f32 %v2026_v31, %v1757_v44  ;;  %2570 = vmatpush.msra.mxu3 %v2501_v45  ;;  %v1434_v32 = vadd.f32 %v6152_v46, %v1365_v30  ;;  %v2529_v30 = vld [vmem:[#allocation16 + $0x100] sm:$0xff]  ;;  %v1155_v44 = vadd.f32 %v6085_v23, %v1065_v6  ;;  %v2695_v59 = vld [vmem:[#allocation13 + $0x150] sm:$0xff] }
 0x250   : > { %2615 = vmatpush.msrb.mxu2 %v2504_v34  ;;  %v2699_v34 = vld [vmem:[#allocation13 + $0x170] sm:$0xff]  ;;  %2595 = vmatpush.msra.mxu1 %v2529_v30  ;;  %v2406_v6 = vperm.slane %v6230_v43, 1 }
 0x251   : > { %v2417_v62 = vsub.f32 0.0, %v2409_v21  ;;  %v1750_v21 = vadd.f32 %v6184_v5, %v6180_v4  ;;  %2571 = vmatpush.msra.mxu3 %v2499_v63  ;;  %v1457_v16 = vadd.f32 %v6156_v60, %v1434_v32  ;;  %v2497_v4 = vld [vmem:[#allocation16] sm:$0xff]  ;;  %v2498_v5 = vld [vmem:[#allocation16 + $0x8] sm:$0xff]  ;;  %v1178_v23 = vadd.f32 %v6091_v27, %v1155_v44 }
 0x252   : > { %v6249_v61 = vpop.f32.mrf.mxu2  ;;  %v2340_v26 = vpop.f32.mrf.mxu3  ;;  %2616 = vmatpush.msrb.mxu2 %v2502_v40  ;;  %v2530_v60 = vld [vmem:[#allocation16 + $0x108] sm:$0xff]  ;;  %2707 = vmatpush.msrb.mxu1 %v2683_v33  ;;  %v1068_v27 = vadd.f32 %v6081_v7, %v6075_v56  ;;  %v1437_v63 = vadd.f32 %v6160_v50, %v1368_v1  ;;  %v2677_v56 = vld [vmem:[#allocation13 + $0xc0] sm:$0xff]  ;;  %v2395_v44 = vperm.slane %v6279_v41, 0  ;;  %v1111_v33 = vadd.f32 %v6083_v24, %v6094_v35 }
 0x253   : > { %v2421_v19 = vmul.f32 1.442695, %v2417_v62  ;;  %v2341_v14 = vadd.f32 %v2340_v26, %v2317_v18  ;;  %v1559_v18 = vadd.f32 %v6154_v48, %v6158_v49  ;;  %v2360_v62 = vpop.f32.mrf.mxu0  ;;  %2572 = vmatpush.msra.mxu3 %v2497_v4  ;;  %v1756_v25 = vadd.f32 %v1750_v21, %v1457_v16  ;;  %2641 = vmatpush.msrb.mxu0 %v2530_v60  ;;  %v2684_v26 = vld [vmem:[#allocation13 + $0xf8] sm:$0xff]  ;;  %v2693_v7 = vld [vmem:[#allocation13 + $0x140] sm:$0xff]  ;;  %v2694_v16 = vld [vmem:[#allocation13 + $0x148] sm:$0xff] }
 0x254   : > { %2617 = vmatpush.msrb.mxu2 %v2500_v3  ;;  %v1878_v48 = vadd.f32 %v6182_v57, %v6186_v10  ;;  %v2193_v10 = vadd.f32 %v6210_v29, %v6214_v9  ;;  %2708 = vmatpush.msrb.mxu1 %v2681_v8  ;;  %v2680_v21 = vld [vmem:[#allocation13 + $0xd8] sm:$0xff]  ;;  %v1753_v3 = vadd.f32 %v6192_v12, %v6188_v11  ;;  %v2678_v29 = vld [vmem:[#allocation13 + $0xc8] sm:$0xff]  ;;  %v2689_v60 = vld [vmem:[#allocation13 + $0x120] sm:$0xff] }
 0x255   : > { %5188 = vpow2.f32 %v2421_v19  ;;  %v2391_v31 = vadd.f32 %v2341_v14, %v2076_v15  ;;  %2738 = vmatpush.msrb.mxu3 %v2699_v34  ;;  %v2697_v15 = vld [vmem:[#allocation13 + $0x160] sm:$0xff]  ;;  %v2682_v19 = vld [vmem:[#allocation13 + $0xe8] sm:$0xff]  ;;  %v2075_v42 = vadd.f32 %v2069_v17, %v1756_v25  ;;  %2753 = vmatpush.msra.mxu0 %v2684_v26  ;;  %v1610_v57 = vadd.f32 %v1559_v18, %v1178_v23  ;;  %v2675_v17 = vld [vmem:[#allocation13 + $0xb0] sm:$0xff] }
 0x256   : > { %2618 = vmatpush.msrb.mxu2 %v2498_v5  ;;  %v2698_v14 = vld [vmem:[#allocation13 + $0x168] sm:$0xff]  ;;  %2709 = vmatpush.msrb.mxu1 %v2679_v54  ;;  %v1460_v50 = vadd.f32 %v6164_v51, %v1437_v63  ;;  %v2072_v11 = vadd.f32 %v6224_v55, %v6216_v22  ;;  %v1158_v4 = vadd.f32 %v6103_v47, %v1068_v27  ;;  %v2676_v51 = vld [vmem:[#allocation13 + $0xb8] sm:$0xff]  ;;  %v2671_v23 = vld [vmem:[#allocation13 + $0x90] sm:$0xff] }
 0x257   : > { %v2411_v46 = vadd.f32 %v2405_v39, %v2391_v31  ;;  %2739 = vmatpush.msrb.mxu3 %v2697_v15  ;;  %v2696_v31 = vld [vmem:[#allocation13 + $0x158] sm:$0xff]  ;;  %2754 = vmatpush.msra.mxu0 %v2682_v19  ;;  %v1929_v9 = vadd.f32 %v1878_v48, %v1610_v57  ;;  %v1562_v5 = vadd.f32 %v6162_v28, %v6166_v53  ;;  %v2674_v1 = vld [vmem:[#allocation13 + $0xa8] sm:$0xff]  ;;  %v2687_v48 = vld [vmem:[#allocation13 + $0x110] sm:$0xff] }
 0x258   : > { %2784 = vmatpush.msra.mxu2 %v2700_v58  ;;  %2710 = vmatpush.msrb.mxu1 %v2677_v56  ;;  %v2692_v18 = vld [vmem:[#allocation13 + $0x138] sm:$0xff]  ;;  %v1758_v22 = vadd.f32 %v1753_v3, %v1460_v50  ;;  %v1181_v47 = vadd.f32 %v6105_v52, %v1158_v4  ;;  %v1881_v28 = vadd.f32 %v6190_v37, %v6194_v13  ;;  %v2690_v25 = vld [vmem:[#allocation13 + $0x128] sm:$0xff]  ;;  %v2667_v56 = vld [vmem:[#allocation13 + $0x70] sm:$0xff] }
 0x259   : > { %v2419_v39 = vsub.f32 0.0, %v2411_v46  ;;  %2740 = vmatpush.msrb.mxu3 %v2695_v59  ;;  %2755 = vmatpush.msra.mxu0 %v2680_v21  ;;  %v2691_v46 = vld [vmem:[#allocation13 + $0x130] sm:$0xff]  ;;  %v2244_v30 = vadd.f32 %v2193_v10, %v1929_v9  ;;  %v6840_v37 = vld [vmem:[#allocation49_spill] sm:$0xff]  ;;  %v6841_v13 = vld [vmem:[#allocation48_spill] sm:$0xff] }
 0x25a   : > { %v2383_v49 = vpop.f32.mrf.mxu2  ;;  %2785 = vmatpush.msra.mxu2 %v2698_v14  ;;  %2711 = vmatpush.msrb.mxu1 %v2675_v17  ;;  %v2077_v26 = vadd.f32 %v2072_v11, %v1758_v22  ;;  %v1612_v35 = vadd.f32 %v1562_v5, %v1181_v47  ;;  %v2672_v19 = vld [vmem:[#allocation13 + $0x98] sm:$0xff]  ;;  %v2670_v57 = vld [vmem:[#allocation13 + $0x88] sm:$0xff] }
 0x25b   : > { %v5189_v45 = vpop.eup %5188  ;;  %v2425_v38 = vmul.f32 1.442695, %v2419_v39  ;;  %v2384_v40 = vadd.f32 %v2383_v49, %v2360_v62  ;;  %2741 = vmatpush.msrb.mxu3 %v2693_v7  ;;  %2756 = vmatpush.msra.mxu0 %v2678_v29  ;;  %v2673_v62 = vld [vmem:[#allocation13 + $0xa0] sm:$0xff]  ;;  %v2363_v53 = vpop.f32.mrf.mxu0  ;;  %v2399_v52 = vadd.f32 %v2395_v44, %v2244_v30  ;;  %v2196_v49 = vadd.f32 %v6841_v13, %v6840_v37  ;;  %v2688_v14 = vld [vmem:[#allocation13 + $0x118] sm:$0xff]  ;;  %v2686_v10 = vld [vmem:[#allocation13 + $0x108] sm:$0xff] }
 0x25c   : > { %v6274_v32 = vadd.f32 1.0, %v5189_v45  ;;  %2786 = vmatpush.msra.mxu2 %v2696_v31  ;;  %2712 = vmatpush.msrb.mxu1 %v2673_v62  ;;  %v6842_v54 = vld [vmem:[#allocation36_spill] sm:$0xff]  ;;  %v1931_v27 = vadd.f32 %v1881_v28, %v1612_v35  ;;  %v6843_v21 = vld [vmem:[#allocation41_spill] sm:$0xff]  ;;  %v6846_v17 = vld [vmem:[#allocation35_spill] sm:$0xff] }
 0x25d   : > { %5190 = vpow2.f32 %v2425_v38  ;;  %v2390_v20 = vadd.f32 %v2384_v40, %v2075_v42  ;;  %2742 = vmatpush.msrb.mxu3 %v2691_v46  ;;  %2757 = vmatpush.msra.mxu0 %v2676_v51  ;;  %v2669_v38 = vld [vmem:[#allocation13 + $0x80] sm:$0xff]  ;;  %v1201_v59 = vadd.f32 %v6842_v54, %v1111_v33  ;;  %v2668_v50 = vld [vmem:[#allocation13 + $0x78] sm:$0xff]  ;;  %v6847_v46 = vld [vmem:[#allocation34_spill] sm:$0xff] }
 0x25e   : > { %5192 = vrcp.f32 %v6274_v32  ;;  %2787 = vmatpush.msra.mxu2 %v2694_v16  ;;  %v2685_v40 = vld [vmem:[#allocation13 + $0x100] sm:$0xff]  ;;  %2713 = vmatpush.msrb.mxu1 %v2671_v23  ;;  %v2246_v29 = vadd.f32 %v2196_v49, %v1931_v27  ;;  %v2444_v16 = vand.u32 2147483648, %v6274_v32  ;;  %v2442_v43 = vand.u32 2147483647, %v6274_v32  ;;  %v2663_v33 = vld [vmem:[#allocation13 + $0x50] sm:$0xff]  ;;  %v2662_v37 = vld [vmem:[#allocation13 + $0x48] sm:$0xff] }
 0x25f   : > { %v2410_v12 = vadd.f32 %v2406_v6, %v2390_v20  ;;  %2743 = vmatpush.msrb.mxu3 %v2689_v60  ;;  %2758 = vmatpush.msra.mxu0 %v2674_v1  ;;  %v6844_v31 = vld [vmem:[#allocation40_spill] sm:$0xff]  ;;  %v6845_v7 = vld [vmem:[#allocation37_spill] sm:$0xff]  ;;  %v1114_v4 = vadd.f32 %v6847_v46, %v6846_v17  ;;  %vm2438_vm7 = vweird.f32 %v6274_v32  ;;  %v6851_v23 = vld [vmem:[#allocation43_spill] sm:$0xff] }
 0x260   : > { %2788 = vmatpush.msra.mxu2 %v2692_v18  ;;  %v1605_v63 = vadd.f32 %v6844_v31, %v6843_v21  ;;  %v1224_v9 = vadd.f32 %v6845_v7, %v1201_v59  ;;  %2714 = vmatpush.msrb.mxu1 %v2669_v38  ;;  %v6848_v5 = vld [vmem:[#allocation45_spill] sm:$0xff]  ;;  %v6849_v30 = vld [vmem:[#allocation44_spill] sm:$0xff]  ;;  %v2401_v28 = vadd.f32 %v2395_v44, %v2246_v29  ;;  %v2445_v1 = vor.u32 1.1754944e-38, %v2444_v16  ;;  %v2659_v13 = vld [vmem:[#allocation13 + $0x30] sm:$0xff] }
 0x261   : > { %v2418_v55 = vsub.f32 0.0, %v2410_v12  ;;  %2744 = vmatpush.msrb.mxu3 %v2687_v48  ;;  %2759 = vmatpush.msra.mxu0 %v2672_v19  ;;  %v1924_v51 = vadd.f32 %v6849_v30, %v6848_v5  ;;  %v2666_v18 = vld [vmem:[#allocation13 + $0x68] sm:$0xff]  ;;  %vm2443_vm9 = vcmp.eq.f32.partialorder %v2442_v43, 8.507059e+37  ;;  %v2661_v44 = vld [vmem:[#allocation13 + $0x40] sm:$0xff]  ;;  %v2396_v19 = vperm.slane %v6279_v41, 1  ;;  %v2660_v54 = vld [vmem:[#allocation13 + $0x38] sm:$0xff] }
 0x262   : > { %v2386_v34 = vpop.f32.mrf.mxu2  ;;  %2789 = vmatpush.msra.mxu2 %v2690_v25  ;;  %2715 = vmatpush.msrb.mxu1 %v2667_v56  ;;  %v2664_v25 = vld [vmem:[#allocation13 + $0x58] sm:$0xff]  ;;  %v6852_v48 = vld [vmem:[#allocation42_spill] sm:$0xff]  ;;  %v2657_v59 = vld [vmem:[#allocation13 + $0x20] sm:$0xff]  ;;  %v2242_v7 = vadd.f32 %v6245_v36, %v6249_v61 }
 0x263   : > { %v5191_v39 = vpop.eup %5190  ;;  %v2423_v58 = vmul.f32 1.442695, %v2418_v55  ;;  %v2387_v8 = vadd.f32 %v2386_v34, %v2363_v53  ;;  %2745 = vmatpush.msrb.mxu3 %v2685_v40  ;;  %2760 = vmatpush.msra.mxu0 %v2670_v57  ;;  %v1611_v55 = vadd.f32 %v1605_v63, %v1224_v9  ;;  %v2239_v53 = vadd.f32 %v6227_v2, %v6234_v0  ;;  %v6850_v0 = vld [vmem:[#allocation38_spill] sm:$0xff]  ;;  %v6854_v27 = vld [vmem:[#allocation47_spill] sm:$0xff] }
 0x264   : > { %v6296_v24 = vpop.eup %5192  ;;  %v6302_v15 = vadd.f32 1.0, %v5191_v39  ;;  %2790 = vmatpush.msra.mxu2 %v2688_v14  ;;  %v1608_v35 = vadd.f32 %v6852_v48, %v6851_v23  ;;  %v6855_v57 = vld [vmem:[#allocation46_spill] sm:$0xff] }
 0x265   : > { %5194 = vpow2.f32 %v2423_v58  ;;  %v2392_v45 = vadd.f32 %v2387_v8, %v2077_v26  ;;  %v2434_v42 = vmul.f32 %v6296_v24, %v6274_v32  ;;  %vm2439_vm6 = vweird.f32 %v6296_v24  ;;  %2761 = vmatpush.msra.mxu0 %v2668_v50  ;;  %v2658_v63 = vld [vmem:[#allocation13 + $0x28] sm:$0xff]  ;;  %v2967_v48 = vld [vmem:[#allocation7 + $0xa78] sm:$0xff] }
 0x266   : > { %5196 = vrcp.f32 %v6302_v15  ;;  %2791 = vmatpush.msra.mxu2 %v2686_v10  ;;  %vm2440_vm8 = vmor %vm2438_vm7, %vm2439_vm6  ;;  %v1930_v58 = vadd.f32 %v1924_v51, %v1611_v55  ;;  %v1204_v8 = vadd.f32 %v6850_v0, %v1114_v4  ;;  %v2474_v14 = vand.u32 2147483648, %v6302_v15  ;;  %v2654_v17 = vld [vmem:[#allocation13 + $0x8] sm:$0xff] }
 0x267   : > { %v2412_v3 = vadd.f32 %v2406_v6, %v2392_v45  ;;  %v2435_v20 = vsub.f32 1.0, %v2434_v42  ;;  %5198 = vtanh.f32 %v2399_v52  ;;  %v2665_v6 = vld [vmem:[#allocation13 + $0x60] sm:$0xff]  ;;  %2762 = vmatpush.msra.mxu0 %v2666_v18  ;;  %v6853_v45 = vld [vmem:[#allocation39_spill] sm:$0xff]  ;;  %v2472_v40 = vand.u32 2147483647, %v6302_v15  ;;  %v2950_v0 = vld [vmem:[#allocation7 + $0x9f0] sm:$0xff] }
 0x268   : > { %2716 = vmatpush.msrb.mxu1 %v2665_v6  ;;  %v2245_v49 = vadd.f32 %v2239_v53, %v1930_v58  ;;  %v1227_v42 = vadd.f32 %v6853_v45, %v1204_v8  ;;  %v1927_v41 = vadd.f32 %v6855_v57, %v6854_v27  ;;  %vm2468_vm11 = vweird.f32 %v6302_v15  ;;  %v2951_v8 = vld [vmem:[#allocation7 + $0x9f8] sm:$0xff]  ;;  %v2966_v23 = vld [vmem:[#allocation7 + $0xa70] sm:$0xff]  ;;  %v2944_v45 = vld [vmem:[#allocation7 + $0x9c0] sm:$0xff] }
 0x269   : > { %v2420_v11 = vsub.f32 0.0, %v2412_v3  ;;  %v2436_v12 = vmul.f32 %v6296_v24, %v2435_v20  ;;  %2763 = vmatpush.msra.mxu0 %v2664_v25  ;;  %v2655_v3 = vld [vmem:[#allocation13 + $0x10] sm:$0xff]  ;;  %v2475_v29 = vor.u32 1.1754944e-38, %v2474_v14  ;;  %vm2473_vm13 = vcmp.eq.f32.partialorder %v2472_v40, 8.507059e+37  ;;  %v2962_v14 = vld [vmem:[#allocation7 + $0xa50] sm:$0xff]  ;;  %v2961_v40 = vld [vmem:[#allocation7 + $0xa48] sm:$0xff] }
 0x26a   : > { %2717 = vmatpush.msrb.mxu1 %v2663_v33  ;;  %v1613_v21 = vadd.f32 %v1608_v35, %v1227_v42  ;;  %v2400_v56 = vadd.f32 %v2396_v19, %v2245_v49  ;;  %v2948_v35 = vld [vmem:[#allocation7 + $0x9e0] sm:$0xff]  ;;  %v2946_v49 = vld [vmem:[#allocation7 + $0x9d0] sm:$0xff]  ;;  %v2945_v42 = vld [vmem:[#allocation7 + $0x9c8] sm:$0xff] }
 0x26b   : > { %v5195_v22 = vpop.eup %5194  ;;  %v2427_v62 = vmul.f32 1.442695, %v2420_v11  ;;  %v2437_v60 = vadd.f32 %v6296_v24, %v2436_v12  ;;  %2764 = vmatpush.msra.mxu0 %v2662_v37  ;;  %v2653_v11 = vld [vmem:[#allocation13] sm:$0xff]  ;;  %v2964_v37 = vld [vmem:[#allocation7 + $0xa60] sm:$0xff]  ;;  %v2958_v27 = vld [vmem:[#allocation7 + $0xa30] sm:$0xff] }
 0x26c   : > { %v6323_v47 = vpop.eup %5196  ;;  %v6329_v34 = vadd.f32 1.0, %v5195_v22  ;;  %2718 = vmatpush.msrb.mxu1 %v2661_v44  ;;  %v1932_v43 = vadd.f32 %v1927_v41, %v1613_v21  ;;  %v2959_v57 = vld [vmem:[#allocation7 + $0xa38] sm:$0xff]  ;;  %v2940_v41 = vld [vmem:[#allocation7 + $0x9a0] sm:$0xff] }
 0x26d   : > { %5200 = vpow2.f32 %v2427_v62  ;;  %v2441_v32 = vsel %vm2440_vm8, %v6296_v24, %v2437_v60  ;;  %v2464_v39 = vmul.f32 %v6323_v47, %v6302_v15  ;;  %v5199_v26 = vpop.eup %5198  ;;  %vm2469_vm10 = vweird.f32 %v6323_v47  ;;  %2765 = vmatpush.msra.mxu0 %v2660_v54  ;;  %v2656_v15 = vld [vmem:[#allocation13 + $0x18] sm:$0xff]  ;;  %v2942_v54 = vld [vmem:[#allocation7 + $0x9b0] sm:$0xff] }
 0x26e   : > { %5202 = vrcp.f32 %v6329_v34  ;;  %v2446_v2 = vsel %vm2443_vm9, %v2445_v1, %v2441_v32  ;;  %2719 = vmatpush.msrb.mxu1 %v2659_v13  ;;  %vm2470_vm12 = vmor %vm2468_vm11, %vm2469_vm10  ;;  %v2247_v46 = vadd.f32 %v2242_v7, %v1932_v43  ;;  %v2459_v4 = vand.u32 2147483648, %v6329_v34  ;;  %v2965_v13 = vld [vmem:[#allocation7 + $0xa68] sm:$0xff]  ;;  %v2956_v21 = vld [vmem:[#allocation7 + $0xa20] sm:$0xff] }
 0x26f   : > { %v6340_v52 = vmul.f32 %v5199_v26, %v2446_v2  ;;  %v2465_v24 = vsub.f32 1.0, %v2464_v39  ;;  %5204 = vtanh.f32 %v2401_v28  ;;  %2766 = vmatpush.msra.mxu0 %v2658_v63  ;;  %v2457_v30 = vand.u32 2147483647, %v6329_v34  ;;  %v2938_v63 = vld [vmem:[#allocation7 + $0x990] sm:$0xff]  ;;  %v2936_v7 = vld [vmem:[#allocation7 + $0x980] sm:$0xff] }
 0x270   : > { %2720 = vmatpush.msrb.mxu1 %v2657_v59  ;;  %vm2453_vm15 = vweird.f32 %v6329_v34  ;;  %v2402_v22 = vadd.f32 %v2396_v19, %v2247_v46  ;;  %v2460_v55 = vor.u32 1.1754944e-38, %v2459_v4  ;;  %v2947_v19 = vld [vmem:[#allocation7 + $0x9d8] sm:$0xff]  ;;  %v2932_v43 = vld [vmem:[#allocation7 + $0x960] sm:$0xff]  ;;  %v2844_v4 = vld [vmem:[#allocation7 + $0x850] sm:$0xff] }
 0x271   : > { %2573 = vmatmul.f32.vlgmr.msra.gmra.mxu3 %v6340_v52  ;;  %2619 = vmatmul.f32.vlgmr.msrb.gmra.mxu2 %v6340_v52  ;;  %v2466_v38 = vmul.f32 %v6323_v47, %v2465_v24  ;;  %vm2458_vm7 = vcmp.eq.f32.partialorder %v2457_v30, 8.507059e+37  ;;  %v2949_v24 = vld [vmem:[#allocation7 + $0x9e8] sm:$0xff]  ;;  %v2943_v59 = vld [vmem:[#allocation7 + $0x9b8] sm:$0xff]  ;;  %v2928_v30 = vld [vmem:[#allocation7 + $0x940] sm:$0xff] }
 0x272   : > { %2721 = vmatpush.msrb.mxu1 %v2655_v3  ;;  %2767 = vmatpush.msra.mxu0 %v2656_v15  ;;  %v2939_v3 = vld [vmem:[#allocation7 + $0x998] sm:$0xff] }
 0x273   : > { %v5201_v10 = vpop.eup %5200  ;;  %v2467_v31 = vadd.f32 %v6323_v47, %v2466_v38  ;;  %2990 = vmatpush.msra.mxu3 %v2950_v0  ;;  %3036 = vmatpush.msrb.mxu2 %v2951_v8  ;;  %v2960_v38 = vld [vmem:[#allocation7 + $0xa40] sm:$0xff]  ;;  %v2935_v15 = vld [vmem:[#allocation7 + $0x978] sm:$0xff]  ;;  %v2860_v0 = vld [vmem:[#allocation7 + $0x8d0] sm:$0xff] }
 0x274   : > { %v5203_v20 = vpop.eup %5202  ;;  %v2432_v9 = vadd.f32 1.0, %v5201_v10  ;;  %2722 = vmatpush.msrb.mxu1 %v2653_v11  ;;  %2768 = vmatpush.msra.mxu0 %v2654_v17  ;;  %v2941_v10 = vld [vmem:[#allocation7 + $0x9a8] sm:$0xff]  ;;  %v2848_v11 = vld [vmem:[#allocation7 + $0x870] sm:$0xff]  ;;  %v2931_v46 = vld [vmem:[#allocation7 + $0x958] sm:$0xff] }
 0x275   : > { %v2449_v16 = vmul.f32 %v5203_v20, %v6329_v34  ;;  %v2471_v50 = vsel %vm2470_vm12, %v6323_v47, %v2467_v31  ;;  %v5205_v12 = vpop.eup %5204  ;;  %vm2454_vm14 = vweird.f32 %v5203_v20  ;;  %2991 = vmatpush.msra.mxu3 %v2948_v35  ;;  %3037 = vmatpush.msrb.mxu2 %v2949_v24  ;;  %v2957_v31 = vld [vmem:[#allocation7 + $0xa28] sm:$0xff]  ;;  %v2930_v17 = vld [vmem:[#allocation7 + $0x950] sm:$0xff]  ;;  %v2861_v8 = vld [vmem:[#allocation7 + $0x8d8] sm:$0xff] }
 0x276   : > { %5206 = vrcp.f32 %v2432_v9  ;;  %v2476_v6 = vsel %vm2473_vm13, %v2475_v29, %v2471_v50  ;;  %vm2455_vm6 = vmor %vm2453_vm15, %vm2454_vm14  ;;  %v2489_v1 = vand.u32 2147483648, %v2432_v9  ;;  %v2487_v34 = vand.u32 2147483647, %v2432_v9  ;;  %v2952_v29 = vld [vmem:[#allocation7 + $0xa00] sm:$0xff]  ;;  %v2934_v50 = vld [vmem:[#allocation7 + $0x970] sm:$0xff] }
 0x277   : > { %v2450_v36 = vsub.f32 1.0, %v2449_v16  ;;  %v2495_v61 = vmul.f32 %v5205_v12, %v2476_v6  ;;  %5208 = vtanh.f32 %v2400_v56  ;;  %vm2483_vm9 = vweird.f32 %v2432_v9  ;;  %2992 = vmatpush.msra.mxu3 %v2946_v49  ;;  %3038 = vmatpush.msrb.mxu2 %v2947_v19  ;;  %v2955_v56 = vld [vmem:[#allocation7 + $0xa18] sm:$0xff]  ;;  %v2953_v16 = vld [vmem:[#allocation7 + $0xa08] sm:$0xff]  ;;  %v2834_v35 = vld [vmem:[#allocation7 + $0x800] sm:$0xff] }
 0x278   : > { %5210 = vtanh.f32 %v2402_v22  ;;  %v2490_v39 = vor.u32 1.1754944e-38, %v2489_v1  ;;  %vm2488_vm11 = vcmp.eq.f32.partialorder %v2487_v34, 8.507059e+37  ;;  %v2849_v12 = vld [vmem:[#allocation7 + $0x878] sm:$0xff]  ;;  %v2933_v6 = vld [vmem:[#allocation7 + $0x968] sm:$0xff] }
 0x279   : > { %2576 = vmatmul.f32.gmra.mxu3 %v2495_v61  ;;  %2622 = vmatmul.f32.gmra.mxu2 %v2495_v61  ;;  %v2451_v5 = vmul.f32 %v5203_v20, %v2450_v36  ;;  %v2846_v36 = vld [vmem:[#allocation7 + $0x860] sm:$0xff]  ;;  %v2843_v22 = vld [vmem:[#allocation7 + $0x848] sm:$0xff]  ;;  %v2923_v1 = vld [vmem:[#allocation7 + $0x918] sm:$0xff] }
 0x27a   : > { %2993 = vmatpush.msra.mxu3 %v2944_v45  ;;  %3039 = vmatpush.msrb.mxu2 %v2945_v42  ;;  %v2921_v34 = vld [vmem:[#allocation7 + $0x908] sm:$0xff]  ;;  %v2833_v19 = vld [vmem:[#allocation7 + $0x7f8] sm:$0xff]  ;;  %v2856_v45 = vld [vmem:[#allocation7 + $0x8b0] sm:$0xff] }
 0x27b   : > { %v2452_v51 = vadd.f32 %v5203_v20, %v2451_v5  ;;  %v2845_v5 = vld [vmem:[#allocation7 + $0x858] sm:$0xff]  ;;  %v2835_v24 = vld [vmem:[#allocation7 + $0x808] sm:$0xff] }
 0x27c   : > { %v5207_v18 = vpop.eup %5206  ;;  %2994 = vmatpush.msra.mxu3 %v2942_v54  ;;  %3040 = vmatpush.msrb.mxu2 %v2943_v59  ;;  %v2857_v42 = vld [vmem:[#allocation7 + $0x8b8] sm:$0xff]  ;;  %v2830_v54 = vld [vmem:[#allocation7 + $0x7e0] sm:$0xff]  ;;  %v2831_v59 = vld [vmem:[#allocation7 + $0x7e8] sm:$0xff] }
 0x27d   : > { %v2456_v62 = vsel %vm2455_vm6, %v5203_v20, %v2452_v51  ;;  %v2479_v60 = vmul.f32 %v5207_v18, %v2432_v9  ;;  %v5209_v33 = vpop.eup %5208  ;;  %vm2484_vm8 = vweird.f32 %v5207_v18  ;;  %v2954_v20 = vld [vmem:[#allocation7 + $0xa10] sm:$0xff]  ;;  %v2937_v9 = vld [vmem:[#allocation7 + $0x988] sm:$0xff] }
 0x27e   : > { %v2461_v47 = vsel %vm2458_vm7, %v2460_v55, %v2456_v62  ;;  %vm2485_vm10 = vmor %vm2483_vm9, %vm2484_vm8  ;;  %v5211_v26 = vpop.eup %5210  ;;  %2995 = vmatpush.msra.mxu3 %v2940_v41  ;;  %3041 = vmatpush.msrb.mxu2 %v2941_v10  ;;  %v2929_v51 = vld [vmem:[#allocation7 + $0x948] sm:$0xff]  ;;  %v2926_v55 = vld [vmem:[#allocation7 + $0x930] sm:$0xff] }
 0x27f   : > { %v2494_v28 = vmul.f32 %v5209_v33, %v2461_v47  ;;  %v2480_v53 = vsub.f32 1.0, %v2479_v60  ;;  %v2927_v62 = vld [vmem:[#allocation7 + $0x938] sm:$0xff]  ;;  %v2840_v60 = vld [vmem:[#allocation7 + $0x830] sm:$0xff]  ;;  %v2924_v47 = vld [vmem:[#allocation7 + $0x920] sm:$0xff] }
 0x280   : > { %2996 = vmatpush.msra.mxu3 %v2938_v63  ;;  %3042 = vmatpush.msrb.mxu2 %v2939_v3  ;;  %v2841_v33 = vld [vmem:[#allocation7 + $0x838] sm:$0xff]  ;;  %v2852_v41 = vld [vmem:[#allocation7 + $0x890] sm:$0xff]  ;;  %v2826_v63 = vld [vmem:[#allocation7 + $0x7c0] sm:$0xff] }
 0x281   : > { %4989 = vmatmul.msk.f32.vlgmr.msra.gmra.mxu1 %vm834_vm1, %v2494_v28  ;;  %4991 = vmatmul.msk.f32.vlgmr.msrb.gmra.mxu0 %vm834_vm1, %v2494_v28  ;;  %v2481_v25 = vmul.f32 %v5207_v18, %v2480_v53  ;;  %v2922_v53 = vld [vmem:[#allocation7 + $0x910] sm:$0xff]  ;;  %v2853_v10 = vld [vmem:[#allocation7 + $0x898] sm:$0xff]  ;;  %v2827_v3 = vld [vmem:[#allocation7 + $0x7c8] sm:$0xff] }
 0x282   : > { %4993 = vmatmul.msk.f32.vlgmr.msrb.gmra.mxu3 %vm834_vm1, %v2494_v28  ;;  %4995 = vmatmul.msk.f32.vlgmr.msra.gmra.mxu2 %vm834_vm1, %v2494_v28  ;;  %v2925_v28 = vld [vmem:[#allocation7 + $0x928] sm:$0xff] }
 0x283   : > { %v2482_v32 = vadd.f32 %v5207_v18, %v2481_v25  ;;  %3021 = vmatpush.msra.mxu1 %v2966_v23  ;;  %3067 = vmatpush.msrb.mxu0 %v2967_v48  ;;  %v2920_v25 = vld [vmem:[#allocation7 + $0x900] sm:$0xff]  ;;  %v2836_v23 = vld [vmem:[#allocation7 + $0x810] sm:$0xff]  ;;  %v2837_v48 = vld [vmem:[#allocation7 + $0x818] sm:$0xff] }
 0x284   : > { %2997 = vmatpush.msra.mxu3 %v2936_v7  ;;  %3043 = vmatpush.msrb.mxu2 %v2937_v9  ;;  %v2850_v7 = vld [vmem:[#allocation7 + $0x880] sm:$0xff] }
 0x285   : > { %v2486_v44 = vsel %vm2485_vm10, %v5207_v18, %v2482_v32  ;;  %3022 = vmatpush.msra.mxu1 %v2964_v37  ;;  %3068 = vmatpush.msrb.mxu0 %v2965_v13  ;;  %v2842_v18 = vld [vmem:[#allocation7 + $0x840] sm:$0xff]  ;;  %v2864_v32 = vld [vmem:[#allocation7 + $0x8f0] sm:$0xff] }
 0x286   : > { %v2491_v58 = vsel %vm2488_vm11, %v2490_v39, %v2486_v44  ;;  %2998 = vmatpush.msra.mxu3 %v2934_v50  ;;  %3044 = vmatpush.msrb.mxu2 %v2935_v15  ;;  %v2865_v39 = vld [vmem:[#allocation7 + $0x8f8] sm:$0xff]  ;;  %v2862_v44 = vld [vmem:[#allocation7 + $0x8e0] sm:$0xff]  ;;  %v2832_v37 = vld [vmem:[#allocation7 + $0x7f0] sm:$0xff] }
 0x287   : > { %v2496_v2 = vmul.f32 %v5211_v26, %v2491_v58  ;;  %3023 = vmatpush.msra.mxu1 %v2962_v14  ;;  %v2863_v26 = vld [vmem:[#allocation7 + $0x8e8] sm:$0xff]  ;;  %v2838_v58 = vld [vmem:[#allocation7 + $0x820] sm:$0xff] }
 0x288   : > { %2999 = vmatpush.msra.mxu3 %v2932_v43  ;;  %3045 = vmatpush.msrb.mxu2 %v2933_v6  ;;  %v2858_v14 = vld [vmem:[#allocation7 + $0x8c0] sm:$0xff]  ;;  %v2823_v50 = vld [vmem:[#allocation7 + $0x7a8] sm:$0xff] }
 0x289   : > { %4990 = vmatmul.msk.f32.gmra.mxu1 %vm834_vm1, %v2496_v2  ;;  %4992 = vmatmul.msk.f32.gmra.mxu0 %vm834_vm1, %v2496_v2  ;;  %v2851_v15 = vld [vmem:[#allocation7 + $0x888] sm:$0xff] }
 0x28a   : > { %4994 = vmatmul.msk.f32.gmra.mxu3 %vm834_vm1, %v2496_v2  ;;  %4996 = vmatmul.msk.f32.gmra.mxu2 %vm834_vm1, %v2496_v2  ;;  %v2839_v2 = vld [vmem:[#allocation7 + $0x828] sm:$0xff] }
 0x28b   : > { %3024 = vmatpush.msra.mxu1 %v2960_v38  ;;  %3000 = vmatpush.msra.mxu3 %v2930_v17  ;;  %v2854_v38 = vld [vmem:[#allocation7 + $0x8a0] sm:$0xff]  ;;  %v2701_v17 = vld [vmem:[#allocation14] sm:$0x3] }
 0x28c   : > { %3046 = vmatpush.msrb.mxu2 %v2931_v46  ;;  %v2703_v46 = vperm.slane %v2701_v17, 0 }
 0x28d   : > { %3025 = vmatpush.msra.mxu1 %v2958_v27  ;;  %3001 = vmatpush.msra.mxu3 %v2928_v30 }
 0x28e   : > { %3047 = vmatpush.msrb.mxu2 %v2929_v51 }
 0x28f   : > { %3026 = vmatpush.msra.mxu1 %v2956_v21  ;;  %3002 = vmatpush.msra.mxu3 %v2926_v55  ;;  %v2828_v21 = vld [vmem:[#allocation7 + $0x7d0] sm:$0xff] }
 0x290   : > { %3048 = vmatpush.msrb.mxu2 %v2927_v62 }
 0x291   : > { %2723 = vmatmul.f32.vlgmr.msrb.gmra.mxu1 %v6340_v52  ;;  %2769 = vmatmul.f32.vlgmr.msra.gmra.mxu0 %v6340_v52  ;;  %v2963_v52 = vld [vmem:[#allocation7 + $0xa58] sm:$0xff] }
 0x292   : > { %3069 = vmatpush.msrb.mxu0 %v2963_v52  ;;  %3027 = vmatpush.msra.mxu1 %v2954_v20  ;;  %v2859_v52 = vld [vmem:[#allocation7 + $0x8c8] sm:$0xff]  ;;  %v2824_v20 = vld [vmem:[#allocation7 + $0x7b0] sm:$0xff] }
 0x293   : > { %3003 = vmatpush.msra.mxu3 %v2924_v47  ;;  %3049 = vmatpush.msrb.mxu2 %v2925_v28  ;;  %v5237_v47 = vld [vmem:[#allocation2 + $0x10] sm:$0xff] }
 0x294   : > { %3070 = vmatpush.msrb.mxu0 %v2961_v40  ;;  %3028 = vmatpush.msra.mxu1 %v2952_v29  ;;  %v2855_v40 = vld [vmem:[#allocation7 + $0x8a8] sm:$0xff] }
 0x295   : > { %3004 = vmatpush.msra.mxu3 %v2922_v53  ;;  %3050 = vmatpush.msrb.mxu2 %v2923_v1  ;;  %v6856_v53 = vld [vmem:[#allocation31_spill] sm:$0xff] }
 0x296   : > { %3071 = vmatpush.msrb.mxu0 %v2959_v57  ;;  %3102 = vmatpush.msrb.mxu1 %v2848_v11  ;;  %v2820_v11 = vld [vmem:[#allocation7 + $0x790] sm:$0xff] }
 0x297   : > { %3005 = vmatpush.msra.mxu3 %v2920_v25  ;;  %3051 = vmatpush.msrb.mxu2 %v2921_v34  ;;  %v6857_v25 = vld [vmem:[#allocation30_spill] sm:$0xff] }
 0x298   : > { %3072 = vmatpush.msrb.mxu0 %v2957_v31  ;;  %3103 = vmatpush.msrb.mxu1 %v2846_v36  ;;  %v2829_v31 = vld [vmem:[#allocation7 + $0x7d8] sm:$0xff]  ;;  %v2818_v36 = vld [vmem:[#allocation7 + $0x780] sm:$0xff] }
 0x299   : > { %2726 = vmatmul.f32.gmra.mxu1 %v2495_v61  ;;  %2772 = vmatmul.f32.gmra.mxu0 %v2495_v61  ;;  %v2847_v61 = vld [vmem:[#allocation7 + $0x868] sm:$0xff] }
 0x29a   : > { %3073 = vmatpush.msrb.mxu0 %v2955_v56  ;;  %3104 = vmatpush.msrb.mxu1 %v2844_v4  ;;  %v2825_v56 = vld [vmem:[#allocation7 + $0x7b8] sm:$0xff]  ;;  %v2704_v4 = vperm.slane %v2701_v17, 1  ;;  %v3215_v17 = vld [vmem:[#allocation10 + $0x9a0] sm:$0xff] }
 0x29b   : > { %3133 = vmatpush.msrb.mxu3 %v2864_v32  ;;  %3179 = vmatpush.msra.mxu2 %v2865_v39 }
 0x29c   : > { %3074 = vmatpush.msrb.mxu0 %v2953_v16  ;;  %3105 = vmatpush.msrb.mxu1 %v2842_v18  ;;  %v2822_v16 = vld [vmem:[#allocation7 + $0x7a0] sm:$0xff] }
 0x29d   : > { %3134 = vmatpush.msrb.mxu3 %v2862_v44  ;;  %3180 = vmatpush.msra.mxu2 %v2863_v26 }
 0x29e   : > { %3148 = vmatpush.msra.mxu0 %v2849_v12  ;;  %3106 = vmatpush.msrb.mxu1 %v2840_v60  ;;  %v2821_v12 = vld [vmem:[#allocation7 + $0x798] sm:$0xff] }
 0x29f   : > { %3135 = vmatpush.msrb.mxu3 %v2860_v0  ;;  %3181 = vmatpush.msra.mxu2 %v2861_v8 }
 0x2a0   : > { %3149 = vmatpush.msra.mxu0 %v2847_v61  ;;  %3107 = vmatpush.msrb.mxu1 %v2838_v58  ;;  %v2819_v61 = vld [vmem:[#allocation7 + $0x788] sm:$0xff] }
 0x2a1   : > { %3136 = vmatpush.msrb.mxu3 %v2858_v14  ;;  %3182 = vmatpush.msra.mxu2 %v2859_v52  ;;  %v3223_v14 = vld [vmem:[#allocation10 + $0x9e0] sm:$0xff]  ;;  %v3224_v52 = vld [vmem:[#allocation10 + $0x9e8] sm:$0xff] }
 0x2a2   : > { %3150 = vmatpush.msra.mxu0 %v2845_v5  ;;  %3108 = vmatpush.msrb.mxu1 %v2836_v23 }
 0x2a3   : > { %3137 = vmatpush.msrb.mxu3 %v2856_v45  ;;  %3183 = vmatpush.msra.mxu2 %v2857_v42  ;;  %v5238_v45 = vld [vmem:[#allocation2 + $0x20] sm:$0xff] }
 0x2a4   : > { %3151 = vmatpush.msra.mxu0 %v2843_v22  ;;  %3109 = vmatpush.msrb.mxu1 %v2834_v35  ;;  %v3226_v35 = vld [vmem:[#allocation10 + $0x9f8] sm:$0xff] }
 0x2a5   : > { %3138 = vmatpush.msrb.mxu3 %v2854_v38  ;;  %3184 = vmatpush.msra.mxu2 %v2855_v40  ;;  %v6858_v38 = vld [vmem:[#allocation33_spill] sm:$0xff] }
 0x2a6   : > { %3152 = vmatpush.msra.mxu0 %v2841_v33  ;;  %3110 = vmatpush.msrb.mxu1 %v2832_v37  ;;  %v2915_v33 = vld [vmem:[#allocation2] sm:$0x80] }
 0x2a7   : > { %3139 = vmatpush.msrb.mxu3 %v2852_v41  ;;  %3185 = vmatpush.msra.mxu2 %v2853_v10  ;;  %v2974_v39 = vrot.slane %v2915_v33, 7  ;;  %v3222_v41 = vld [vmem:[#allocation10 + $0x9d8] sm:$0xff] }
 0x2a8   : > { %3153 = vmatpush.msra.mxu0 %v2839_v2  ;;  %3111 = vmatpush.msrb.mxu1 %v2830_v54  ;;  %v2916_v54 = vld [vmem:[#allocation2 + $0x8] sm:$0x80]  ;;  %v6859_v10 = vld [vmem:[#allocation32_spill] sm:$0xff] }
 0x2a9   : > { %3140 = vmatpush.msrb.mxu3 %v2850_v7  ;;  %3186 = vmatpush.msra.mxu2 %v2851_v15 }
 0x2aa   : > { %3154 = vmatpush.msra.mxu0 %v2837_v48  ;;  %3112 = vmatpush.msrb.mxu1 %v2828_v21  ;;  %v3225_v48 = vld [vmem:[#allocation10 + $0x9f0] sm:$0xff] }
 0x2ac   : > { %3155 = vmatpush.msra.mxu0 %v2835_v24  ;;  %3113 = vmatpush.msrb.mxu1 %v2826_v63  ;;  %v2977_v63 = vrot.slane %v2916_v54, 7 }
 0x2ae   : > { %3156 = vmatpush.msra.mxu0 %v2833_v19  ;;  %3114 = vmatpush.msrb.mxu1 %v2824_v20  ;;  %v3220_v20 = vld [vmem:[#allocation10 + $0x9c8] sm:$0xff] }
 0x2b0   : > { %3157 = vmatpush.msra.mxu0 %v2831_v59  ;;  %3115 = vmatpush.msrb.mxu1 %v2822_v16  ;;  %v3221_v59 = vld [vmem:[#allocation10 + $0x9d0] sm:$0xff] }
 0x2b1   : > { %v3241_v16 = vld [vmem:[#allocation10 + $0xa70] sm:$0xff] }
 0x2b2   : > { %3158 = vmatpush.msra.mxu0 %v2829_v31  ;;  %3116 = vmatpush.msrb.mxu1 %v2820_v11  ;;  %v3217_v11 = vld [vmem:[#allocation10 + $0x9b0] sm:$0xff] }
 0x2b4   : > { %3159 = vmatpush.msra.mxu0 %v2827_v3  ;;  %3117 = vmatpush.msrb.mxu1 %v2818_v36  ;;  %v3219_v3 = vld [vmem:[#allocation10 + $0x9c0] sm:$0xff] }
 0x2b5   : > { %v3239_v36 = vld [vmem:[#allocation10 + $0xa60] sm:$0xff] }
 0x2b6   : > { %3160 = vmatpush.msra.mxu0 %v2825_v56 }
 0x2b8   : > { %3161 = vmatpush.msra.mxu0 %v2823_v50  ;;  %v3242_v50 = vld [vmem:[#allocation10 + $0xa78] sm:$0xff] }
 0x2ba   : > { %3162 = vmatpush.msra.mxu0 %v2821_v12  ;;  %v3218_v12 = vld [vmem:[#allocation10 + $0x9b8] sm:$0xff] }
 0x2bc   : > { %3163 = vmatpush.msra.mxu0 %v2819_v61  ;;  %v3240_v61 = vld [vmem:[#allocation10 + $0xa68] sm:$0xff] }
 0x2f4   : > { %v6373_v13 = vpop.f32.mrf.mxu3  ;;  %v6375_v49 = vpop.f32.mrf.mxu2 }
 0x2fc   : > { %v6381_v9 = vpop.f32.mrf.mxu3  ;;  %v6383_v29 = vpop.f32.mrf.mxu2 }
 0x2fe   : > { %v6377_v27 = vpop.f32.mrf.mxu1  ;;  %v6379_v57 = vpop.f32.mrf.mxu0 }
 0x305   : > { %v2747_v5 = vpop.f32.mrf.mxu3  ;;  %v2793_v30 = vpop.f32.mrf.mxu2 }
 0x306   : > { %v6385_v43 = vpop.f32.mrf.mxu1  ;;  %v6387_v6 = vpop.f32.mrf.mxu0 }
 0x30d   : > { %v2750_v8 = vpop.f32.mrf.mxu3  ;;  %v2796_v23 = vpop.f32.mrf.mxu2 }
 0x30e   : > { %v2724_v51 = vpop.f32.mrf.mxu1  ;;  %v2770_v18 = vpop.f32.mrf.mxu0 }
 0x30f   : > { %v2725_v22 = vadd.f32 %v2724_v51, %v2703_v46  ;;  %v2771_v55 = vadd.f32 %v2770_v18, %v2704_v4  ;;  %v3213_v51 = vld [vmem:[#allocation10 + $0x990] sm:$0xff]  ;;  %v3214_v18 = vld [vmem:[#allocation10 + $0x998] sm:$0xff] }
 0x311   : > { %v2748_v62 = vadd.f32 %v2747_v5, %v2725_v22  ;;  %v2794_v60 = vadd.f32 %v2793_v30, %v2771_v55  ;;  %v3238_v5 = vld [vmem:[#allocation10 + $0xa58] sm:$0xff]  ;;  %v3235_v22 = vld [vmem:[#allocation10 + $0xa40] sm:$0xff]  ;;  %v3236_v55 = vld [vmem:[#allocation10 + $0xa48] sm:$0xff] }
 0x313   : > { %v2799_v28 = vadd.f32 %v5237_v47, %v2748_v62  ;;  %v2800_v1 = vadd.f32 %v2794_v60, %v6856_v53  ;;  %v3233_v53 = vld [vmem:[#allocation10 + $0xa30] sm:$0xff] }
 0x315   : > { %v6391_v34 = vmul.f32 %v2799_v28, %v6857_v25  ;;  %v2804_v32 = vmul.f32 %v2800_v1, %v6857_v25  ;;  %v3234_v1 = vld [vmem:[#allocation10 + $0xa38] sm:$0xff] }
 0x316   : > { %v2727_v44 = vpop.f32.mrf.mxu1  ;;  %v2773_v26 = vpop.f32.mrf.mxu0 }
 0x317   : > { %2807 = vst [vmem:[#allocation2 + $0x10] sm:$0xff] %v6391_v34  ;;  %v2728_v58 = vadd.f32 %v2727_v44, %v2703_v46  ;;  %v2774_v2 = vadd.f32 %v2773_v26, %v2704_v4  ;;  %v2975_v0 = vrot.slane %v6391_v34, 7  ;;  %v3216_v46 = vld [vmem:[#allocation10 + $0x9a8] sm:$0xff]  ;;  %v3237_v4 = vld [vmem:[#allocation10 + $0xa50] sm:$0xff]  ;;  %v2811_v44 = vld [vmem:[#allocation2] sm:$0xc0] }
 0x318   : > { %2808 = vst.msk [vmem:[#allocation2 + $0x18] sm:$0xff] %vm834_vm1, %v2804_v32  ;;  %v3211_v32 = vld [vmem:[#allocation10 + $0x980] sm:$0xff] }
 0x319   : > { %v2751_v24 = vadd.f32 %v2750_v8, %v2728_v58  ;;  %v2797_v37 = vadd.f32 %v2796_v23, %v2774_v2  ;;  %v6400_v19 = vsel %vm1007_vm2, %v2974_v39, %v2975_v0  ;;  %v3212_v39 = vld [vmem:[#allocation10 + $0x988] sm:$0xff]  ;;  %v3231_v26 = vld [vmem:[#allocation10 + $0xa20] sm:$0xff]  ;;  %v3210_v8 = vld [vmem:[#allocation10 + $0x978] sm:$0xff] }
 0x31a   : > { %3006 = vmatmul.f32.vlgmr.msra.gmra.mxu3 %v6400_v19  ;;  %3052 = vmatmul.f32.vlgmr.msrb.gmra.mxu2 %v6400_v19  ;;  %v3232_v58 = vld [vmem:[#allocation10 + $0xa28] sm:$0xff]  ;;  %v3229_v23 = vld [vmem:[#allocation10 + $0xa10] sm:$0xff] }
 0x31b   : > { %v2801_v42 = vadd.f32 %v5238_v45, %v2751_v24  ;;  %v2802_v40 = vadd.f32 %v2797_v37, %v6858_v38  ;;  %3243 = vmatpush.msra.mxu3 %v3225_v48  ;;  %3289 = vmatpush.msrb.mxu2 %v3226_v35  ;;  %v2812_v2 = vld [vmem:[#allocation2 + $0x8] sm:$0xc0]  ;;  %v3230_v48 = vld [vmem:[#allocation10 + $0xa18] sm:$0xff]  ;;  %v3086_v35 = vrot.slane %v2811_v44, 6  ;;  %v3087_v24 = vrot.slane %v6391_v34, 6 }
 0x31c   : > { %v3089_v37 = vrot.slane %v2812_v2, 6  ;;  %v3208_v45 = vld [vmem:[#allocation10 + $0x968] sm:$0xff]  ;;  %v2886_v44 = vld [vmem:[#allocation10 + $0x818] sm:$0xff]  ;;  %v2883_v2 = vld [vmem:[#allocation10 + $0x800] sm:$0xff] }
 0x31d   : > { %v6406_v21 = vmul.f32 %v2801_v42, %v6859_v10  ;;  %v2806_v31 = vmul.f32 %v2802_v40, %v6859_v10  ;;  %3244 = vmatpush.msra.mxu3 %v3223_v14  ;;  %3290 = vmatpush.msrb.mxu2 %v3224_v52  ;;  %v3207_v52 = vld [vmem:[#allocation10 + $0x960] sm:$0xff]  ;;  %v3228_v38 = vld [vmem:[#allocation10 + $0xa08] sm:$0xff]  ;;  %v6438_v40 = vsel %vm1120_vm3, %v3086_v35, %v3087_v24  ;;  %v2882_v35 = vld [vmem:[#allocation10 + $0x7f8] sm:$0xff] }
 0x31e   : > { %v3227_v42 = vld [vmem:[#allocation10 + $0xa00] sm:$0xff] }
 0x31f   : > { %2809 = vst [vmem:[#allocation2 + $0x20] sm:$0xff] %v6406_v21  ;;  %v6410_v56 = vld [vmem:[#allocation2 + $0x18] sm:$0xff]  ;;  %3245 = vmatpush.msra.mxu3 %v3221_v59  ;;  %3291 = vmatpush.msrb.mxu2 %v3222_v41 }
 0x320   : > { %2810 = vst.msk [vmem:[#allocation2 + $0x28] sm:$0xff] %vm834_vm1, %v2806_v31  ;;  %v2978_v7 = vrot.slane %v6410_v56, 7  ;;  %v3090_v14 = vrot.slane %v6410_v56, 6  ;;  %v2897_v59 = vld [vmem:[#allocation10 + $0x870] sm:$0xff]  ;;  %v2898_v41 = vld [vmem:[#allocation10 + $0x878] sm:$0xff]  ;;  %v2895_v31 = vld [vmem:[#allocation10 + $0x860] sm:$0xff] }
 0x321   : > { %3246 = vmatpush.msra.mxu3 %v3219_v3  ;;  %3292 = vmatpush.msrb.mxu2 %v3220_v20  ;;  %v3206_v3 = vld [vmem:[#allocation10 + $0x958] sm:$0xff]  ;;  %v2896_v20 = vld [vmem:[#allocation10 + $0x868] sm:$0xff] }
 0x322   : > { %v6415_v15 = vsel %vm1007_vm2, %v2977_v63, %v2978_v7  ;;  %v6441_v54 = vsel %vm1120_vm3, %v3089_v37, %v3090_v14  ;;  %v3205_v63 = vld [vmem:[#allocation10 + $0x950] sm:$0xff]  ;;  %v2912_v37 = vld [vmem:[#allocation10 + $0x8e8] sm:$0xff] }
 0x323   : > { %4997 = vmatmul.msk.f32.vlgmr.msra.gmra.mxu1 %vm834_vm1, %v6415_v15  ;;  %4999 = vmatmul.msk.f32.vlgmr.msrb.gmra.mxu0 %vm834_vm1, %v6415_v15 }
 0x324   : > { %3274 = vmatpush.msra.mxu1 %v3241_v16  ;;  %3320 = vmatpush.msrb.mxu0 %v3242_v50  ;;  %v3203_v50 = vld [vmem:[#allocation10 + $0x940] sm:$0xff] }
 0x325   : > { %3247 = vmatpush.msra.mxu3 %v3217_v11  ;;  %3293 = vmatpush.msrb.mxu2 %v3218_v12  ;;  %v3204_v11 = vld [vmem:[#allocation10 + $0x948] sm:$0xff]  ;;  %v2893_v12 = vld [vmem:[#allocation10 + $0x850] sm:$0xff] }
 0x326   : > { %3275 = vmatpush.msra.mxu1 %v3239_v36  ;;  %3321 = vmatpush.msrb.mxu0 %v3240_v61  ;;  %v2917_v30 = vld [vmem:[#allocation2 + $0x20] sm:$0x7f] }
 0x327   : > { %v2980_v62 = vrot.slane %v2917_v30, 7  ;;  %v2918_v60 = vld [vmem:[#allocation2 + $0x28] sm:$0x7f]  ;;  %3248 = vmatpush.msra.mxu3 %v3215_v17  ;;  %3294 = vmatpush.msrb.mxu2 %v3216_v46  ;;  %v2894_v36 = vld [vmem:[#allocation10 + $0x858] sm:$0xff]  ;;  %v3201_v46 = vld [vmem:[#allocation10 + $0x930] sm:$0xff] }
 0x328   : > { %3276 = vmatpush.msra.mxu1 %v3237_v4  ;;  %3322 = vmatpush.msrb.mxu0 %v3238_v5  ;;  %v2982_v33 = vrot.slane %v2918_v60, 7  ;;  %v2816_v16 = vld [vmem:[#allocation2 + $0x28] sm:$0x3f]  ;;  %v3202_v4 = vld [vmem:[#allocation10 + $0x938] sm:$0xff]  ;;  %v2892_v30 = vld [vmem:[#allocation10 + $0x848] sm:$0xff] }
 0x329   : > { %v6424_v47 = vsel %vm1007_vm2, %v2975_v0, %v2980_v62  ;;  %3249 = vmatpush.msra.mxu3 %v3213_v51  ;;  %3295 = vmatpush.msrb.mxu2 %v3214_v18  ;;  %v3209_v0 = vld [vmem:[#allocation10 + $0x970] sm:$0xff]  ;;  %v3094_v17 = vrot.slane %v2816_v16, 6  ;;  %v2891_v5 = vld [vmem:[#allocation10 + $0x840] sm:$0xff]  ;;  %v3200_v60 = vld [vmem:[#allocation10 + $0x928] sm:$0xff] }
 0x32a   : > { %3277 = vmatpush.msra.mxu1 %v3235_v22  ;;  %3323 = vmatpush.msrb.mxu0 %v3236_v55  ;;  %v6427_v28 = vsel %vm1007_vm2, %v2978_v7, %v2982_v33  ;;  %v2815_v7 = vld [vmem:[#allocation2 + $0x20] sm:$0x3f]  ;;  %v2889_v22 = vld [vmem:[#allocation10 + $0x830] sm:$0xff]  ;;  %v3199_v62 = vld [vmem:[#allocation10 + $0x920] sm:$0xff] }
 0x32b   : > { %3009 = vmatmul.f32.gmra.mxu3 %v6424_v47  ;;  %4998 = vmatmul.msk.f32.gmra.mxu1 %vm834_vm1, %v6427_v28  ;;  %v3092_v61 = vrot.slane %v2815_v7, 6  ;;  %v6453_v18 = vsel %vm1120_vm3, %v3090_v14, %v3094_v17  ;;  %v2890_v55 = vld [vmem:[#allocation10 + $0x838] sm:$0xff]  ;;  %v2887_v33 = vld [vmem:[#allocation10 + $0x820] sm:$0xff]  ;;  %v2869_v17 = vld [vmem:[#allocation10 + $0x790] sm:$0xff] }
 0x32c   : > { %3055 = vmatmul.f32.gmra.mxu2 %v6424_v47  ;;  %5000 = vmatmul.msk.f32.gmra.mxu0 %vm834_vm1, %v6427_v28  ;;  %v2879_v14 = vld [vmem:[#allocation10 + $0x7e0] sm:$0xff]  ;;  %v2874_v7 = vld [vmem:[#allocation10 + $0x7b8] sm:$0xff] }
 0x32d   : > { %3278 = vmatpush.msra.mxu1 %v3233_v53  ;;  %3324 = vmatpush.msrb.mxu0 %v3234_v1  ;;  %v6450_v51 = vsel %vm1120_vm3, %v3087_v24, %v3092_v61  ;;  %v2888_v53 = vld [vmem:[#allocation10 + $0x828] sm:$0xff]  ;;  %v3197_v1 = vld [vmem:[#allocation10 + $0x910] sm:$0xff]  ;;  %v2911_v24 = vld [vmem:[#allocation10 + $0x8e0] sm:$0xff] }
 0x32e   : > { %3250 = vmatpush.msra.mxu3 %v3211_v32  ;;  %3296 = vmatpush.msrb.mxu2 %v3212_v39  ;;  %v3198_v32 = vld [vmem:[#allocation10 + $0x918] sm:$0xff]  ;;  %v2885_v39 = vld [vmem:[#allocation10 + $0x810] sm:$0xff]  ;;  %v2903_v16 = vld [vmem:[#allocation10 + $0x8a0] sm:$0xff] }
 0x32f   : > { %3279 = vmatpush.msra.mxu1 %v3231_v26  ;;  %3325 = vmatpush.msrb.mxu0 %v3232_v58  ;;  %v3195_v26 = vld [vmem:[#allocation10 + $0x900] sm:$0xff]  ;;  %v3196_v58 = vld [vmem:[#allocation10 + $0x908] sm:$0xff]  ;;  %v2902_v61 = vld [vmem:[#allocation10 + $0x898] sm:$0xff] }
 0x330   : > { %3251 = vmatpush.msra.mxu3 %v3209_v0  ;;  %3297 = vmatpush.msrb.mxu2 %v3210_v8  ;;  %v2884_v0 = vld [vmem:[#allocation10 + $0x808] sm:$0xff]  ;;  %v2913_v8 = vld [vmem:[#allocation10 + $0x8f0] sm:$0xff] }
 0x331   : > { %3280 = vmatpush.msra.mxu1 %v3229_v23  ;;  %3326 = vmatpush.msrb.mxu0 %v3230_v48  ;;  %v2914_v23 = vld [vmem:[#allocation10 + $0x8f8] sm:$0xff]  ;;  %v2881_v48 = vld [vmem:[#allocation10 + $0x7f0] sm:$0xff] }
 0x332   : > { %3252 = vmatpush.msra.mxu3 %v3207_v52  ;;  %3298 = vmatpush.msrb.mxu2 %v3208_v45  ;;  %v2880_v52 = vld [vmem:[#allocation10 + $0x7e8] sm:$0xff]  ;;  %v2909_v45 = vld [vmem:[#allocation10 + $0x8d0] sm:$0xff] }
 0x333   : > { %3281 = vmatpush.msra.mxu1 %v3227_v42  ;;  %3327 = vmatpush.msrb.mxu0 %v3228_v38  ;;  %v2910_v42 = vld [vmem:[#allocation10 + $0x8d8] sm:$0xff]  ;;  %v2877_v38 = vld [vmem:[#allocation10 + $0x7d0] sm:$0xff] }
 0x334   : > { %3118 = vmatmul.f32.vlgmr.msrb.gmra.mxu1 %v6438_v40  ;;  %5001 = vmatmul.msk.f32.vlgmr.msrb.gmra.mxu3 %vm834_vm1, %v6441_v54 }
 0x335   : > { %3164 = vmatmul.f32.vlgmr.msra.gmra.mxu0 %v6438_v40  ;;  %5003 = vmatmul.msk.f32.vlgmr.msra.gmra.mxu2 %vm834_vm1, %v6441_v54 }
 0x336   : > { %3335 = vmatpush.msrb.mxu1 %v2897_v59  ;;  %3381 = vmatpush.msra.mxu0 %v2898_v41  ;;  %v2878_v59 = vld [vmem:[#allocation10 + $0x7d8] sm:$0xff]  ;;  %v2907_v41 = vld [vmem:[#allocation10 + $0x8c0] sm:$0xff] }
 0x337   : > { %3253 = vmatpush.msra.mxu3 %v3205_v63  ;;  %3299 = vmatpush.msrb.mxu2 %v3206_v3  ;;  %v2876_v63 = vld [vmem:[#allocation10 + $0x7c8] sm:$0xff]  ;;  %v2906_v3 = vld [vmem:[#allocation10 + $0x8b8] sm:$0xff] }
 0x338   : > { %3336 = vmatpush.msrb.mxu1 %v2895_v31  ;;  %3382 = vmatpush.msra.mxu0 %v2896_v20  ;;  %v2908_v31 = vld [vmem:[#allocation10 + $0x8c8] sm:$0xff]  ;;  %v2873_v20 = vld [vmem:[#allocation10 + $0x7b0] sm:$0xff] }
 0x339   : > { %3254 = vmatpush.msra.mxu3 %v3203_v50  ;;  %3300 = vmatpush.msrb.mxu2 %v3204_v11  ;;  %v2904_v50 = vld [vmem:[#allocation10 + $0x8a8] sm:$0xff]  ;;  %v2871_v11 = vld [vmem:[#allocation10 + $0x7a0] sm:$0xff] }
 0x33a   : > { %3337 = vmatpush.msrb.mxu1 %v2893_v12  ;;  %3383 = vmatpush.msra.mxu0 %v2894_v36  ;;  %v2872_v12 = vld [vmem:[#allocation10 + $0x7a8] sm:$0xff]  ;;  %v2901_v36 = vld [vmem:[#allocation10 + $0x890] sm:$0xff] }
 0x33b   : > { %3255 = vmatpush.msra.mxu3 %v3201_v46  ;;  %3301 = vmatpush.msrb.mxu2 %v3202_v4  ;;  %v2870_v46 = vld [vmem:[#allocation10 + $0x798] sm:$0xff]  ;;  %v2899_v4 = vld [vmem:[#allocation10 + $0x880] sm:$0xff] }
 0x33c   : > { %3338 = vmatpush.msrb.mxu1 %v2891_v5  ;;  %3384 = vmatpush.msra.mxu0 %v2892_v30  ;;  %v2900_v5 = vld [vmem:[#allocation10 + $0x888] sm:$0xff] }
 0x33d   : > { %3121 = vmatmul.f32.gmra.mxu1 %v6450_v51  ;;  %5002 = vmatmul.msk.f32.gmra.mxu3 %vm834_vm1, %v6453_v18  ;;  %v2868_v30 = vld [vmem:[#allocation10 + $0x788] sm:$0xff] }
 0x33e   : > { %3167 = vmatmul.f32.gmra.mxu0 %v6450_v51  ;;  %5004 = vmatmul.msk.f32.gmra.mxu2 %vm834_vm1, %v6453_v18 }
 0x33f   : > { %3339 = vmatpush.msrb.mxu1 %v2889_v22  ;;  %3385 = vmatpush.msra.mxu0 %v2890_v55  ;;  %v3461_v22 = vld [vmem:[#allocation7 + $0xb78] sm:$0xff]  ;;  %v3476_v55 = vld [vmem:[#allocation7 + $0xbf0] sm:$0xff] }
 0x340   : > { %3256 = vmatpush.msra.mxu3 %v3199_v62  ;;  %3302 = vmatpush.msrb.mxu2 %v3200_v60  ;;  %v3477_v62 = vld [vmem:[#allocation7 + $0xbf8] sm:$0xff]  ;;  %v3458_v60 = vld [vmem:[#allocation7 + $0xb60] sm:$0xff] }
 0x341   : > { %3340 = vmatpush.msrb.mxu1 %v2887_v33  ;;  %3386 = vmatpush.msra.mxu0 %v2888_v53  ;;  %v3459_v33 = vld [vmem:[#allocation7 + $0xb68] sm:$0xff]  ;;  %v3474_v53 = vld [vmem:[#allocation7 + $0xbe0] sm:$0xff] }
 0x342   : > { %3257 = vmatpush.msra.mxu3 %v3197_v1  ;;  %3303 = vmatpush.msrb.mxu2 %v3198_v32  ;;  %v3475_v1 = vld [vmem:[#allocation7 + $0xbe8] sm:$0xff]  ;;  %v3456_v32 = vld [vmem:[#allocation7 + $0xb50] sm:$0xff] }
 0x343   : > { %3341 = vmatpush.msrb.mxu1 %v2885_v39  ;;  %3387 = vmatpush.msra.mxu0 %v2886_v44  ;;  %v3457_v39 = vld [vmem:[#allocation7 + $0xb58] sm:$0xff]  ;;  %v3472_v44 = vld [vmem:[#allocation7 + $0xbd0] sm:$0xff] }
 0x344   : > { %3258 = vmatpush.msra.mxu3 %v3195_v26  ;;  %3304 = vmatpush.msrb.mxu2 %v3196_v58  ;;  %v3473_v26 = vld [vmem:[#allocation7 + $0xbd8] sm:$0xff]  ;;  %v3454_v58 = vld [vmem:[#allocation7 + $0xb40] sm:$0xff] }
 0x345   : > { %3342 = vmatpush.msrb.mxu1 %v2883_v2  ;;  %3388 = vmatpush.msra.mxu0 %v2884_v0  ;;  %v3455_v2 = vld [vmem:[#allocation7 + $0xb48] sm:$0xff]  ;;  %v3470_v0 = vld [vmem:[#allocation7 + $0xbc0] sm:$0xff] }
 0x346   : > { %3366 = vmatpush.msrb.mxu3 %v2913_v8  ;;  %3412 = vmatpush.msra.mxu2 %v2914_v23  ;;  %v3471_v8 = vld [vmem:[#allocation7 + $0xbc8] sm:$0xff]  ;;  %v3453_v23 = vld [vmem:[#allocation7 + $0xb38] sm:$0xff] }
 0x347   : > { %3259 = vmatmul.f32.vlgmr.msra.gmra.mxu3 %v6400_v19  ;;  %5005 = vmatmul.msk.f32.vlgmr.msra.gmra.mxu1 %vm834_vm1, %v6415_v15 }
 0x348   : > { %3305 = vmatmul.f32.vlgmr.msrb.gmra.mxu2 %v6400_v19  ;;  %5007 = vmatmul.msk.f32.vlgmr.msrb.gmra.mxu0 %vm834_vm1, %v6415_v15  ;;  %v2875_v19 = vld [vmem:[#allocation10 + $0x7c0] sm:$0xff]  ;;  %v2905_v15 = vld [vmem:[#allocation10 + $0x8b0] sm:$0xff] }
 0x349   : > { %3343 = vmatpush.msrb.mxu1 %v2881_v48  ;;  %3389 = vmatpush.msra.mxu0 %v2882_v35  ;;  %v3469_v48 = vld [vmem:[#allocation7 + $0xbb8] sm:$0xff]  ;;  %v3450_v35 = vld [vmem:[#allocation7 + $0xb20] sm:$0xff] }
 0x34a   : > { %3367 = vmatpush.msrb.mxu3 %v2911_v24  ;;  %3413 = vmatpush.msra.mxu2 %v2912_v37  ;;  %v3451_v24 = vld [vmem:[#allocation7 + $0xb28] sm:$0xff]  ;;  %v3466_v37 = vld [vmem:[#allocation7 + $0xba0] sm:$0xff] }
 0x34b   : > { %3344 = vmatpush.msrb.mxu1 %v2879_v14  ;;  %3390 = vmatpush.msra.mxu0 %v2880_v52  ;;  %v3467_v14 = vld [vmem:[#allocation7 + $0xba8] sm:$0xff]  ;;  %v3448_v52 = vld [vmem:[#allocation7 + $0xb10] sm:$0xff] }
 0x34c   : > { %3368 = vmatpush.msrb.mxu3 %v2909_v45  ;;  %3414 = vmatpush.msra.mxu2 %v2910_v42  ;;  %v3449_v45 = vld [vmem:[#allocation7 + $0xb18] sm:$0xff]  ;;  %v3464_v42 = vld [vmem:[#allocation7 + $0xb90] sm:$0xff] }
 0x34d   : > { %3345 = vmatpush.msrb.mxu1 %v2877_v38  ;;  %3391 = vmatpush.msra.mxu0 %v2878_v59  ;;  %v3465_v38 = vld [vmem:[#allocation7 + $0xb98] sm:$0xff]  ;;  %v3446_v59 = vld [vmem:[#allocation7 + $0xb00] sm:$0xff] }
 0x34e   : > { %3369 = vmatpush.msrb.mxu3 %v2907_v41  ;;  %3415 = vmatpush.msra.mxu2 %v2908_v31  ;;  %v3447_v41 = vld [vmem:[#allocation7 + $0xb08] sm:$0xff]  ;;  %v3462_v31 = vld [vmem:[#allocation7 + $0xb80] sm:$0xff] }
 0x34f   : > { %3346 = vmatpush.msrb.mxu1 %v2875_v19  ;;  %3392 = vmatpush.msra.mxu0 %v2876_v63  ;;  %v3463_v19 = vld [vmem:[#allocation7 + $0xb88] sm:$0xff]  ;;  %v3445_v63 = vld [vmem:[#allocation7 + $0xaf8] sm:$0xff] }
 0x350   : > { %3370 = vmatpush.msrb.mxu3 %v2905_v15  ;;  %3416 = vmatpush.msra.mxu2 %v2906_v3  ;;  %v3611_v15 = vld [vmem:[#allocation10 + $0xb78] sm:$0xff] }
 0x351   : > { %3262 = vmatmul.f32.gmra.mxu3 %v6424_v47  ;;  %5006 = vmatmul.msk.f32.gmra.mxu1 %vm834_vm1, %v6427_v28  ;;  %v3442_v3 = vld [vmem:[#allocation7 + $0xae0] sm:$0xff] }
 0x352   : > { %3308 = vmatmul.f32.gmra.mxu2 %v6424_v47  ;;  %5008 = vmatmul.msk.f32.gmra.mxu0 %vm834_vm1, %v6427_v28  ;;  %v2867_v47 = vld [vmem:[#allocation10 + $0x780] sm:$0xff]  ;;  %v3460_v28 = vld [vmem:[#allocation7 + $0xb70] sm:$0xff] }
 0x353   : > { %3347 = vmatpush.msrb.mxu1 %v2873_v20  ;;  %3393 = vmatpush.msra.mxu0 %v2874_v7  ;;  %v3443_v20 = vld [vmem:[#allocation7 + $0xae8] sm:$0xff] }
 0x354   : > { %3371 = vmatpush.msrb.mxu3 %v2903_v16  ;;  %3417 = vmatpush.msra.mxu2 %v2904_v50  ;;  %v3608_v7 = vld [vmem:[#allocation10 + $0xb60] sm:$0xff]  ;;  %v3609_v16 = vld [vmem:[#allocation10 + $0xb68] sm:$0xff] }
 0x355   : > { %3348 = vmatpush.msrb.mxu1 %v2871_v11  ;;  %3394 = vmatpush.msra.mxu0 %v2872_v12  ;;  %v3440_v50 = vld [vmem:[#allocation7 + $0xad0] sm:$0xff]  ;;  %v3441_v11 = vld [vmem:[#allocation7 + $0xad8] sm:$0xff] }
 0x356   : > { %3372 = vmatpush.msrb.mxu3 %v2901_v36  ;;  %3418 = vmatpush.msra.mxu2 %v2902_v61  ;;  %v3606_v12 = vld [vmem:[#allocation10 + $0xb50] sm:$0xff]  ;;  %v3607_v36 = vld [vmem:[#allocation10 + $0xb58] sm:$0xff] }
 0x357   : > { %3349 = vmatpush.msrb.mxu1 %v2869_v17  ;;  %3395 = vmatpush.msra.mxu0 %v2870_v46  ;;  %v3438_v61 = vld [vmem:[#allocation7 + $0xac0] sm:$0xff]  ;;  %v3439_v17 = vld [vmem:[#allocation7 + $0xac8] sm:$0xff] }
 0x358   : > { %3373 = vmatpush.msrb.mxu3 %v2899_v4  ;;  %3419 = vmatpush.msra.mxu2 %v2900_v5  ;;  %v3604_v46 = vld [vmem:[#allocation10 + $0xb40] sm:$0xff]  ;;  %v3605_v4 = vld [vmem:[#allocation10 + $0xb48] sm:$0xff] }
 0x359   : > { %3350 = vmatpush.msrb.mxu1 %v2867_v47  ;;  %3396 = vmatpush.msra.mxu0 %v2868_v30  ;;  %v3436_v5 = vld [vmem:[#allocation7 + $0xab0] sm:$0xff]  ;;  %v3437_v47 = vld [vmem:[#allocation7 + $0xab8] sm:$0xff] }
 0x35a   : > { %3483 = vmatpush.msra.mxu3 %v3460_v28  ;;  %3529 = vmatpush.msrb.mxu2 %v3461_v22  ;;  %v3602_v30 = vld [vmem:[#allocation10 + $0xb30] sm:$0xff]  ;;  %v3603_v28 = vld [vmem:[#allocation10 + $0xb38] sm:$0xff] }
 0x35b   : > { %3514 = vmatpush.msra.mxu1 %v3476_v55  ;;  %3560 = vmatpush.msrb.mxu0 %v3477_v62  ;;  %v3434_v22 = vld [vmem:[#allocation7 + $0xaa0] sm:$0xff]  ;;  %v3435_v55 = vld [vmem:[#allocation7 + $0xaa8] sm:$0xff] }
 0x35c   : > { %3351 = vmatmul.f32.vlgmr.msrb.gmra.mxu1 %v6438_v40  ;;  %5009 = vmatmul.msk.f32.vlgmr.msrb.gmra.mxu3 %vm834_vm1, %v6441_v54  ;;  %v6489_v62 = vld [vmem:[#allocation2 + $0x28] sm:$0xff] }
 0x35d   : > { %3397 = vmatmul.f32.vlgmr.msra.gmra.mxu0 %v6438_v40  ;;  %5011 = vmatmul.msk.f32.vlgmr.msra.gmra.mxu2 %vm834_vm1, %v6441_v54  ;;  %v3452_v40 = vld [vmem:[#allocation7 + $0xb30] sm:$0xff] }
 0x35e   : > { %3484 = vmatpush.msra.mxu3 %v3458_v60  ;;  %3530 = vmatpush.msrb.mxu2 %v3459_v33  ;;  %v3468_v54 = vld [vmem:[#allocation7 + $0xbb0] sm:$0xff]  ;;  %v3600_v60 = vld [vmem:[#allocation10 + $0xb20] sm:$0xff] }
 0x35f   : > { %3515 = vmatpush.msra.mxu1 %v3474_v53  ;;  %3561 = vmatpush.msrb.mxu0 %v3475_v1  ;;  %v3601_v33 = vld [vmem:[#allocation10 + $0xb28] sm:$0xff]  ;;  %v3433_v1 = vld [vmem:[#allocation7 + $0xa98] sm:$0xff] }
 0x360   : > { %3485 = vmatpush.msra.mxu3 %v3456_v32  ;;  %3531 = vmatpush.msrb.mxu2 %v3457_v39  ;;  %v3432_v53 = vld [vmem:[#allocation7 + $0xa90] sm:$0xff]  ;;  %v3599_v39 = vld [vmem:[#allocation10 + $0xb18] sm:$0xff] }
 0x361   : > { %3516 = vmatpush.msra.mxu1 %v3472_v44  ;;  %3562 = vmatpush.msrb.mxu0 %v3473_v26  ;;  %v3598_v32 = vld [vmem:[#allocation10 + $0xb10] sm:$0xff]  ;;  %v3430_v44 = vld [vmem:[#allocation7 + $0xa80] sm:$0xff]  ;;  %v3431_v26 = vld [vmem:[#allocation7 + $0xa88] sm:$0xff] }
 0x362   : > { %3486 = vmatpush.msra.mxu3 %v3454_v58  ;;  %3532 = vmatpush.msrb.mxu2 %v3455_v2  ;;  %v3596_v58 = vld [vmem:[#allocation10 + $0xb00] sm:$0xff]  ;;  %v3597_v2 = vld [vmem:[#allocation10 + $0xb08] sm:$0xff] }
 0x363   : > { %3517 = vmatpush.msra.mxu1 %v3470_v0  ;;  %3563 = vmatpush.msrb.mxu0 %v3471_v8  ;;  %v3626_v0 = vld [vmem:[#allocation10 + $0xbf0] sm:$0xff]  ;;  %v3627_v8 = vld [vmem:[#allocation10 + $0xbf8] sm:$0xff] }
 0x364   : > { %3487 = vmatpush.msra.mxu3 %v3452_v40  ;;  %3533 = vmatpush.msrb.mxu2 %v3453_v23  ;;  %v3594_v40 = vld [vmem:[#allocation10 + $0xaf0] sm:$0xff]  ;;  %v3595_v23 = vld [vmem:[#allocation10 + $0xaf8] sm:$0xff] }
 0x365   : > { %3518 = vmatpush.msra.mxu1 %v3468_v54  ;;  %3564 = vmatpush.msrb.mxu0 %v3469_v48  ;;  %v3624_v54 = vld [vmem:[#allocation10 + $0xbe0] sm:$0xff]  ;;  %v3625_v48 = vld [vmem:[#allocation10 + $0xbe8] sm:$0xff] }
 0x366   : > { %3354 = vmatmul.f32.gmra.mxu1 %v6450_v51  ;;  %5010 = vmatmul.msk.f32.gmra.mxu3 %vm834_vm1, %v6453_v18 }
 0x367   : > { %3400 = vmatmul.f32.gmra.mxu0 %v6450_v51  ;;  %5012 = vmatmul.msk.f32.gmra.mxu2 %vm834_vm1, %v6453_v18  ;;  %v3444_v51 = vld [vmem:[#allocation7 + $0xaf0] sm:$0xff] }
 0x368   : > { %3488 = vmatpush.msra.mxu3 %v3450_v35  ;;  %3534 = vmatpush.msrb.mxu2 %v3451_v24  ;;  %v3610_v18 = vld [vmem:[#allocation10 + $0xb70] sm:$0xff]  ;;  %v3592_v35 = vld [vmem:[#allocation10 + $0xae0] sm:$0xff]  ;;  %v3593_v24 = vld [vmem:[#allocation10 + $0xae8] sm:$0xff] }
 0x369   : > { %3519 = vmatpush.msra.mxu1 %v3466_v37  ;;  %3565 = vmatpush.msrb.mxu0 %v3467_v14  ;;  %v3622_v37 = vld [vmem:[#allocation10 + $0xbd0] sm:$0xff]  ;;  %v3623_v14 = vld [vmem:[#allocation10 + $0xbd8] sm:$0xff] }
 0x36a   : > { %3489 = vmatpush.msra.mxu3 %v3448_v52  ;;  %3535 = vmatpush.msrb.mxu2 %v3449_v45  ;;  %v3590_v52 = vld [vmem:[#allocation10 + $0xad0] sm:$0xff]  ;;  %v3591_v45 = vld [vmem:[#allocation10 + $0xad8] sm:$0xff] }
 0x36b   : > { %3520 = vmatpush.msra.mxu1 %v3464_v42  ;;  %3566 = vmatpush.msrb.mxu0 %v3465_v38  ;;  %v3620_v42 = vld [vmem:[#allocation10 + $0xbc0] sm:$0xff]  ;;  %v3621_v38 = vld [vmem:[#allocation10 + $0xbc8] sm:$0xff] }
 0x36c   : > { %3490 = vmatpush.msra.mxu3 %v3446_v59  ;;  %3536 = vmatpush.msrb.mxu2 %v3447_v41  ;;  %v3588_v59 = vld [vmem:[#allocation10 + $0xac0] sm:$0xff]  ;;  %v3589_v41 = vld [vmem:[#allocation10 + $0xac8] sm:$0xff] }
 0x36d   : > { %3521 = vmatpush.msra.mxu1 %v3462_v31  ;;  %3567 = vmatpush.msrb.mxu0 %v3463_v19  ;;  %v3618_v31 = vld [vmem:[#allocation10 + $0xbb0] sm:$0xff]  ;;  %v3619_v19 = vld [vmem:[#allocation10 + $0xbb8] sm:$0xff] }
 0x36e   : > { %3491 = vmatpush.msra.mxu3 %v3444_v51  ;;  %3537 = vmatpush.msrb.mxu2 %v3445_v63  ;;  %v3586_v51 = vld [vmem:[#allocation10 + $0xab0] sm:$0xff]  ;;  %v3587_v63 = vld [vmem:[#allocation10 + $0xab8] sm:$0xff] }
 0x36f   : > { %3628 = vmatpush.msrb.mxu1 %v3610_v18  ;;  %3674 = vmatpush.msra.mxu0 %v3611_v15  ;;  %v3616_v18 = vld [vmem:[#allocation10 + $0xba0] sm:$0xff]  ;;  %v3617_v15 = vld [vmem:[#allocation10 + $0xba8] sm:$0xff] }
 0x370   : > { %3492 = vmatpush.msra.mxu3 %v3442_v3  ;;  %5013 = vmatmul.msk.f32.vlgmr.msra.gmra.mxu1 %vm834_vm1, %v6410_v56  ;;  %v3584_v3 = vld [vmem:[#allocation10 + $0xaa0] sm:$0xff] }
 0x371   : > { %3538 = vmatpush.msrb.mxu2 %v3443_v20  ;;  %5015 = vmatmul.msk.f32.vlgmr.msrb.gmra.mxu0 %vm834_vm1, %v6410_v56  ;;  %v3585_v20 = vld [vmem:[#allocation10 + $0xaa8] sm:$0xff] }
 0x372   : > { %3629 = vmatpush.msrb.mxu1 %v3608_v7  ;;  %3675 = vmatpush.msra.mxu0 %v3609_v16  ;;  %v3614_v7 = vld [vmem:[#allocation10 + $0xb90] sm:$0xff]  ;;  %v3615_v16 = vld [vmem:[#allocation10 + $0xb98] sm:$0xff] }
 0x373   : > { %3493 = vmatpush.msra.mxu3 %v3440_v50  ;;  %3539 = vmatpush.msrb.mxu2 %v3441_v11  ;;  %v3582_v50 = vld [vmem:[#allocation10 + $0xa90] sm:$0xff]  ;;  %v3583_v11 = vld [vmem:[#allocation10 + $0xa98] sm:$0xff] }
 0x374   : > { %3630 = vmatpush.msrb.mxu1 %v3606_v12  ;;  %3676 = vmatpush.msra.mxu0 %v3607_v36  ;;  %v3612_v12 = vld [vmem:[#allocation10 + $0xb80] sm:$0xff]  ;;  %v3613_v36 = vld [vmem:[#allocation10 + $0xb88] sm:$0xff] }
 0x375   : > { %3494 = vmatpush.msra.mxu3 %v3438_v61  ;;  %3540 = vmatpush.msrb.mxu2 %v3439_v17  ;;  %v3580_v61 = vld [vmem:[#allocation10 + $0xa80] sm:$0xff]  ;;  %v3581_v17 = vld [vmem:[#allocation10 + $0xa88] sm:$0xff] }
 0x376   : > { %3631 = vmatpush.msrb.mxu1 %v3604_v46  ;;  %3677 = vmatpush.msra.mxu0 %v3605_v4  ;;  %v3761_v46 = vld [vmem:[#allocation7 + $0xcf0] sm:$0xff]  ;;  %v3762_v4 = vld [vmem:[#allocation7 + $0xcf8] sm:$0xff] }
 0x377   : > { %3495 = vmatpush.msra.mxu3 %v3436_v5  ;;  %3541 = vmatpush.msrb.mxu2 %v3437_v47  ;;  %v3777_v5 = vld [vmem:[#allocation7 + $0xd70] sm:$0xff]  ;;  %v3778_v47 = vld [vmem:[#allocation7 + $0xd78] sm:$0xff] }
 0x378   : > { %3632 = vmatpush.msrb.mxu1 %v3602_v30  ;;  %3678 = vmatpush.msra.mxu0 %v3603_v28  ;;  %v3759_v30 = vld [vmem:[#allocation7 + $0xce0] sm:$0xff]  ;;  %v3760_v28 = vld [vmem:[#allocation7 + $0xce8] sm:$0xff] }
 0x379   : > { %3496 = vmatpush.msra.mxu3 %v3434_v22  ;;  %5014 = vmatmul.msk.f32.gmra.mxu1 %vm834_vm1, %v6489_v62  ;;  %v3775_v22 = vld [vmem:[#allocation7 + $0xd60] sm:$0xff] }
 0x37a   : > { %3542 = vmatpush.msrb.mxu2 %v3435_v55  ;;  %5016 = vmatmul.msk.f32.gmra.mxu0 %vm834_vm1, %v6489_v62  ;;  %v3776_v55 = vld [vmem:[#allocation7 + $0xd68] sm:$0xff] }
 0x37b   : > { %3633 = vmatpush.msrb.mxu1 %v3600_v60  ;;  %3679 = vmatpush.msra.mxu0 %v3601_v33  ;;  %v3757_v60 = vld [vmem:[#allocation7 + $0xcd0] sm:$0xff]  ;;  %v3758_v33 = vld [vmem:[#allocation7 + $0xcd8] sm:$0xff] }
 0x37c   : > { %3497 = vmatpush.msra.mxu3 %v3432_v53  ;;  %3543 = vmatpush.msrb.mxu2 %v3433_v1  ;;  %v3773_v53 = vld [vmem:[#allocation7 + $0xd50] sm:$0xff]  ;;  %v3774_v1 = vld [vmem:[#allocation7 + $0xd58] sm:$0xff] }
 0x37d   : > { %3634 = vmatpush.msrb.mxu1 %v3598_v32  ;;  %3680 = vmatpush.msra.mxu0 %v3599_v39  ;;  %v3755_v32 = vld [vmem:[#allocation7 + $0xcc0] sm:$0xff]  ;;  %v3756_v39 = vld [vmem:[#allocation7 + $0xcc8] sm:$0xff] }
 0x37e   : > { %3498 = vmatpush.msra.mxu3 %v3430_v44  ;;  %3544 = vmatpush.msrb.mxu2 %v3431_v26  ;;  %v3772_v44 = vld [vmem:[#allocation7 + $0xd48] sm:$0xff]  ;;  %v3754_v26 = vld [vmem:[#allocation7 + $0xcb8] sm:$0xff] }
 0x37f   : > { %3635 = vmatpush.msrb.mxu1 %v3596_v58  ;;  %3681 = vmatpush.msra.mxu0 %v3597_v2  ;;  %v3769_v58 = vld [vmem:[#allocation7 + $0xd30] sm:$0xff]  ;;  %v3770_v2 = vld [vmem:[#allocation7 + $0xd38] sm:$0xff] }
 0x380   : > { %3499 = vmatmul.f32.vlgmr.msra.gmra.mxu3 %v6391_v34  ;;  %3545 = vmatmul.f32.vlgmr.msrb.gmra.mxu2 %v6391_v34 }
 0x381   : > { %3659 = vmatpush.msrb.mxu3 %v3626_v0  ;;  %3705 = vmatpush.msra.mxu2 %v3627_v8  ;;  %v3751_v0 = vld [vmem:[#allocation7 + $0xca0] sm:$0xff]  ;;  %v3752_v8 = vld [vmem:[#allocation7 + $0xca8] sm:$0xff] }
 0x382   : > { %3636 = vmatpush.msrb.mxu1 %v3594_v40  ;;  %3682 = vmatpush.msra.mxu0 %v3595_v23  ;;  %v3767_v40 = vld [vmem:[#allocation7 + $0xd20] sm:$0xff]  ;;  %v3768_v23 = vld [vmem:[#allocation7 + $0xd28] sm:$0xff] }
 0x383   : > { %3660 = vmatpush.msrb.mxu3 %v3624_v54  ;;  %3706 = vmatpush.msra.mxu2 %v3625_v48  ;;  %v3749_v54 = vld [vmem:[#allocation7 + $0xc90] sm:$0xff]  ;;  %v3750_v48 = vld [vmem:[#allocation7 + $0xc98] sm:$0xff] }
 0x384   : > { %3637 = vmatpush.msrb.mxu1 %v3592_v35  ;;  %3683 = vmatpush.msra.mxu0 %v3593_v24  ;;  %v3765_v35 = vld [vmem:[#allocation7 + $0xd10] sm:$0xff]  ;;  %v3766_v24 = vld [vmem:[#allocation7 + $0xd18] sm:$0xff] }
 0x385   : > { %3661 = vmatpush.msrb.mxu3 %v3622_v37  ;;  %3707 = vmatpush.msra.mxu2 %v3623_v14 }
 0x386   : > { %3638 = vmatpush.msrb.mxu1 %v3590_v52  ;;  %3684 = vmatpush.msra.mxu0 %v3591_v45  ;;  %v3747_v52 = vld [vmem:[#allocation7 + $0xc80] sm:$0xff]  ;;  %v3748_v45 = vld [vmem:[#allocation7 + $0xc88] sm:$0xff] }
 0x387   : > { %3662 = vmatpush.msrb.mxu3 %v3620_v42  ;;  %3708 = vmatpush.msra.mxu2 %v3621_v38  ;;  %v3763_v38 = vld [vmem:[#allocation7 + $0xd00] sm:$0xff] }
 0x388   : > { %3639 = vmatpush.msrb.mxu1 %v3588_v59  ;;  %3685 = vmatpush.msra.mxu0 %v3589_v41  ;;  %v3764_v59 = vld [vmem:[#allocation7 + $0xd08] sm:$0xff]  ;;  %v3725_v41 = vld [vmem:[#allocation2 + $0x18] sm:$0xfe] }
 0x389   : > { %3502 = vmatmul.f32.gmra.mxu3 %v6406_v21  ;;  %3548 = vmatmul.f32.gmra.mxu2 %v6406_v21 }
 0x38a   : > { %3663 = vmatpush.msrb.mxu3 %v3618_v31  ;;  %3709 = vmatpush.msra.mxu2 %v3619_v19 }
 0x38b   : > { %3640 = vmatpush.msrb.mxu1 %v3586_v51  ;;  %3686 = vmatpush.msra.mxu0 %v3587_v63  ;;  %v3745_v51 = vld [vmem:[#allocation7 + $0xc70] sm:$0xff]  ;;  %v3746_v63 = vld [vmem:[#allocation7 + $0xc78] sm:$0xff] }
 0x38c   : > { %3664 = vmatpush.msrb.mxu3 %v3616_v18  ;;  %3710 = vmatpush.msra.mxu2 %v3617_v15  ;;  %v3789_v18 = vrot.slane %v6489_v62, 1  ;;  %v3928_v15 = vld [vmem:[#allocation10 + $0xcf0] sm:$0xff] }
 0x38d   : > { %3641 = vmatpush.msrb.mxu1 %v3584_v3  ;;  %3687 = vmatpush.msra.mxu0 %v3585_v20  ;;  %v3929_v3 = vld [vmem:[#allocation10 + $0xcf8] sm:$0xff]  ;;  %v3788_v20 = vrot.slane %v3725_v41, 1  ;;  %v3915_v41 = vld [vmem:[#allocation10 + $0xc88] sm:$0xff] }
 0x38e   : > { %3665 = vmatpush.msrb.mxu3 %v3614_v7  ;;  %3711 = vmatpush.msra.mxu2 %v3615_v16  ;;  %v3743_v7 = vld [vmem:[#allocation7 + $0xc60] sm:$0xff]  ;;  %v3744_v16 = vld [vmem:[#allocation7 + $0xc68] sm:$0xff] }
 0x38f   : > { %3642 = vmatpush.msrb.mxu1 %v3582_v50  ;;  %3688 = vmatpush.msra.mxu0 %v3583_v11  ;;  %v6517_v50 = vsel %vm1820_vm4, %v3788_v20, %v3789_v18  ;;  %v3926_v11 = vld [vmem:[#allocation10 + $0xce0] sm:$0xff] }
 0x390   : > { %3666 = vmatpush.msrb.mxu3 %v3612_v12  ;;  %3712 = vmatpush.msra.mxu2 %v3613_v36  ;;  %v3927_v12 = vld [vmem:[#allocation10 + $0xce8] sm:$0xff] }
 0x391   : > { %3643 = vmatpush.msrb.mxu1 %v3580_v61  ;;  %3689 = vmatpush.msra.mxu0 %v3581_v17  ;;  %v3741_v36 = vld [vmem:[#allocation7 + $0xc50] sm:$0xff]  ;;  %v3742_v61 = vld [vmem:[#allocation7 + $0xc58] sm:$0xff] }
 0x392   : > { %3801 = vmatpush.msra.mxu3 %v3761_v46  ;;  %3847 = vmatpush.msrb.mxu2 %v3762_v4  ;;  %v3924_v46 = vld [vmem:[#allocation10 + $0xcd0] sm:$0xff]  ;;  %v3925_v4 = vld [vmem:[#allocation10 + $0xcd8] sm:$0xff] }
 0x393   : > { %3644 = vmatmul.f32.vlgmr.msrb.gmra.mxu1 %v6391_v34  ;;  %5017 = vmatmul.msk.f32.vlgmr.msrb.gmra.mxu3 %vm834_vm1, %v6410_v56 }
 0x394   : > { %3690 = vmatmul.f32.vlgmr.msra.gmra.mxu0 %v6391_v34  ;;  %5019 = vmatmul.msk.f32.vlgmr.msra.gmra.mxu2 %vm834_vm1, %v6410_v56  ;;  %v3771_v34 = vld [vmem:[#allocation7 + $0xd40] sm:$0xff]  ;;  %v3753_v56 = vld [vmem:[#allocation7 + $0xcb0] sm:$0xff] }
 0x395   : > { %3832 = vmatpush.msra.mxu1 %v3777_v5  ;;  %3878 = vmatpush.msrb.mxu0 %v3778_v47  ;;  %v3729_v5 = vld [vmem:[#allocation2 + $0x38] sm:$0x1] }
 0x396   : > { %3802 = vmatpush.msra.mxu3 %v3759_v30  ;;  %3848 = vmatpush.msrb.mxu2 %v3760_v28  ;;  %v3739_v30 = vld [vmem:[#allocation7 + $0xc40] sm:$0xff]  ;;  %v3740_v28 = vld [vmem:[#allocation7 + $0xc48] sm:$0xff] }
 0x397   : > { %3833 = vmatpush.msra.mxu1 %v3775_v22  ;;  %3879 = vmatpush.msrb.mxu0 %v3776_v55  ;;  %v3922_v22 = vld [vmem:[#allocation10 + $0xcc0] sm:$0xff]  ;;  %v3923_v55 = vld [vmem:[#allocation10 + $0xcc8] sm:$0xff] }
 0x398   : > { %3803 = vmatpush.msra.mxu3 %v3757_v60  ;;  %3849 = vmatpush.msrb.mxu2 %v3758_v33  ;;  %v3737_v60 = vld [vmem:[#allocation7 + $0xc30] sm:$0xff]  ;;  %v3738_v33 = vld [vmem:[#allocation7 + $0xc38] sm:$0xff] }
 0x399   : > { %3834 = vmatpush.msra.mxu1 %v3773_v53  ;;  %3880 = vmatpush.msrb.mxu0 %v3774_v1  ;;  %v3793_v53 = vrot.slane %v3729_v5, 1  ;;  %v3920_v1 = vld [vmem:[#allocation10 + $0xcb0] sm:$0xff] }
 0x39a   : > { %3804 = vmatpush.msra.mxu3 %v3755_v32  ;;  %3850 = vmatpush.msrb.mxu2 %v3756_v39  ;;  %v3921_v32 = vld [vmem:[#allocation10 + $0xcb8] sm:$0xff] }
 0x39b   : > { %3835 = vmatpush.msra.mxu1 %v3771_v34  ;;  %3881 = vmatpush.msrb.mxu0 %v3772_v44  ;;  %v3735_v34 = vld [vmem:[#allocation7 + $0xc20] sm:$0xff]  ;;  %v3736_v44 = vld [vmem:[#allocation7 + $0xc28] sm:$0xff] }
 0x39c   : > { %3805 = vmatpush.msra.mxu3 %v3753_v56  ;;  %3851 = vmatpush.msrb.mxu2 %v3754_v26 }
 0x39d   : > { %3647 = vmatmul.f32.gmra.mxu1 %v6406_v21  ;;  %5018 = vmatmul.msk.f32.gmra.mxu3 %vm834_vm1, %v6489_v62  ;;  %v3053_v42 = vpop.f32.mrf.mxu2 }
 0x39e   : > { %3693 = vmatmul.f32.gmra.mxu0 %v6406_v21  ;;  %5020 = vmatmul.msk.f32.gmra.mxu2 %vm834_vm1, %v6489_v62  ;;  %v3007_v21 = vpop.f32.mrf.mxu3 }
 0x39f   : > { %3836 = vmatpush.msra.mxu1 %v3769_v58  ;;  %3882 = vmatpush.msrb.mxu0 %v3770_v2  ;;  %v6526_v58 = vsel %vm1820_vm4, %v3789_v18, %v3793_v53  ;;  %v3918_v2 = vld [vmem:[#allocation10 + $0xca0] sm:$0xff] }
 0x3a0   : > { %3806 = vmatpush.msra.mxu3 %v3751_v0  ;;  %3852 = vmatpush.msrb.mxu2 %v3752_v8  ;;  %v3030_v37 = vpop.f32.mrf.mxu1  ;;  %v3076_v14 = vpop.f32.mrf.mxu0  ;;  %v3919_v0 = vld [vmem:[#allocation10 + $0xca8] sm:$0xff]  ;;  %v6528_v8 = vld [vmem:[#allocation2 + $0x20] sm:$0xff] }
 0x3a1   : > { %3837 = vmatpush.msra.mxu1 %v3767_v40  ;;  %3883 = vmatpush.msrb.mxu0 %v3768_v23  ;;  %v6511_v31 = vadd.f32 %v3030_v37, %v3007_v21  ;;  %v6513_v19 = vadd.f32 %v3076_v14, %v3053_v42  ;;  %v3733_v23 = vld [vmem:[#allocation7 + $0xc10] sm:$0xff]  ;;  %v3732_v21 = vld [vmem:[#allocation7 + $0xc08] sm:$0xff]  ;;  %v3786_v42 = vrot.slane %v6528_v8, 1 }
 0x3a2   : > { %3807 = vmatpush.msra.mxu3 %v3749_v54  ;;  %3853 = vmatpush.msrb.mxu2 %v3750_v48  ;;  %v3734_v54 = vld [vmem:[#allocation7 + $0xc18] sm:$0xff]  ;;  %v3724_v37 = vld [vmem:[#allocation2 + $0x10] sm:$0xfe] }
 0x3a3   : > { %3838 = vmatpush.msra.mxu1 %v3765_v35  ;;  %3884 = vmatpush.msrb.mxu0 %v3766_v24  ;;  %v3916_v35 = vld [vmem:[#allocation10 + $0xc90] sm:$0xff]  ;;  %v3917_v24 = vld [vmem:[#allocation10 + $0xc98] sm:$0xff] }
 0x3a4   : > { %3808 = vmatpush.msra.mxu3 %v3747_v52  ;;  %3854 = vmatpush.msrb.mxu2 %v3748_v45  ;;  %v3731_v45 = vld [vmem:[#allocation7 + $0xc00] sm:$0xff] }
 0x3a5   : > { %3839 = vmatpush.msra.mxu1 %v3763_v38  ;;  %3885 = vmatpush.msrb.mxu0 %v3764_v59  ;;  %v3914_v59 = vld [vmem:[#allocation10 + $0xc80] sm:$0xff] }
 0x3a6   : > { %3809 = vmatpush.msra.mxu3 %v3745_v51  ;;  %3855 = vmatpush.msrb.mxu2 %v3746_v63  ;;  %v3785_v51 = vrot.slane %v3724_v37, 1  ;;  %v3944_v63 = vld [vmem:[#allocation10 + $0xd70] sm:$0xff] }
 0x3a7   : > { %3946 = vmatpush.msrb.mxu1 %v3928_v15  ;;  %3992 = vmatpush.msra.mxu0 %v3929_v3  ;;  %v3912_v15 = vld [vmem:[#allocation10 + $0xc70] sm:$0xff]  ;;  %v3913_v3 = vld [vmem:[#allocation10 + $0xc78] sm:$0xff] }
 0x3a8   : > { %5021 = vmatmul.msk.f32.vlgmr.msra.gmra.mxu1 %vm834_vm1, %v6517_v50  ;;  %5023 = vmatmul.msk.f32.vlgmr.msrb.gmra.mxu0 %vm834_vm1, %v6517_v50  ;;  %v3033_v17 = vpop.f32.mrf.mxu1  ;;  %v6540_v18 = vsel %vm1820_vm4, %v3785_v51, %v3786_v42  ;;  %v3932_v37 = vld [vmem:[#allocation10 + $0xd10] sm:$0xff] }
 0x3a9   : > { %3810 = vmatpush.msra.mxu3 %v3743_v7  ;;  %3856 = vmatpush.msrb.mxu2 %v3744_v16  ;;  %v3079_v47 = vpop.f32.mrf.mxu0  ;;  %v3943_v7 = vld [vmem:[#allocation10 + $0xd68] sm:$0xff] }
 0x3aa   : > { %3947 = vmatpush.msrb.mxu1 %v3926_v11  ;;  %3993 = vmatpush.msra.mxu0 %v3927_v12  ;;  %v3910_v12 = vld [vmem:[#allocation10 + $0xc60] sm:$0xff] }
 0x3ab   : > { %3811 = vmatpush.msra.mxu3 %v3741_v36  ;;  %3857 = vmatpush.msrb.mxu2 %v3742_v61  ;;  %v3911_v36 = vld [vmem:[#allocation10 + $0xc68] sm:$0xff] }
 0x3ac   : > { %3948 = vmatpush.msrb.mxu1 %v3924_v46  ;;  %3994 = vmatpush.msra.mxu0 %v3925_v4  ;;  %v3728_v61 = vld [vmem:[#allocation2 + $0x30] sm:$0x1]  ;;  %v3940_v46 = vld [vmem:[#allocation10 + $0xd50] sm:$0xff]  ;;  %v3941_v4 = vld [vmem:[#allocation10 + $0xd58] sm:$0xff] }
 0x3ad   : > { %3812 = vmatpush.msra.mxu3 %v3739_v30  ;;  %3858 = vmatpush.msrb.mxu2 %v3740_v28  ;;  %v3909_v30 = vld [vmem:[#allocation10 + $0xc58] sm:$0xff] }
 0x3ae   : > { %3949 = vmatpush.msrb.mxu1 %v3922_v22  ;;  %3995 = vmatpush.msra.mxu0 %v3923_v55  ;;  %v3010_v39 = vpop.f32.mrf.mxu3  ;;  %v3938_v55 = vld [vmem:[#allocation10 + $0xd40] sm:$0xff] }
 0x3af   : > { %3813 = vmatpush.msra.mxu3 %v3737_v60  ;;  %3859 = vmatpush.msrb.mxu2 %v3738_v33  ;;  %v6523_v56 = vadd.f32 %v3033_v17, %v3010_v39  ;;  %v3056_v26 = vpop.f32.mrf.mxu2  ;;  %v3939_v60 = vld [vmem:[#allocation10 + $0xd48] sm:$0xff]  ;;  %v3791_v33 = vrot.slane %v3728_v61, 1  ;;  %v3936_v39 = vld [vmem:[#allocation10 + $0xd30] sm:$0xff] }
 0x3b0   : > { %3950 = vmatpush.msrb.mxu1 %v3920_v1  ;;  %3996 = vmatpush.msra.mxu0 %v3921_v32  ;;  %v6530_v40 = vadd.f32 %v3079_v47, %v3056_v26  ;;  %v3908_v47 = vld [vmem:[#allocation10 + $0xc50] sm:$0xff]  ;;  %v3906_v1 = vld [vmem:[#allocation10 + $0xc40] sm:$0xff]  ;;  %v3907_v32 = vld [vmem:[#allocation10 + $0xc48] sm:$0xff] }
 0x3b1   : > { %5022 = vmatmul.msk.f32.gmra.mxu1 %vm834_vm1, %v6526_v58  ;;  %5024 = vmatmul.msk.f32.gmra.mxu0 %vm834_vm1, %v6526_v58  ;;  %v3119_v48 = vpop.f32.mrf.mxu1  ;;  %v3905_v26 = vld [vmem:[#allocation10 + $0xc38] sm:$0xff]  ;;  %v4092_v61 = vld [vmem:[#allocation7 + $0xee8] sm:$0xff] }
 0x3b2   : > { %3814 = vmatpush.msra.mxu3 %v3735_v34  ;;  %3860 = vmatpush.msrb.mxu2 %v3736_v44  ;;  %v3120_v14 = vadd.f32 %v3119_v48, %v6511_v31  ;;  %v3165_v52 = vpop.f32.mrf.mxu0  ;;  %v3945_v31 = vld [vmem:[#allocation10 + $0xd78] sm:$0xff]  ;;  %v6551_v44 = vsel %vm1820_vm4, %v3786_v42, %v3791_v33  ;;  %v3902_v48 = vld [vmem:[#allocation10 + $0xc20] sm:$0xff]  ;;  %v3931_v42 = vld [vmem:[#allocation10 + $0xd08] sm:$0xff] }
 0x3b3   : > { %3951 = vmatpush.msrb.mxu1 %v3918_v2  ;;  %3997 = vmatpush.msra.mxu0 %v3919_v0  ;;  %v3166_v38 = vadd.f32 %v3165_v52, %v6513_v19  ;;  %v3942_v19 = vld [vmem:[#allocation10 + $0xd60] sm:$0xff]  ;;  %v3937_v34 = vld [vmem:[#allocation10 + $0xd38] sm:$0xff]  ;;  %v3900_v52 = vld [vmem:[#allocation10 + $0xc10] sm:$0xff] }
 0x3b4   : > { %3815 = vmatpush.msra.mxu3 %v3733_v23  ;;  %3861 = vmatpush.msrb.mxu2 %v3734_v54  ;;  %v3934_v0 = vld [vmem:[#allocation10 + $0xd20] sm:$0xff]  ;;  %v4069_v33 = vld [vmem:[#allocation7 + $0xe30] sm:$0xff] }
 0x3b5   : > { %3952 = vmatpush.msrb.mxu1 %v3916_v35  ;;  %3998 = vmatpush.msra.mxu0 %v3917_v24  ;;  %v3903_v35 = vld [vmem:[#allocation10 + $0xc28] sm:$0xff] }
 0x3b6   : > { %3816 = vmatpush.msra.mxu3 %v3731_v45  ;;  %3862 = vmatpush.msrb.mxu2 %v3732_v21  ;;  %v3901_v45 = vld [vmem:[#allocation10 + $0xc18] sm:$0xff]  ;;  %v3930_v21 = vld [vmem:[#allocation10 + $0xd00] sm:$0xff] }
 0x3b7   : > { %3953 = vmatpush.msrb.mxu1 %v3914_v59  ;;  %3999 = vmatpush.msra.mxu0 %v3915_v41  ;;  %v3142_v20 = vpop.f32.mrf.mxu3  ;;  %v3898_v59 = vld [vmem:[#allocation10 + $0xc00] sm:$0xff]  ;;  %v3899_v41 = vld [vmem:[#allocation10 + $0xc08] sm:$0xff] }
 0x3b8   : > { %3817 = vmatmul.f32.vlgmr.msra.gmra.mxu3 %v6540_v18  ;;  %3863 = vmatmul.f32.vlgmr.msrb.gmra.mxu2 %v6540_v18  ;;  %v6544_v16 = vadd.f32 %v3142_v20, %v3120_v14  ;;  %v3188_v11 = vpop.f32.mrf.mxu2  ;;  %v3933_v14 = vld [vmem:[#allocation10 + $0xd18] sm:$0xff] }
 0x3b9   : > { %3977 = vmatpush.msrb.mxu3 %v3944_v63  ;;  %4023 = vmatpush.msra.mxu2 %v3945_v31  ;;  %v6546_v17 = vadd.f32 %v3188_v11, %v3166_v38  ;;  %v4077_v63 = vld [vmem:[#allocation7 + $0xe70] sm:$0xff]  ;;  %v4078_v31 = vld [vmem:[#allocation7 + $0xe78] sm:$0xff] }
 0x3ba   : > { %3954 = vmatpush.msrb.mxu1 %v3912_v15  ;;  %4000 = vmatpush.msra.mxu0 %v3913_v3  ;;  %v3122_v5 = vpop.f32.mrf.mxu1  ;;  %v4093_v15 = vld [vmem:[#allocation7 + $0xef0] sm:$0xff]  ;;  %v4094_v3 = vld [vmem:[#allocation7 + $0xef8] sm:$0xff] }
 0x3bb   : > { %3978 = vmatpush.msrb.mxu3 %v3942_v19  ;;  %4024 = vmatpush.msra.mxu2 %v3943_v7  ;;  %v3123_v28 = vadd.f32 %v3122_v5, %v6523_v56  ;;  %v3168_v22 = vpop.f32.mrf.mxu0  ;;  %v3904_v56 = vld [vmem:[#allocation10 + $0xc30] sm:$0xff]  ;;  %v4075_v19 = vld [vmem:[#allocation7 + $0xe60] sm:$0xff]  ;;  %v4076_v7 = vld [vmem:[#allocation7 + $0xe68] sm:$0xff] }
 0x3bc   : > { %3955 = vmatpush.msrb.mxu1 %v3910_v12  ;;  %4001 = vmatpush.msra.mxu0 %v3911_v36  ;;  %v3169_v53 = vadd.f32 %v3168_v22, %v6530_v40  ;;  %v3935_v40 = vld [vmem:[#allocation10 + $0xd28] sm:$0xff]  ;;  %v4091_v36 = vld [vmem:[#allocation7 + $0xee0] sm:$0xff]  ;;  %v4074_v5 = vld [vmem:[#allocation7 + $0xe58] sm:$0xff] }
 0x3bd   : > { %3979 = vmatpush.msrb.mxu3 %v3940_v46  ;;  %4025 = vmatpush.msra.mxu2 %v3941_v4  ;;  %v4073_v4 = vld [vmem:[#allocation7 + $0xe50] sm:$0xff]  ;;  %v4072_v22 = vld [vmem:[#allocation7 + $0xe48] sm:$0xff] }
 0x3be   : > { %3956 = vmatpush.msrb.mxu1 %v3908_v47  ;;  %4002 = vmatpush.msra.mxu0 %v3909_v30  ;;  %v4089_v47 = vld [vmem:[#allocation7 + $0xed0] sm:$0xff]  ;;  %v4090_v30 = vld [vmem:[#allocation7 + $0xed8] sm:$0xff] }
 0x3bf   : > { %3980 = vmatpush.msrb.mxu3 %v3938_v55  ;;  %4026 = vmatpush.msra.mxu2 %v3939_v60  ;;  %v4088_v55 = vld [vmem:[#allocation7 + $0xec8] sm:$0xff] }
 0x3c0   : > { %3957 = vmatpush.msrb.mxu1 %v3906_v1  ;;  %4003 = vmatpush.msra.mxu0 %v3907_v32  ;;  %v3145_v2 = vpop.f32.mrf.mxu3  ;;  %v4085_v1 = vld [vmem:[#allocation7 + $0xeb0] sm:$0xff]  ;;  %v4086_v32 = vld [vmem:[#allocation7 + $0xeb8] sm:$0xff] }
 0x3c1   : > { %3820 = vmatmul.f32.gmra.mxu3 %v6551_v44  ;;  %3866 = vmatmul.f32.gmra.mxu2 %v6551_v44  ;;  %v6555_v23 = vadd.f32 %v3145_v2, %v3123_v28  ;;  %v3191_v54 = vpop.f32.mrf.mxu2  ;;  %v4071_v28 = vld [vmem:[#allocation7 + $0xe40] sm:$0xff] }
 0x3c2   : > { %3981 = vmatpush.msrb.mxu3 %v3936_v39  ;;  %4027 = vmatpush.msra.mxu2 %v3937_v34  ;;  %v6557_v24 = vadd.f32 %v3191_v54, %v3169_v53  ;;  %v4070_v53 = vld [vmem:[#allocation7 + $0xe38] sm:$0xff]  ;;  %v4067_v34 = vld [vmem:[#allocation7 + $0xe20] sm:$0xff] }
 0x3c3   : > { %3958 = vmatpush.msrb.mxu1 %v3904_v56  ;;  %4004 = vmatpush.msra.mxu0 %v3905_v26  ;;  %v4068_v56 = vld [vmem:[#allocation7 + $0xe28] sm:$0xff] }
 0x3c4   : > { %3982 = vmatpush.msrb.mxu3 %v3934_v0  ;;  %4028 = vmatpush.msra.mxu2 %v3935_v40  ;;  %v3283_v38 = vpop.f32.mrf.mxu1  ;;  %v4083_v0 = vld [vmem:[#allocation7 + $0xea0] sm:$0xff]  ;;  %v4084_v40 = vld [vmem:[#allocation7 + $0xea8] sm:$0xff] }
 0x3c5   : > { %3959 = vmatpush.msrb.mxu1 %v3902_v48  ;;  %4005 = vmatpush.msra.mxu0 %v3903_v35  ;;  %v3329_v51 = vpop.f32.mrf.mxu0  ;;  %v4065_v48 = vld [vmem:[#allocation7 + $0xe10] sm:$0xff]  ;;  %v4066_v35 = vld [vmem:[#allocation7 + $0xe18] sm:$0xff] }
 0x3c6   : > { %3983 = vmatpush.msrb.mxu3 %v3932_v37  ;;  %4029 = vmatpush.msra.mxu2 %v3933_v14  ;;  %v4081_v37 = vld [vmem:[#allocation7 + $0xe90] sm:$0xff]  ;;  %v4082_v14 = vld [vmem:[#allocation7 + $0xe98] sm:$0xff] }
 0x3c7   : > { %3960 = vmatpush.msrb.mxu1 %v3900_v52  ;;  %4006 = vmatpush.msra.mxu0 %v3901_v45  ;;  %v4063_v52 = vld [vmem:[#allocation7 + $0xe00] sm:$0xff]  ;;  %v4064_v45 = vld [vmem:[#allocation7 + $0xe08] sm:$0xff] }
 0x3c8   : > { %3984 = vmatpush.msrb.mxu3 %v3930_v21  ;;  %4030 = vmatpush.msra.mxu2 %v3931_v42  ;;  %v4080_v21 = vld [vmem:[#allocation7 + $0xe88] sm:$0xff]  ;;  %v4043_v42 = vld [vmem:[#allocation2 + $0x18] sm:$0xfc] }
 0x3c9   : > { %3961 = vmatpush.msrb.mxu1 %v3898_v59  ;;  %4007 = vmatpush.msra.mxu0 %v3899_v41  ;;  %v4061_v41 = vld [vmem:[#allocation7 + $0xdf0] sm:$0xff] }
 0x3ca   : > { %4115 = vmatpush.msra.mxu3 %v4077_v63  ;;  %4161 = vmatpush.msrb.mxu2 %v4078_v31  ;;  %v3260_v20 = vpop.f32.mrf.mxu3  ;;  %v4103_v63 = vrot.slane %v6489_v62, 2  ;;  %v4241_v62 = vld [vmem:[#allocation10 + $0xe68] sm:$0xff] }
 0x3cb   : > { %3962 = vmatmul.f32.vlgmr.msrb.gmra.mxu1 %v6540_v18  ;;  %5025 = vmatmul.msk.f32.vlgmr.msrb.gmra.mxu3 %vm834_vm1, %v6517_v50  ;;  %v6562_v11 = vadd.f32 %v3283_v38, %v3260_v20  ;;  %v3306_v12 = vpop.f32.mrf.mxu2  ;;  %v4102_v20 = vrot.slane %v4043_v42, 2 }
 0x3cc   : > { %4008 = vmatmul.f32.vlgmr.msra.gmra.mxu0 %v6540_v18  ;;  %5027 = vmatmul.msk.f32.vlgmr.msra.gmra.mxu2 %vm834_vm1, %v6517_v50  ;;  %v6567_v46 = vadd.f32 %v3329_v51, %v3306_v12  ;;  %v4087_v50 = vld [vmem:[#allocation7 + $0xec0] sm:$0xff]  ;;  %v4062_v51 = vld [vmem:[#allocation7 + $0xdf8] sm:$0xff] }
 0x3cd   : > { %4146 = vmatpush.msra.mxu1 %v4093_v15  ;;  %4192 = vmatpush.msrb.mxu0 %v4094_v3  ;;  %v4242_v15 = vld [vmem:[#allocation10 + $0xe70] sm:$0xff]  ;;  %v4243_v3 = vld [vmem:[#allocation10 + $0xe78] sm:$0xff]  ;;  %v4240_v12 = vld [vmem:[#allocation10 + $0xe60] sm:$0xff] }
 0x3ce   : > { %4116 = vmatpush.msra.mxu3 %v4075_v19  ;;  %4162 = vmatpush.msrb.mxu2 %v4076_v7  ;;  %v3286_v18 = vpop.f32.mrf.mxu1  ;;  %v4059_v19 = vld [vmem:[#allocation7 + $0xde0] sm:$0xff]  ;;  %v4060_v7 = vld [vmem:[#allocation7 + $0xde8] sm:$0xff] }
 0x3cf   : > { %4147 = vmatpush.msra.mxu1 %v4091_v36  ;;  %4193 = vmatpush.msrb.mxu0 %v4092_v61  ;;  %v3332_v60 = vpop.f32.mrf.mxu0  ;;  %v4057_v61 = vld [vmem:[#allocation7 + $0xdd0] sm:$0xff] }
 0x3d0   : > { %4117 = vmatpush.msra.mxu3 %v4073_v4  ;;  %4163 = vmatpush.msrb.mxu2 %v4074_v5 }
 0x3d1   : > { %4148 = vmatpush.msra.mxu1 %v4089_v47  ;;  %4194 = vmatpush.msrb.mxu0 %v4090_v30  ;;  %v4238_v47 = vld [vmem:[#allocation10 + $0xe50] sm:$0xff]  ;;  %v4239_v30 = vld [vmem:[#allocation10 + $0xe58] sm:$0xff] }
 0x3d2   : > { %4118 = vmatpush.msra.mxu3 %v4071_v28  ;;  %4164 = vmatpush.msrb.mxu2 %v4072_v22  ;;  %v4045_v28 = vld [vmem:[#allocation2 + $0x38] sm:$0x3] }
 0x3d3   : > { %4149 = vmatpush.msra.mxu1 %v4087_v50  ;;  %4195 = vmatpush.msrb.mxu0 %v4088_v55  ;;  %v4056_v50 = vld [vmem:[#allocation7 + $0xdc8] sm:$0xff] }
 0x3d4   : > { %4119 = vmatpush.msra.mxu3 %v4069_v33  ;;  %4165 = vmatpush.msrb.mxu2 %v4070_v53  ;;  %v3263_v39 = vpop.f32.mrf.mxu3  ;;  %v4236_v55 = vld [vmem:[#allocation10 + $0xe40] sm:$0xff]  ;;  %v4053_v53 = vld [vmem:[#allocation7 + $0xdb0] sm:$0xff] }
 0x3d5   : > { %3965 = vmatmul.f32.gmra.mxu1 %v6551_v44  ;;  %5026 = vmatmul.msk.f32.gmra.mxu3 %vm834_vm1, %v6526_v58  ;;  %v6572_v26 = vadd.f32 %v3286_v18, %v3263_v39  ;;  %v3309_v2 = vpop.f32.mrf.mxu2  ;;  %v4055_v18 = vld [vmem:[#allocation7 + $0xdc0] sm:$0xff] }
 0x3d6   : > { %4011 = vmatmul.f32.gmra.mxu0 %v6551_v44  ;;  %5028 = vmatmul.msk.f32.gmra.mxu2 %vm834_vm1, %v6526_v58  ;;  %v6577_v54 = vadd.f32 %v3332_v60, %v3309_v2  ;;  %v4079_v58 = vld [vmem:[#allocation7 + $0xe80] sm:$0xff]  ;;  %v4237_v60 = vld [vmem:[#allocation10 + $0xe48] sm:$0xff] }
 0x3d7   : > { %4150 = vmatpush.msra.mxu1 %v4085_v1  ;;  %4196 = vmatpush.msrb.mxu0 %v4086_v32  ;;  %v4054_v1 = vld [vmem:[#allocation7 + $0xdb8] sm:$0xff]  ;;  %v4107_v32 = vrot.slane %v4045_v28, 2 }
 0x3d8   : > { %4120 = vmatpush.msra.mxu3 %v4067_v34  ;;  %4166 = vmatpush.msrb.mxu2 %v4068_v56  ;;  %v4234_v56 = vld [vmem:[#allocation10 + $0xe30] sm:$0xff]  ;;  %v4235_v2 = vld [vmem:[#allocation10 + $0xe38] sm:$0xff] }
 0x3d9   : > { %4151 = vmatpush.msra.mxu1 %v4083_v0  ;;  %4197 = vmatpush.msrb.mxu0 %v4084_v40  ;;  %v3352_v44 = vpop.f32.mrf.mxu1  ;;  %v4051_v40 = vld [vmem:[#allocation7 + $0xda0] sm:$0xff] }
 0x3da   : > { %4121 = vmatpush.msra.mxu3 %v4065_v48  ;;  %4167 = vmatpush.msrb.mxu2 %v4066_v35  ;;  %v3353_v38 = vadd.f32 %v3352_v44, %v6562_v11  ;;  %v3398_v59 = vpop.f32.mrf.mxu0  ;;  %v6583_v11 = vsel %vm2135_vm5, %v4102_v20, %v4103_v63  ;;  %v4052_v48 = vld [vmem:[#allocation7 + $0xda8] sm:$0xff]  ;;  %v6596_v35 = vsel %vm2135_vm5, %v4103_v63, %v4107_v32  ;;  %v4231_v44 = vld [vmem:[#allocation10 + $0xe18] sm:$0xff]  ;;  %v4226_v20 = vld [vmem:[#allocation10 + $0xdf0] sm:$0xff] }
 0x3db   : > { %4152 = vmatpush.msra.mxu1 %v4081_v37  ;;  %4198 = vmatpush.msrb.mxu0 %v4082_v14  ;;  %v3399_v31 = vadd.f32 %v3398_v59, %v6567_v46  ;;  %v4058_v46 = vld [vmem:[#allocation7 + $0xdd8] sm:$0xff]  ;;  %v4232_v37 = vld [vmem:[#allocation10 + $0xe20] sm:$0xff] }
 0x3dc   : > { %4122 = vmatpush.msra.mxu3 %v4063_v52  ;;  %4168 = vmatpush.msrb.mxu2 %v4064_v45  ;;  %v4050_v14 = vld [vmem:[#allocation7 + $0xd98] sm:$0xff]  ;;  %v4048_v59 = vld [vmem:[#allocation7 + $0xd88] sm:$0xff] }
 0x3dd   : > { %4153 = vmatpush.msra.mxu1 %v4079_v58  ;;  %4199 = vmatpush.msrb.mxu0 %v4080_v21  ;;  %v4230_v45 = vld [vmem:[#allocation10 + $0xe10] sm:$0xff]  ;;  %v4228_v63 = vld [vmem:[#allocation10 + $0xe00] sm:$0xff]  ;;  %v4255_v28 = vld [vmem:[#allocation10 + $0xed8] sm:$0xff] }
 0x3de   : > { %4123 = vmatpush.msra.mxu3 %v4061_v41  ;;  %4169 = vmatpush.msrb.mxu2 %v4062_v51  ;;  %v4042_v58 = vld [vmem:[#allocation2 + $0x10] sm:$0xfc]  ;;  %v4100_v41 = vrot.slane %v6528_v8, 2  ;;  %v4259_v8 = vld [vmem:[#allocation10 + $0xef8] sm:$0xff] }
 0x3df   : > { %4260 = vmatpush.msrb.mxu1 %v4242_v15  ;;  %4306 = vmatpush.msra.mxu0 %v4243_v3  ;;  %v3375_v36 = vpop.f32.mrf.mxu3  ;;  %v4099_v15 = vrot.slane %v4042_v58, 2  ;;  %v4258_v3 = vld [vmem:[#allocation10 + $0xef0] sm:$0xff] }
 0x3e0   : > { %5029 = vmatmul.msk.f32.vlgmr.msra.gmra.mxu1 %vm834_vm1, %v6583_v11  ;;  %5031 = vmatmul.msk.f32.vlgmr.msrb.gmra.mxu0 %vm834_vm1, %v6583_v11  ;;  %v6589_v4 = vadd.f32 %v3375_v36, %v3353_v38  ;;  %v3421_v5 = vpop.f32.mrf.mxu2  ;;  %v4047_v38 = vld [vmem:[#allocation7 + $0xd80] sm:$0xff]  ;;  %v4225_v36 = vld [vmem:[#allocation10 + $0xde8] sm:$0xff] }
 0x3e1   : > { %4124 = vmatpush.msra.mxu3 %v4059_v19  ;;  %4170 = vmatpush.msrb.mxu2 %v4060_v7  ;;  %v6591_v22 = vadd.f32 %v3421_v5, %v3399_v31  ;;  %v4229_v31 = vld [vmem:[#allocation10 + $0xe08] sm:$0xff]  ;;  %v6608_v19 = vsel %vm2135_vm5, %v4099_v15, %v4100_v41  ;;  %v4227_v7 = vld [vmem:[#allocation10 + $0xdf8] sm:$0xff]  ;;  %v4254_v5 = vld [vmem:[#allocation10 + $0xed0] sm:$0xff] }
 0x3e2   : > { %4261 = vmatpush.msrb.mxu1 %v4240_v12  ;;  %4307 = vmatpush.msra.mxu0 %v4241_v62  ;;  %v4256_v12 = vld [vmem:[#allocation10 + $0xee0] sm:$0xff] }
 0x3e3   : > { %4125 = vmatpush.msra.mxu3 %v4057_v61  ;;  %4171 = vmatpush.msrb.mxu2 %v4058_v46  ;;  %v3355_v33 = vpop.f32.mrf.mxu1  ;;  %v4224_v62 = vld [vmem:[#allocation10 + $0xde0] sm:$0xff]  ;;  %v4257_v61 = vld [vmem:[#allocation10 + $0xee8] sm:$0xff] }
 0x3e4   : > { %4262 = vmatpush.msrb.mxu1 %v4238_v47  ;;  %4308 = vmatpush.msra.mxu0 %v4239_v30  ;;  %v3356_v39 = vadd.f32 %v3355_v33, %v6572_v26  ;;  %v3401_v34 = vpop.f32.mrf.mxu0  ;;  %v4233_v26 = vld [vmem:[#allocation10 + $0xe28] sm:$0xff]  ;;  %v4222_v47 = vld [vmem:[#allocation10 + $0xdd0] sm:$0xff]  ;;  %v4223_v30 = vld [vmem:[#allocation10 + $0xdd8] sm:$0xff] }
 0x3e5   : > { %4126 = vmatpush.msra.mxu3 %v4055_v18  ;;  %4172 = vmatpush.msrb.mxu2 %v4056_v50  ;;  %v3402_v0 = vadd.f32 %v3401_v34, %v6577_v54  ;;  %v4049_v54 = vld [vmem:[#allocation7 + $0xd90] sm:$0xff]  ;;  %v4044_v46 = vld [vmem:[#allocation2 + $0x30] sm:$0x3]  ;;  %v4252_v18 = vld [vmem:[#allocation10 + $0xec0] sm:$0xff] }
 0x3e6   : > { %4263 = vmatpush.msrb.mxu1 %v4236_v55  ;;  %4309 = vmatpush.msra.mxu0 %v4237_v60  ;;  %v4220_v50 = vld [vmem:[#allocation10 + $0xdc0] sm:$0xff]  ;;  %v4105_v55 = vrot.slane %v4044_v46, 2  ;;  %v4221_v60 = vld [vmem:[#allocation10 + $0xdc8] sm:$0xff]  ;;  %v4251_v34 = vld [vmem:[#allocation10 + $0xeb8] sm:$0xff] }
 0x3e7   : > { %4127 = vmatpush.msra.mxu3 %v4053_v53  ;;  %4173 = vmatpush.msrb.mxu2 %v4054_v1  ;;  %v4253_v33 = vld [vmem:[#allocation10 + $0xec8] sm:$0xff]  ;;  %v4250_v53 = vld [vmem:[#allocation10 + $0xeb0] sm:$0xff] }
 0x3e8   : > { %4264 = vmatpush.msrb.mxu1 %v4234_v56  ;;  %4310 = vmatpush.msra.mxu0 %v4235_v2  ;;  %v4218_v1 = vld [vmem:[#allocation10 + $0xdb0] sm:$0xff]  ;;  %v4106_v32 = vsel %vm2135_vm5, %v4100_v41, %v4105_v55  ;;  %v4248_v56 = vld [vmem:[#allocation10 + $0xea0] sm:$0xff] }
 0x3e9   : > { %5030 = vmatmul.msk.f32.gmra.mxu1 %vm834_vm1, %v6596_v35  ;;  %5032 = vmatmul.msk.f32.gmra.mxu0 %vm834_vm1, %v6596_v35  ;;  %v3378_v52 = vpop.f32.mrf.mxu3  ;;  %v4216_v2 = vld [vmem:[#allocation10 + $0xda0] sm:$0xff] }
 0x3ea   : > { %4128 = vmatpush.msra.mxu3 %v4051_v40  ;;  %4174 = vmatpush.msrb.mxu2 %v4052_v48  ;;  %v6602_v21 = vadd.f32 %v3378_v52, %v3356_v39  ;;  %v3424_v42 = vpop.f32.mrf.mxu2  ;;  %v4219_v39 = vld [vmem:[#allocation10 + $0xdb8] sm:$0xff]  ;;  %v4249_v40 = vld [vmem:[#allocation10 + $0xea8] sm:$0xff]  ;;  %v4246_v48 = vld [vmem:[#allocation10 + $0xe90] sm:$0xff] }
 0x3eb   : > { %4265 = vmatpush.msrb.mxu1 %v4232_v37  ;;  %4311 = vmatpush.msra.mxu0 %v4233_v26  ;;  %v6605_v51 = vadd.f32 %v3424_v42, %v3402_v0  ;;  %v4217_v0 = vld [vmem:[#allocation10 + $0xda8] sm:$0xff]  ;;  %v4214_v37 = vld [vmem:[#allocation10 + $0xd90] sm:$0xff]  ;;  %v4215_v26 = vld [vmem:[#allocation10 + $0xd98] sm:$0xff] }
 0x3ec   : > { %4129 = vmatpush.msra.mxu3 %v4049_v54  ;;  %4175 = vmatpush.msrb.mxu2 %v4050_v14  ;;  %v4247_v54 = vld [vmem:[#allocation10 + $0xe98] sm:$0xff]  ;;  %v4244_v14 = vld [vmem:[#allocation10 + $0xe80] sm:$0xff] }
 0x3ed   : > { %4266 = vmatpush.msrb.mxu1 %v4230_v45  ;;  %4312 = vmatpush.msra.mxu0 %v4231_v44  ;;  %v4212_v52 = vld [vmem:[#allocation10 + $0xd80] sm:$0xff]  ;;  %v4213_v45 = vld [vmem:[#allocation10 + $0xd88] sm:$0xff]  ;;  %v3523_v58 = vpop.f32.mrf.mxu1 }
 0x3ee   : > { %4130 = vmatpush.msra.mxu3 %v4047_v38  ;;  %4176 = vmatpush.msrb.mxu2 %v4048_v59  ;;  %v4245_v44 = vld [vmem:[#allocation10 + $0xe88] sm:$0xff]  ;;  %v3569_v42 = vpop.f32.mrf.mxu0 }
 0x3ef   : > { %4267 = vmatpush.msrb.mxu1 %v4228_v63  ;;  %4313 = vmatpush.msra.mxu0 %v4229_v31 }
 0x3f0   : > { %4131 = vmatmul.f32.vlgmr.msra.gmra.mxu3 %v6608_v19  ;;  %4177 = vmatmul.f32.vlgmr.msrb.gmra.mxu2 %v6608_v19 }
 0x3f1   : > { %4291 = vmatpush.msrb.mxu3 %v4258_v3  ;;  %4268 = vmatpush.msrb.mxu1 %v4226_v20 }
 0x3f2   : > { %4314 = vmatpush.msra.mxu0 %v4227_v7  ;;  %4337 = vmatpush.msra.mxu2 %v4259_v8 }
 0x3f3   : > { %4292 = vmatpush.msrb.mxu3 %v4256_v12  ;;  %4269 = vmatpush.msrb.mxu1 %v4224_v62 }
 0x3f4   : > { %4315 = vmatpush.msra.mxu0 %v4225_v36  ;;  %4338 = vmatpush.msra.mxu2 %v4257_v61 }
 0x3f5   : > { %4293 = vmatpush.msrb.mxu3 %v4254_v5  ;;  %4270 = vmatpush.msrb.mxu1 %v4222_v47 }
 0x3f6   : > { %4316 = vmatpush.msra.mxu0 %v4223_v30  ;;  %4339 = vmatpush.msra.mxu2 %v4255_v28  ;;  %v3526_v3 = vpop.f32.mrf.mxu1 }
 0x3f7   : > { %4294 = vmatpush.msrb.mxu3 %v4252_v18  ;;  %4271 = vmatpush.msrb.mxu1 %v4220_v50  ;;  %v3572_v20 = vpop.f32.mrf.mxu0 }
 0x3f8   : > { %4317 = vmatpush.msra.mxu0 %v4221_v60  ;;  %4340 = vmatpush.msra.mxu2 %v4253_v33 }
 0x3f9   : > { %4134 = vmatmul.f32.gmra.mxu3 %v4106_v32  ;;  %4180 = vmatmul.f32.gmra.mxu2 %v4106_v32 }
 0x3fa   : > { %4295 = vmatpush.msrb.mxu3 %v4250_v53  ;;  %4272 = vmatpush.msrb.mxu1 %v4218_v1 }
 0x3fb   : > { %4318 = vmatpush.msra.mxu0 %v4219_v39  ;;  %4341 = vmatpush.msra.mxu2 %v4251_v34 }
 0x3fc   : > { %4296 = vmatpush.msrb.mxu3 %v4248_v56  ;;  %4273 = vmatpush.msrb.mxu1 %v4216_v2 }
 0x3fd   : > { %4319 = vmatpush.msra.mxu0 %v4217_v0  ;;  %4342 = vmatpush.msra.mxu2 %v4249_v40 }
 0x3fe   : > { %4297 = vmatpush.msrb.mxu3 %v4246_v48  ;;  %4274 = vmatpush.msrb.mxu1 %v4214_v37 }
 0x3ff   : > { %4320 = vmatpush.msra.mxu0 %v4215_v26  ;;  %4343 = vmatpush.msra.mxu2 %v4247_v54 }
 0x400   : > { %4298 = vmatpush.msrb.mxu3 %v4244_v14  ;;  %4275 = vmatpush.msrb.mxu1 %v4212_v52 }
 0x401   : > { %4321 = vmatpush.msra.mxu0 %v4213_v45  ;;  %4344 = vmatpush.msra.mxu2 %v4245_v44  ;;  %v4493_v44 = vld [vmem:[#allocation16 + $0x270] sm:$0xff] }
 0x402   : > { %4276 = vmatmul.f32.vlgmr.msrb.gmra.mxu1 %v6608_v19  ;;  %5033 = vmatmul.msk.f32.vlgmr.msrb.gmra.mxu3 %vm834_vm1, %v6583_v11 }
 0x403   : > { %4322 = vmatmul.f32.vlgmr.msra.gmra.mxu0 %v6608_v19  ;;  %5035 = vmatmul.msk.f32.vlgmr.msra.gmra.mxu2 %vm834_vm1, %v6583_v11  ;;  %v3500_v38 = vpop.f32.mrf.mxu3  ;;  %v3546_v59 = vpop.f32.mrf.mxu2 }
 0x404   : > { %v3524_v41 = vadd.f32 %v3523_v58, %v3500_v38  ;;  %v3570_v63 = vadd.f32 %v3569_v42, %v3546_v59  ;;  %v4494_v58 = vld [vmem:[#allocation16 + $0x278] sm:$0xff]  ;;  %4524 = vmatpush.msra.mxu3 %v4493_v44  ;;  %v4491_v38 = vld [vmem:[#allocation16 + $0x260] sm:$0xff]  ;;  %v4492_v59 = vld [vmem:[#allocation16 + $0x268] sm:$0xff] }
 0x405   : > { %4570 = vmatpush.msrb.mxu2 %v4494_v58  ;;  %v4475_v58 = vld [vmem:[#allocation16 + $0x1e0] sm:$0xff] }
 0x406   : > { %v3575_v31 = vadd.f32 %v3524_v41, %v6544_v16  ;;  %v3576_v15 = vadd.f32 %v3570_v63, %v6546_v17  ;;  %4525 = vmatpush.msra.mxu3 %v4491_v38  ;;  %v4507_v38 = vld [vmem:[#allocation16 + $0x2e0] sm:$0xff] }
 0x407   : > { %4571 = vmatpush.msrb.mxu2 %v4492_v59  ;;  %v4476_v59 = vld [vmem:[#allocation16 + $0x1e8] sm:$0xff] }
 0x40a   : > { %4279 = vmatmul.f32.gmra.mxu1 %v4106_v32  ;;  %5034 = vmatmul.msk.f32.gmra.mxu3 %vm834_vm1, %v6596_v35 }
 0x40b   : > { %4325 = vmatmul.f32.gmra.mxu0 %v4106_v32  ;;  %5036 = vmatmul.msk.f32.gmra.mxu2 %vm834_vm1, %v6596_v35 }
 0x40c   : > { %v3503_v19 = vpop.f32.mrf.mxu3  ;;  %v3549_v11 = vpop.f32.mrf.mxu2 }
 0x40d   : > { %v3527_v7 = vadd.f32 %v3526_v3, %v3503_v19  ;;  %v3573_v8 = vadd.f32 %v3572_v20, %v3549_v11  ;;  %v4487_v3 = vld [vmem:[#allocation16 + $0x240] sm:$0xff]  ;;  %v4488_v20 = vld [vmem:[#allocation16 + $0x248] sm:$0xff]  ;;  %v4485_v19 = vld [vmem:[#allocation16 + $0x230] sm:$0xff] }
 0x40e   : > { %v4486_v11 = vld [vmem:[#allocation16 + $0x238] sm:$0xff] }
 0x40f   : > { %v3577_v12 = vadd.f32 %v3527_v7, %v6555_v23  ;;  %v3578_v16 = vadd.f32 %v3573_v8, %v6557_v24  ;;  %v4483_v8 = vld [vmem:[#allocation16 + $0x220] sm:$0xff] }
 0x410   : > { %v6627_v62 = vpop.f32.mrf.mxu1 }
 0x411   : > { %v6629_v17 = vpop.f32.mrf.mxu0 }
 0x416   : > { %v6631_v36 = vpop.f32.mrf.mxu3 }
 0x417   : > { %v6633_v61 = vpop.f32.mrf.mxu2 }
 0x41a   : > { %v6635_v46 = vpop.f32.mrf.mxu1 }
 0x41b   : > { %v6637_v35 = vpop.f32.mrf.mxu0 }
 0x420   : > { %v6639_v5 = vpop.f32.mrf.mxu3 }
 0x421   : > { %v6641_v47 = vpop.f32.mrf.mxu2 }
 0x425   : > { %v3841_v30 = vpop.f32.mrf.mxu1  ;;  %v3887_v23 = vpop.f32.mrf.mxu0 }
 0x42e   : > { %v3844_v33 = vpop.f32.mrf.mxu1  ;;  %v3890_v53 = vpop.f32.mrf.mxu0 }
 0x43b   : > { %v3818_v28 = vpop.f32.mrf.mxu3  ;;  %v3864_v24 = vpop.f32.mrf.mxu2 }
 0x43c   : > { %v3842_v18 = vadd.f32 %v3841_v30, %v3818_v28  ;;  %v3888_v50 = vadd.f32 %v3887_v23, %v3864_v24  ;;  %v4481_v30 = vld [vmem:[#allocation16 + $0x210] sm:$0xff]  ;;  %v4482_v23 = vld [vmem:[#allocation16 + $0x218] sm:$0xff] }
 0x43e   : > { %v6643_v55 = vadd.f32 %v3842_v18, %v3575_v31  ;;  %v6645_v60 = vadd.f32 %v3888_v50, %v3576_v15  ;;  %v4489_v31 = vld [vmem:[#allocation16 + $0x250] sm:$0xff]  ;;  %v4490_v15 = vld [vmem:[#allocation16 + $0x258] sm:$0xff]  ;;  %v4479_v18 = vld [vmem:[#allocation16 + $0x200] sm:$0xff] }
 0x43f   : > { %4526 = vmatpush.msra.mxu3 %v4489_v31  ;;  %4572 = vmatpush.msrb.mxu2 %v4490_v15  ;;  %v4480_v50 = vld [vmem:[#allocation16 + $0x208] sm:$0xff] }
 0x441   : > { %4527 = vmatpush.msra.mxu3 %v4487_v3  ;;  %4573 = vmatpush.msrb.mxu2 %v4488_v20  ;;  %v6683_v3 = vld [vmem:[#allocation11 + $0x2] sm:$0x3]  ;;  %v4508_v20 = vld [vmem:[#allocation16 + $0x2e8] sm:$0xff] }
 0x443   : > { %4528 = vmatpush.msra.mxu3 %v4485_v19  ;;  %4574 = vmatpush.msrb.mxu2 %v4486_v11  ;;  %v4506_v11 = vld [vmem:[#allocation16 + $0x2d8] sm:$0xff] }
 0x444   : > { %v3821_v1 = vpop.f32.mrf.mxu3  ;;  %v3867_v32 = vpop.f32.mrf.mxu2 }
 0x445   : > { %v3845_v39 = vadd.f32 %v3844_v33, %v3821_v1  ;;  %v3891_v34 = vadd.f32 %v3890_v53, %v3867_v32  ;;  %4529 = vmatpush.msra.mxu3 %v4483_v8  ;;  %v4477_v33 = vld [vmem:[#allocation16 + $0x1f0] sm:$0xff]  ;;  %v4478_v1 = vld [vmem:[#allocation16 + $0x1f8] sm:$0xff]  ;;  %v3669_v32 = vadd.f32 %v6631_v36, %v6627_v62  ;;  %v4471_v8 = vld [vmem:[#allocation16 + $0x1c0] sm:$0xff] }
 0x446   : > { %v4509_v53 = vld [vmem:[#allocation16 + $0x2f0] sm:$0xff] }
 0x447   : > { %v6647_v56 = vadd.f32 %v3845_v39, %v3577_v12  ;;  %v6649_v2 = vadd.f32 %v3891_v34, %v3578_v16  ;;  %v4484_v12 = vld [vmem:[#allocation16 + $0x228] sm:$0xff]  ;;  %4530 = vmatpush.msra.mxu3 %v4481_v30  ;;  %4555 = vmatpush.msra.mxu1 %v4509_v53  ;;  %v4510_v39 = vld [vmem:[#allocation16 + $0x2f8] sm:$0xff]  ;;  %v3715_v34 = vadd.f32 %v6633_v61, %v6629_v17  ;;  %v4473_v36 = vld [vmem:[#allocation16 + $0x1d0] sm:$0xff]  ;;  %v4371_v53 = vperm.slane %v6683_v3, 1 }
 0x448   : > { %v3963_v0 = vpop.f32.mrf.mxu1  ;;  %4575 = vmatpush.msrb.mxu2 %v4484_v12  ;;  %4601 = vmatpush.msrb.mxu0 %v4510_v39  ;;  %v4505_v17 = vld [vmem:[#allocation16 + $0x2d0] sm:$0xff]  ;;  %v4474_v61 = vld [vmem:[#allocation16 + $0x1d8] sm:$0xff]  ;;  %v3720_v19 = vadd.f32 %v3669_v32, %v6589_v4  ;;  %v4503_v12 = vld [vmem:[#allocation16 + $0x2c0] sm:$0xff]  ;;  %v3672_v39 = vadd.f32 %v6639_v5, %v6635_v46 }
 0x449   : > { %v6651_v40 = vpop.f32.mrf.mxu0  ;;  %4531 = vmatpush.msra.mxu3 %v4479_v18  ;;  %4556 = vmatpush.msra.mxu1 %v4507_v38  ;;  %v4472_v30 = vld [vmem:[#allocation16 + $0x1c8] sm:$0xff]  ;;  %v4470_v32 = vld [vmem:[#allocation16 + $0x1b8] sm:$0xff]  ;;  %v4499_v38 = vld [vmem:[#allocation16 + $0x2a0] sm:$0xff] }
 0x44a   : > { %4576 = vmatpush.msrb.mxu2 %v4482_v23  ;;  %4602 = vmatpush.msrb.mxu0 %v4508_v20  ;;  %v4500_v20 = vld [vmem:[#allocation16 + $0x2a8] sm:$0xff]  ;;  %v4497_v5 = vld [vmem:[#allocation16 + $0x290] sm:$0xff] }
 0x44b   : > { %4532 = vmatpush.msra.mxu3 %v4477_v33  ;;  %4557 = vmatpush.msra.mxu1 %v4505_v17  ;;  %v4466_v17 = vld [vmem:[#allocation16 + $0x198] sm:$0xff] }
 0x44c   : > { %4577 = vmatpush.msrb.mxu2 %v4480_v50  ;;  %4603 = vmatpush.msrb.mxu0 %v4506_v11  ;;  %v4504_v50 = vld [vmem:[#allocation16 + $0x2c8] sm:$0xff]  ;;  %v4463_v11 = vld [vmem:[#allocation16 + $0x180] sm:$0xff] }
 0x44d   : > { %4533 = vmatpush.msra.mxu3 %v4475_v58  ;;  %4558 = vmatpush.msra.mxu1 %v4503_v12  ;;  %v4467_v58 = vld [vmem:[#allocation16 + $0x1a0] sm:$0xff]  ;;  %v4496_v12 = vld [vmem:[#allocation16 + $0x288] sm:$0xff] }
 0x44e   : > { %v3986_v48 = vpop.f32.mrf.mxu3  ;;  %4578 = vmatpush.msrb.mxu2 %v4478_v1  ;;  %4604 = vmatpush.msrb.mxu0 %v4504_v50  ;;  %v4501_v1 = vld [vmem:[#allocation16 + $0x2b0] sm:$0xff] }
 0x44f   : > { %v6653_v37 = vpop.f32.mrf.mxu2  ;;  %v3987_v31 = vadd.f32 %v3986_v48, %v3963_v0  ;;  %4534 = vmatpush.msra.mxu3 %v4473_v36  ;;  %v3721_v0 = vadd.f32 %v3715_v34, %v6591_v22  ;;  %v4469_v22 = vld [vmem:[#allocation16 + $0x1b0] sm:$0xff]  ;;  %4559 = vmatpush.msra.mxu1 %v4501_v1 }
 0x450   : > { %v4033_v62 = vadd.f32 %v6653_v37, %v6651_v40  ;;  %4579 = vmatpush.msrb.mxu2 %v4476_v59  ;;  %v4370_v37 = vperm.slane %v6683_v3, 0  ;;  %v3718_v59 = vadd.f32 %v6641_v47, %v6637_v35  ;;  %v4638_v3 = vld [vmem:[#allocation19 + $0x70] sm:$0xff] }
 0x451   : > { %v4038_v23 = vadd.f32 %v3987_v31, %v3720_v19  ;;  %4535 = vmatpush.msra.mxu3 %v4471_v8  ;;  %4560 = vmatpush.msra.mxu1 %v4499_v38  ;;  %v4464_v8 = vld [vmem:[#allocation16 + $0x188] sm:$0xff] }
 0x452   : > { %v6655_v26 = vpop.f32.mrf.mxu1  ;;  %4580 = vmatpush.msrb.mxu2 %v4474_v61  ;;  %v4039_v4 = vadd.f32 %v4033_v62, %v3721_v0  ;;  %v4465_v62 = vld [vmem:[#allocation16 + $0x190] sm:$0xff]  ;;  %v4498_v61 = vld [vmem:[#allocation16 + $0x298] sm:$0xff]  ;;  %v4495_v0 = vld [vmem:[#allocation16 + $0x280] sm:$0xff] }
 0x453   : > { %v6657_v54 = vpop.f32.mrf.mxu0  ;;  %4536 = vmatpush.msra.mxu3 %v4469_v22  ;;  %4561 = vmatpush.msra.mxu1 %v4497_v5 }
 0x454   : > { %4581 = vmatpush.msrb.mxu2 %v4472_v30  ;;  %v3723_v30 = vadd.f32 %v3718_v59, %v6605_v51 }
 0x455   : > { %4537 = vmatpush.msra.mxu3 %v4467_v58  ;;  %4562 = vmatpush.msra.mxu1 %v4495_v0 }
 0x456   : > { %4582 = vmatpush.msrb.mxu2 %v4470_v32 }
 0x457   : > { %4538 = vmatpush.msra.mxu3 %v4465_v62 }
 0x458   : > { %v6659_v14 = vpop.f32.mrf.mxu3 }
 0x459   : > { %v6661_v52 = vpop.f32.mrf.mxu2  ;;  %v3990_v36 = vadd.f32 %v6659_v14, %v6655_v26  ;;  %4539 = vmatpush.msra.mxu3 %v4463_v11  ;;  %v4634_v11 = vld [vmem:[#allocation19 + $0x50] sm:$0xff] }
 0x45a   : > { %v4036_v35 = vadd.f32 %v6661_v52, %v6657_v54 }
 0x45d   : > { %v6663_v45 = vpop.f32.mrf.mxu1  ;;  %v6665_v42 = vpop.f32.mrf.mxu0 }
 0x466   : > { %v6671_v7 = vpop.f32.mrf.mxu1  ;;  %v6673_v16 = vpop.f32.mrf.mxu0 }
 0x473   : > { %v6667_v41 = vpop.f32.mrf.mxu3  ;;  %v6669_v63 = vpop.f32.mrf.mxu2 }
 0x474   : > { %v4202_v59 = vadd.f32 %v6665_v42, %v6669_v63 }
 0x476   : > { %v4208_v42 = vadd.f32 %v4202_v59, %v6645_v60 }
 0x47c   : > { %v6675_v28 = vpop.f32.mrf.mxu3  ;;  %v6677_v24 = vpop.f32.mrf.mxu2 }
 0x47d   : > { %v4159_v60 = vadd.f32 %v6671_v7, %v6675_v28 }
 0x47f   : > { %v4277_v44 = vpop.f32.mrf.mxu1  ;;  %v4209_v28 = vadd.f32 %v4159_v60, %v6647_v56 }
 0x480   : > { %v4323_v15 = vpop.f32.mrf.mxu0 }
 0x485   : > { %v4300_v48 = vpop.f32.mrf.mxu3 }
 0x486   : > { %v4301_v40 = vadd.f32 %v4300_v48, %v4277_v44  ;;  %v4346_v18 = vpop.f32.mrf.mxu2  ;;  %v4502_v44 = vld [vmem:[#allocation16 + $0x2b8] sm:$0xff]  ;;  %v3722_v48 = vadd.f32 %v3672_v39, %v6602_v21  ;;  %v4156_v39 = vadd.f32 %v6663_v45, %v6667_v41  ;;  %v4637_v41 = vld [vmem:[#allocation19 + $0x68] sm:$0xff] }
 0x487   : > { %v4347_v33 = vadd.f32 %v4346_v18, %v4323_v15  ;;  %4605 = vmatpush.msrb.mxu0 %v4502_v44  ;;  %v4468_v15 = vld [vmem:[#allocation16 + $0x1a8] sm:$0xff]  ;;  %v4280_v19 = vpop.f32.mrf.mxu1  ;;  %v6707_v44 = vld [vmem:[#allocation8 + $0x2] sm:$0x3] }
 0x488   : > { %v4352_v34 = vadd.f32 %v4301_v40, %v4038_v23  ;;  %4583 = vmatpush.msrb.mxu2 %v4468_v15  ;;  %v4326_v14 = vpop.f32.mrf.mxu0  ;;  %v4040_v54 = vadd.f32 %v3990_v36, %v3722_v48  ;;  %v4639_v36 = vld [vmem:[#allocation19 + $0x78] sm:$0xff]  ;;  %v4360_v63 = vperm.slane %v6707_v44, 1 }
 0x489   : > { %v4353_v31 = vadd.f32 %v4347_v33, %v4039_v4  ;;  %4606 = vmatpush.msrb.mxu0 %v4500_v20  ;;  %v4041_v4 = vadd.f32 %v4036_v35, %v3723_v30  ;;  %4658 = vmatpush.msrb.mxu1 %v4639_v36 }
 0x48a   : > { %v4374_v46 = vadd.f32 %v4370_v37, %v4352_v34  ;;  %4584 = vmatpush.msrb.mxu2 %v4466_v17  ;;  %v4635_v17 = vld [vmem:[#allocation19 + $0x58] sm:$0xff]  ;;  %v4364_v35 = vadd.f32 %v4360_v63, %v4208_v42 }
 0x48b   : > { %v4375_v47 = vadd.f32 %v4371_v53, %v4353_v31  ;;  %4607 = vmatpush.msrb.mxu0 %v4498_v61  ;;  %4659 = vmatpush.msrb.mxu1 %v4638_v3 }
 0x48c   : > { %v4382_v26 = vsub.f32 0.0, %v4374_v46  ;;  %4585 = vmatpush.msrb.mxu2 %v4464_v8  ;;  %v4647_v46 = vld [vmem:[#allocation19 + $0xb8] sm:$0xff]  ;;  %v4633_v8 = vld [vmem:[#allocation19 + $0x48] sm:$0xff] }
 0x48d   : > { %v4383_v23 = vsub.f32 0.0, %v4375_v47  ;;  %v4303_v40 = vpop.f32.mrf.mxu3  ;;  %4608 = vmatpush.msrb.mxu0 %v4496_v12  ;;  %4689 = vmatpush.msrb.mxu3 %v4647_v46  ;;  %v4205_v12 = vadd.f32 %v6673_v16, %v6677_v24 }
 0x48e   : > { %v4386_v52 = vmul.f32 1.442695, %v4382_v26  ;;  %v4304_v18 = vadd.f32 %v4303_v40, %v4280_v19  ;;  %v4349_v50 = vpop.f32.mrf.mxu2  ;;  %4660 = vmatpush.msrb.mxu1 %v4637_v41 }
 0x48f   : > { %v4388_v21 = vmul.f32 1.442695, %v4383_v23  ;;  %v4350_v33 = vadd.f32 %v4349_v50, %v4326_v14  ;;  %v4210_v56 = vadd.f32 %v4205_v12, %v6649_v2  ;;  %v4645_v12 = vld [vmem:[#allocation19 + $0xa8] sm:$0xff] }
 0x490   : > { %5212 = vpow2.f32 %v4386_v52  ;;  %v4354_v22 = vadd.f32 %v4304_v18, %v4040_v54  ;;  %v4632_v52 = vld [vmem:[#allocation19 + $0x40] sm:$0xff] }
 0x491   : > { %5214 = vpow2.f32 %v4388_v21  ;;  %v4355_v1 = vadd.f32 %v4350_v33, %v4041_v4 }
 0x492   : > { %v4376_v51 = vadd.f32 %v4370_v37, %v4354_v22  ;;  %v4207_v37 = vadd.f32 %v4156_v39, %v6643_v55  ;;  %v4636_v55 = vld [vmem:[#allocation19 + $0x60] sm:$0xff] }
 0x493   : > { %v4377_v32 = vadd.f32 %v4371_v53, %v4355_v1  ;;  %v4359_v53 = vperm.slane %v6707_v44, 0  ;;  %4661 = vmatpush.msrb.mxu1 %v4636_v55 }
 0x494   : > { %v4384_v34 = vsub.f32 0.0, %v4376_v51 }
 0x495   : > { %v4385_v58 = vsub.f32 0.0, %v4377_v32  ;;  %v4363_v5 = vadd.f32 %v4359_v53, %v4207_v37  ;;  %4662 = vmatpush.msrb.mxu1 %v4635_v17  ;;  %v4365_v22 = vadd.f32 %v4359_v53, %v4209_v28  ;;  %v4628_v28 = vld [vmem:[#allocation19 + $0x20] sm:$0xff] }
 0x496   : > { %v5213_v38 = vpop.eup %5212  ;;  %v4390_v31 = vmul.f32 1.442695, %v4384_v34 }
 0x497   : > { %v5215_v15 = vpop.eup %5214  ;;  %v6711_v20 = vadd.f32 1.0, %v5213_v38  ;;  %v4392_v62 = vmul.f32 1.442695, %v4385_v58  ;;  %4663 = vmatpush.msrb.mxu1 %v4634_v11 }
 0x498   : > { %v6715_v45 = vadd.f32 1.0, %v5215_v15  ;;  %5216 = vpow2.f32 %v4390_v31  ;;  %v4366_v31 = vadd.f32 %v4360_v63, %v4210_v56  ;;  %v4512_v56 = vld [vmem:[#allocation17 + $0x2] sm:$0x3] }
 0x499   : > { %5218 = vrcp.f32 %v6711_v20  ;;  %v4407_v40 = vand.u32 2147483647, %v6711_v20  ;;  %v4409_v54 = vand.u32 2147483648, %v6711_v20  ;;  %4664 = vmatpush.msrb.mxu1 %v4633_v8  ;;  %vm4403_vm4 = vweird.f32 %v6711_v20  ;;  %v4630_v8 = vld [vmem:[#allocation19 + $0x30] sm:$0xff] }
 0x49a   : > { %5220 = vrcp.f32 %v6715_v45  ;;  %v4424_v18 = vand.u32 2147483648, %v6715_v45  ;;  %v4422_v24 = vand.u32 2147483647, %v6715_v45  ;;  %vm4418_vm5 = vweird.f32 %v6715_v45 }
 0x49b   : > { %5222 = vpow2.f32 %v4392_v62  ;;  %4665 = vmatpush.msrb.mxu1 %v4632_v52  ;;  %v4410_v51 = vor.u32 1.1754944e-38, %v4409_v54  ;;  %vm4408_vm14 = vcmp.eq.f32.partialorder %v4407_v40, 8.507059e+37  ;;  %v4627_v40 = vld [vmem:[#allocation19 + $0x18] sm:$0xff]  ;;  %v4642_v54 = vld [vmem:[#allocation19 + $0x90] sm:$0xff] }
 0x49c   : > { %5224 = vtanh.f32 %v4363_v5  ;;  %v4425_v39 = vor.u32 1.1754944e-38, %v4424_v18  ;;  %vm4423_vm15 = vcmp.eq.f32.partialorder %v4422_v24, 8.507059e+37  ;;  %v4626_v52 = vld [vmem:[#allocation19 + $0x10] sm:$0xff]  ;;  %v4641_v18 = vld [vmem:[#allocation19 + $0x88] sm:$0xff]  ;;  %v4624_v24 = vld [vmem:[#allocation19] sm:$0xff] }
 0x49e   : > { %v5217_v61 = vpop.eup %5216 }
 0x49f   : > { %v5219_v47 = vpop.eup %5218  ;;  %v6725_v19 = vadd.f32 1.0, %v5217_v61 }
 0x4a0   : > { %v5221_v0 = vpop.eup %5220  ;;  %v4399_v48 = vmul.f32 %v5219_v47, %v6711_v20  ;;  %vm4404_vm2 = vweird.f32 %v5219_v47 }
 0x4a1   : > { %v5223_v26 = vpop.eup %5222  ;;  %v4414_v14 = vmul.f32 %v5221_v0, %v6715_v45  ;;  %5226 = vrcp.f32 %v6725_v19  ;;  %vm4419_vm3 = vweird.f32 %v5221_v0  ;;  %vm4405_vm12 = vmor %vm4403_vm4, %vm4404_vm2  ;;  %v4439_v3 = vand.u32 2147483648, %v6725_v19 }
 0x4a2   : > { %5228 = vtanh.f32 %v4364_v35  ;;  %v4400_v30 = vsub.f32 1.0, %v4399_v48  ;;  %v6732_v7 = vadd.f32 1.0, %v5223_v26  ;;  %v5225_v4 = vpop.eup %5224  ;;  %vm4420_vm13 = vmor %vm4418_vm5, %vm4419_vm3  ;;  %v4437_v45 = vand.u32 2147483647, %v6725_v19  ;;  %v4631_v26 = vld [vmem:[#allocation19 + $0x38] sm:$0xff] }
 0x4a3   : > { %v4415_v23 = vsub.f32 1.0, %v4414_v14  ;;  %vm4433_vm7 = vweird.f32 %v6725_v19  ;;  %v4440_v42 = vor.u32 1.1754944e-38, %v4439_v3  ;;  %v4646_v14 = vld [vmem:[#allocation19 + $0xb0] sm:$0xff]  ;;  %4666 = vmatpush.msrb.mxu1 %v4631_v26 }
 0x4a4   : > { %5230 = vrcp.f32 %v6732_v7  ;;  %v4401_v50 = vmul.f32 %v5219_v47, %v4400_v30  ;;  %v4454_v46 = vand.u32 2147483648, %v6732_v7  ;;  %v4452_v55 = vand.u32 2147483647, %v6732_v7  ;;  %4690 = vmatpush.msrb.mxu3 %v4646_v14  ;;  %v4629_v30 = vld [vmem:[#allocation19 + $0x28] sm:$0xff] }
 0x4a5   : > { %v4416_v16 = vmul.f32 %v5221_v0, %v4415_v23  ;;  %5232 = vtanh.f32 %v4365_v22  ;;  %vm4438_vm10 = vcmp.eq.f32.partialorder %v4437_v45, 8.507059e+37  ;;  %vm4448_vm11 = vweird.f32 %v6732_v7  ;;  %4667 = vmatpush.msrb.mxu1 %v4630_v8  ;;  %v4643_v23 = vld [vmem:[#allocation19 + $0x98] sm:$0xff] }
 0x4a6   : > { %v4402_v21 = vadd.f32 %v5219_v47, %v4401_v50  ;;  %5234 = vtanh.f32 %v4366_v31  ;;  %v4455_v60 = vor.u32 1.1754944e-38, %v4454_v46  ;;  %vm4453_vm3 = vcmp.eq.f32.partialorder %v4452_v55, 8.507059e+37  ;;  %4691 = vmatpush.msrb.mxu3 %v4645_v12  ;;  %v4625_v50 = vld [vmem:[#allocation19 + $0x8] sm:$0xff] }
 0x4a7   : > { %v5227_v33 = vpop.eup %5226  ;;  %v4417_v1 = vadd.f32 %v5221_v0, %v4416_v16  ;;  %4668 = vmatpush.msrb.mxu1 %v4629_v30  ;;  %v4640_v16 = vld [vmem:[#allocation19 + $0x80] sm:$0xff]  ;;  %v4514_v22 = vperm.slane %v4512_v56, 0  ;;  %v735_v30 = vld [vmem:[%s719_s27 + $0x8] sm:$0xff] }
 0x4a8   : > { %v5229_v32 = vpop.eup %5228  ;;  %v4406_v34 = vsel %vm4405_vm12, %v5219_v47, %v4402_v21  ;;  %v4429_v58 = vmul.f32 %v5227_v33, %v6725_v19  ;;  %vm4434_vm6 = vweird.f32 %v5227_v33 }
 0x4a9   : > { %v4411_v38 = vsel %vm4408_vm14, %v4410_v51, %v4406_v34  ;;  %v4421_v2 = vsel %vm4420_vm13, %v5221_v0, %v4417_v1  ;;  %vm4435_vm8 = vmor %vm4433_vm7, %vm4434_vm6  ;;  %4669 = vmatpush.msrb.mxu1 %v4628_v28  ;;  %v4515_v1 = vperm.slane %v4512_v56, 1 }
 0x4aa   : > { %v5231_v59 = vpop.eup %5230  ;;  %v4458_v15 = vmul.f32 %v5225_v4, %v4411_v38  ;;  %v4426_v20 = vsel %vm4423_vm15, %v4425_v39, %v4421_v2  ;;  %v4430_v62 = vsub.f32 1.0, %v4429_v58  ;;  %v2545_v4 = vld [vmem:[#allocation17] sm:$0x3] }
 0x4ab   : > { %v4459_v36 = vmul.f32 %v5229_v32, %v4426_v20  ;;  %v4444_v37 = vmul.f32 %v5231_v59, %v6732_v7  ;;  %vm4449_vm9 = vweird.f32 %v5231_v59  ;;  %v5233_v17 = vpop.eup %5232  ;;  %v4644_v7 = vld [vmem:[#allocation19 + $0xa0] sm:$0xff]  ;;  %4670 = vmatpush.msrb.mxu1 %v4627_v40  ;;  %v2547_v21 = vperm.slane %v2545_v4, 0 }
 0x4ac   : > { %4540 = vmatmul.f32.vlgmr.msra.gmra.mxu3 %v4458_v15  ;;  %4586 = vmatmul.f32.vlgmr.msrb.gmra.mxu2 %v4458_v15  ;;  %v4431_v53 = vmul.f32 %v5227_v33, %v4430_v62  ;;  %vm4450_vm2 = vmor %vm4448_vm11, %vm4449_vm9  ;;  %v5235_v19 = vpop.eup %5234 }
 0x4ad   : > { %5037 = vmatmul.msk.f32.vlgmr.msra.gmra.mxu1 %vm834_vm1, %v4459_v36  ;;  %5039 = vmatmul.msk.f32.vlgmr.msrb.gmra.mxu0 %vm834_vm1, %v4459_v36  ;;  %v4445_v44 = vsub.f32 1.0, %v4444_v37  ;;  %v2575_v58 = vadd.f32 %v6373_v13, %v2547_v21  ;;  %v2578_v45 = vadd.f32 %v6381_v9, %v2547_v21 }
 0x4ae   : > { %v4432_v41 = vadd.f32 %v5227_v33, %v4431_v53  ;;  %4692 = vmatpush.msrb.mxu3 %v4644_v7  ;;  %4671 = vmatpush.msrb.mxu1 %v4626_v52 }
 0x4af   : > { %v4446_v63 = vmul.f32 %v5231_v59, %v4445_v44  ;;  %v2598_v31 = vadd.f32 %v6377_v27, %v2575_v58 }
 0x4b0   : > { %v4436_v5 = vsel %vm4435_vm8, %v5227_v33, %v4432_v41  ;;  %4693 = vmatpush.msrb.mxu3 %v4643_v23  ;;  %4672 = vmatpush.msrb.mxu1 %v4625_v50  ;;  %v2548_v33 = vperm.slane %v2545_v4, 1 }
 0x4b1   : > { %v4441_v61 = vsel %vm4438_vm10, %v4440_v42, %v4436_v5  ;;  %v4447_v35 = vadd.f32 %v5231_v59, %v4446_v63  ;;  %v2601_v42 = vadd.f32 %v6385_v43, %v2578_v45 }
 0x4b2   : > { %v4460_v47 = vmul.f32 %v5233_v17, %v4441_v61  ;;  %4694 = vmatpush.msrb.mxu3 %v4642_v54  ;;  %4673 = vmatpush.msrb.mxu1 %v4624_v24  ;;  %v2621_v38 = vadd.f32 %v6375_v49, %v2548_v33  ;;  %v2624_v49 = vadd.f32 %v6383_v29, %v2548_v33 }
 0x4b3   : > { %v4451_v11 = vsel %vm4450_vm2, %v5231_v59, %v4447_v35 }
 0x4b4   : > { %4543 = vmatmul.f32.gmra.mxu3 %v4460_v47  ;;  %v4456_v0 = vsel %vm4453_vm3, %v4455_v60, %v4451_v11  ;;  %4589 = vmatmul.f32.gmra.mxu2 %v4460_v47  ;;  %v2644_v15 = vadd.f32 %v6379_v57, %v2621_v38  ;;  %v2647_v63 = vadd.f32 %v6387_v6, %v2624_v49  ;;  %v5187_v47 = vld [vmem:[#allocation20] ss:$0 sm:$0xff]  ;;  %v734_v11 = vld [vmem:[%s719_s27] sm:$0xff] }
 0x4b5   : > { %v4461_v48 = vmul.f32 %v5235_v19, %v4456_v0  ;;  %4695 = vmatpush.msrb.mxu3 %v4641_v18 }
 0x4b7   : > { %5038 = vmatmul.msk.f32.gmra.mxu1 %vm834_vm1, %v4461_v48  ;;  %5040 = vmatmul.msk.f32.gmra.mxu0 %vm834_vm1, %v4461_v48 }
 0x4b8   : > { %4696 = vmatpush.msrb.mxu3 %v4640_v16 }
 0x52a   : > { %v4564_v51 = vpop.f32.mrf.mxu1  ;;  %v4610_v32 = vpop.f32.mrf.mxu0 }
 0x52f   : > { %v4541_v39 = vpop.f32.mrf.mxu3  ;;  %v4587_v34 = vpop.f32.mrf.mxu2 }
 0x530   : > { %v4542_v2 = vadd.f32 %v4541_v39, %v4514_v22  ;;  %v4588_v59 = vadd.f32 %v4587_v34, %v4515_v1 }
 0x532   : > { %v4565_v20 = vadd.f32 %v4564_v51, %v4542_v2  ;;  %v4611_v62 = vadd.f32 %v4610_v32, %v4588_v59 }
 0x534   : > { %v4616_v36 = vadd.f32 %v4565_v20, %v2598_v31  ;;  %v4617_v3 = vadd.f32 %v4611_v62, %v2644_v15  ;;  %v4567_v27 = vpop.f32.mrf.mxu1  ;;  %v4613_v57 = vpop.f32.mrf.mxu0 }
 0x536   : > { %v4620_v37 = vmul.f32 %v4616_v36, %v6857_v25  ;;  %v4621_v53 = vmul.f32 %v4617_v3, %v6857_v25 }
 0x537   : > { %v4544_v44 = vpop.f32.mrf.mxu3  ;;  %v4590_v13 = vpop.f32.mrf.mxu2 }
 0x538   : > { %v4545_v41 = vadd.f32 %v4544_v44, %v4514_v22  ;;  %v4591_v46 = vadd.f32 %v4590_v13, %v4515_v1  ;;  %4674 = vmatmul.f32.vlgmr.msrb.gmra.mxu1 %v4620_v37  ;;  %5041 = vmatmul.msk.f32.vlgmr.msrb.gmra.mxu3 %vm834_vm1, %v4621_v53 }
 0x53a   : > { %v4568_v55 = vadd.f32 %v4567_v27, %v4545_v41  ;;  %v4614_v5 = vadd.f32 %v4613_v57, %v4591_v46 }
 0x53c   : > { %v4618_v17 = vadd.f32 %v4568_v55, %v2601_v42  ;;  %v4619_v9 = vadd.f32 %v4614_v5, %v2647_v63 }
 0x53e   : > { %v4623_v61 = vmul.f32 %v4619_v9, %v6859_v10  ;;  %v4622_v29 = vmul.f32 %v4618_v17, %v6859_v10 }
 0x540   : > { %4677 = vmatmul.f32.gmra.mxu1 %v4622_v29  ;;  %5042 = vmatmul.msk.f32.gmra.mxu3 %vm834_vm1, %v4623_v61 }
 0x5b5   : > { %v4675_v35 = vpop.f32.mrf.mxu1 }
 0x5b6   : > { %v4676_v60 = vadd.f32 %v5187_v47, %v4675_v35 }
 0x5bb   : > { %v4698_v43 = vpop.f32.mrf.mxu3 }
 0x5bc   : > { %v4699_v6 = vadd.f32 %v4698_v43, %v4676_v60 }
 0x5bd   : > { %v4678_v0 = vpop.f32.mrf.mxu1 }
 0x5be   : > { %v4704_v19 = vmul.f32 %v4699_v6, %v6857_v25  ;;  %v4679_v14 = vadd.f32 %v5187_v47, %v4678_v0 }
 0x5c0   : > { %v4706_v48 = vadd.f32 %v4704_v19, %v734_v11 }
 0x5c2   : > { %v4708_v26 = vmul.f32 %v4706_v48, %v6857_v25 }
 0x5c3   : > { %v4701_v8 = vpop.f32.mrf.mxu3 }
 0x5c4   : > { %4710 = vst.msk [vmem:[%s729_s28] sm:$0xff] %vm766_vm0, %v4708_v26  ;;  %v4702_v12 = vadd.f32 %v4701_v8, %v4679_v14 }
 0x5c6   : > { %v4705_v7 = vmul.f32 %v4702_v12, %v6859_v10 }
 0x5c8   : > { %v4707_v28 = vadd.f32 %v4705_v7, %v735_v30 }
 0x5ca   : > { %v4709_v23 = vmul.f32 %v4707_v28, %v6859_v10 }
 0x5cc   : > { %4711 = vst.msk [vmem:[%s729_s28 + $0x8] sm:$0xff] %vm766_vm0, %v4709_v23 }
 0x5cd PF: > { %s6860_s4 = sld [smem:[#allocation29_spill]] }
 0x5d3   : > { %s32_s18 = sadd.s32 1, %s6860_s4  }
 0x5d4   : > { %p29_p7 = scmp.ge.s32.totalorder %s32_s18, 4  }
 0x5d6   :  { %31 = sbr.rel (!%p29_p7) target bundleno = 11 (0xb), region = 187 }
 0x5db   :  { %4733 = vsyncpa [#allocation4], 1 }
 0x5dc   :  { %4735 = vsyncpa [#allocation4 + $0x1], 1 }
 0x5dd   :  { %4736 = vsyncpa [#allocation6], 1 }
 0x5de   :  { %4737 = vsyncpa [#allocation9], 1 }
 0x5df   :  { %4738 = vsyncpa [#allocation12], 1 }
 0x5e0   :  { %4739 = vsyncpa [#allocation15], 1 }
 0x5e1   :  { %4740 = vsyncpa [#allocation18], 1 }
 0x5e2   :  { %4741 = vsyncpa [#allocation21], 1 }

</bundles_post_ra>
